<compile_context>
chip_gen: v7x
topology: tpu7x:2x2x1
jax: 0.10.0
libtpu: 0.0.40
codegen_flags: <defaults>
</compile_context>

<pallas_src>
import jax
import jax.numpy as jnp
from jax import lax
from jax.experimental import pallas as pl
from jax.experimental.pallas import tpu as pltpu


def _round_up(x, m):
    return (x + m - 1) // m * m


# ----------------------------------------------------------------------------
# Fused kernel: all GRU layers + final FC, grid over time chunks.
# ----------------------------------------------------------------------------
def _make_fused_gru_kernel(num_layers, T, Tc, H_p, mask_time):
    def kernel(*args):
        # ---- unpack refs: inputs..., output, scratch... ----
        idx = 0
        x_ref = args[idx]; idx += 1
        layer_refs = []
        for _ in range(num_layers):
            layer_refs.append(args[idx:idx + 4]); idx += 4
        fc_w_ref = args[idx]; idx += 1
        fc_b_ref = args[idx]; idx += 1
        out_ref = args[idx]; idx += 1
        gi_scr = args[idx]; idx += 1
        seq_scr = (args[idx], args[idx + 1]); idx += 2
        h_scrs = args[idx:idx + num_layers]

        c = pl.program_id(0)
        n_chunks = pl.num_programs(0)
        t0 = c * Tc  # global time offset of this chunk

        @pl.when(c == 0)
        def _():  # h0 = 0 for every layer (PyTorch default)
            for l in range(num_layers):
                h_scrs[l][...] = jnp.zeros_like(h_scrs[l])

        seq_in = x_ref[...]  # (Tc, B_p, D_p) time-major chunk
        for l in range(num_layers):
            wih_ref, whh_ref, bih_ref, bhh_ref = layer_refs[l]
            last_layer = (l == num_layers - 1)
            Tc_, B_p, D_in = seq_in.shape

            # Hoisted input projection for the whole chunk: one big MXU matmul
            # (no time dependence), instead of an M=B matmul per step.
            gi = jnp.dot(seq_in.reshape(Tc_ * B_p, D_in), wih_ref[...],
                         preferred_element_type=jnp.float32) + bih_ref[...]
            gi_scr[...] = gi.reshape(Tc_, B_p, 3 * H_p)

            whh = whh_ref[...]
            bhh = bhh_ref[...]
            out_seq = seq_scr[l % 2]

            def step(t, h):
                g_i = gi_scr[t]                                   # (B_p, 3H_p)
                g_h = jnp.dot(h, whh,
                              preferred_element_type=jnp.float32) + bhh
                r = jax.nn.sigmoid(g_i[:, :H_p] + g_h[:, :H_p])
                z = jax.nn.sigmoid(g_i[:, H_p:2 * H_p] + g_h[:, H_p:2 * H_p])
                n = jnp.tanh(g_i[:, 2 * H_p:] + r * g_h[:, 2 * H_p:])
                h_new = (1.0 - z) * n + z * h
                if mask_time:  # freeze h on zero-padded time steps
                    h_new = jnp.where(t0 + t < T, h_new, h)
                if not last_layer:  # next layer consumes this chunk's sequence
                    out_seq[t] = h_new
                return h_new

            h_fin = lax.fori_loop(0, Tc, step, h_scrs[l][...],
                                  unroll=(Tc <= 16))
            h_scrs[l][...] = h_fin
            if not last_layer:
                seq_in = out_seq[...]

        # Fused final Linear on the last layer's hidden state at the true last
        # time step; only materialized on the final chunk.
        @pl.when(c == n_chunks - 1)
        def _():
            h_last = h_scrs[num_layers - 1][...]
            out_ref[...] = (jnp.dot(h_last, fc_w_ref[...],
                                    preferred_element_type=jnp.float32)
                            + fc_b_ref[...]).astype(out_ref.dtype)

    return kernel


# ----------------------------------------------------------------------------
# Host-side padding helpers (gate blocks padded independently so [r|z|n]
# slices stay lane-aligned at multiples of H_p).
# ----------------------------------------------------------------------------
def _pad_gate_cols(w, H, H_p):
    rows = w.shape[0]
    out = jnp.zeros((rows, 3 * H_p), w.dtype)
    for g in range(3):
        out = out.at[:, g * H_p:g * H_p + H].set(w[:, g * H:(g + 1) * H])
    return out


def _pad_rows(w, rows_p):
    return jnp.zeros((rows_p,) + w.shape[1:], w.dtype).at[:w.shape[0]].set(w)


# ----------------------------------------------------------------------------
# Full model forward (matches torch GRU(batch_first=True) + Linear on last step)
# ----------------------------------------------------------------------------
def gru_model_forward(x, params, *, time_chunk=128):
    B, T, D = x.shape
    layers = params["layers"]
    num_layers = len(layers)
    H = layers[0][1].shape[0]
    O = params["fc_w"].shape[1]

    # MXU/VPU-friendly padded sizes.
    B_p = _round_up(B, 8)
    D_p = _round_up(D, 128)
    H_p = _round_up(H, 128)
    O_p = _round_up(O, 128)
    Tc = min(T, time_chunk)
    n_chunks = pl.cdiv(T, Tc)
    T_p = n_chunks * Tc
    mask_time = (T_p != T)

    f32 = jnp.float32
    # Pad + transpose x to time-major in one fused XLA copy (no extra HBM
    # round-trip beyond the unavoidable padding copy).
    x_p = jnp.zeros((T_p, B_p, D_p), f32)
    x_p = x_p.at[:T, :B, :D].set(jnp.transpose(x, (1, 0, 2)).astype(f32))

    # TODO(synk): on v6e/v7x, cast the padded weights to bf16 here (keep f32
    # accumulation and f32 gate math) to use the big-MXU path; kept f32 so the
    # tight f32 reference tolerance below still holds.
    flat_inputs = [x_p]
    in_specs = [pl.BlockSpec((Tc, B_p, D_p), lambda c: (c, 0, 0))]
    for l, (wih, whh, bih, bhh) in enumerate(layers):
        d_in_p = D_p if l == 0 else H_p
        flat_inputs += [
            _pad_rows(_pad_gate_cols(wih.astype(f32), H, H_p), d_in_p),
            _pad_rows(_pad_gate_cols(whh.astype(f32), H, H_p), H_p),
            _pad_gate_cols(bih.astype(f32), H, H_p),
            _pad_gate_cols(bhh.astype(f32), H, H_p),
        ]
        in_specs += [
            pl.BlockSpec((d_in_p, 3 * H_p), lambda c: (0, 0)),
            pl.BlockSpec((H_p, 3 * H_p), lambda c: (0, 0)),
            pl.BlockSpec((1, 3 * H_p), lambda c: (0, 0)),
            pl.BlockSpec((1, 3 * H_p), lambda c: (0, 0)),
        ]
    fc_w_p = jnp.zeros((H_p, O_p), f32).at[:H, :O].set(params["fc_w"].astype(f32))
    fc_b_p = jnp.zeros((1, O_p), f32).at[:, :O].set(params["fc_b"].astype(f32))
    flat_inputs += [fc_w_p, fc_b_p]
    in_specs += [pl.BlockSpec((H_p, O_p), lambda c: (0, 0)),
                 pl.BlockSpec((1, O_p), lambda c: (0, 0))]

    scratch_shapes = (
        [pltpu.VMEM((Tc, B_p, 3 * H_p), f32)]          # hoisted gi, one chunk
        + [pltpu.VMEM((Tc, B_p, H_p), f32)] * 2        # layer-to-layer sequences
        + [pltpu.VMEM((B_p, H_p), f32)] * num_layers   # per-layer hidden state
    )

    # Explicit VMEM budget (conservative: inputs double-buffered + scratch).
    est = 4 * (2 * Tc * B_p * D_p
               + 2 * sum(int(w.size) for w in flat_inputs[1:])
               + 2 * B_p * O_p
               + Tc * B_p * 3 * H_p + 2 * Tc * B_p * H_p
               + num_layers * B_p * H_p)
    vmem_limit = int(min(64 * 1024 * 1024, max(2 * est, 16 * 1024 * 1024)))

    kernel = _make_fused_gru_kernel(num_layers, T, Tc, H_p, mask_time)
    out_p = pl.pallas_call(
        kernel,
        out_shape=jax.ShapeDtypeStruct((B_p, O_p), x.dtype),
        grid_spec=pltpu.PrefetchScalarGridSpec(
            num_scalar_prefetch=0,
            grid=(n_chunks,),
            in_specs=in_specs,
            out_specs=pl.BlockSpec((B_p, O_p), lambda c: (0, 0)),
            scratch_shapes=scratch_shapes,
        ),
        compiler_params=pltpu.CompilerParams(
            dimension_semantics=("arbitrary",),  # time recurrence => sequential
            vmem_limit_bytes=vmem_limit,
        ),
    )(*flat_inputs)
    return out_p[:B, :O]


# ----------------------------------------------------------------------------
# Pure-JAX reference (lax.scan) for correctness check.
# ----------------------------------------------------------------------------
def gru_model_reference(x, params):
    xt = jnp.transpose(x, (1, 0, 2))  # (T, B, D)
    for (wih, whh, bih, bhh) in params["layers"]:
        H = whh.shape[0]

        def step(h, x_t):
            gi = x_t @ wih + bih
            gh = h @ whh + bhh
            r = jax.nn.sigmoid(gi[:, :H] + gh[:, :H])
            z = jax.nn.sigmoid(gi[:, H:2 * H] + gh[:, H:2 * H])
            n = jnp.tanh(gi[:, 2 * H:] + r * gh[:, 2 * H:])
            h_new = (1.0 - z) * n + z * h
            return h_new, h_new

        h0 = jnp.zeros((xt.shape[1], H), jnp.float32)
        _, hs = lax.scan(step, h0, xt)
        xt = hs
    return xt[-1] @ params["fc_w"] + params["fc_b"]


def init_params(key, input_size, hidden_size, output_size, num_layers):
    """Deterministic synthetic params, PyTorch-style uniform(-1/sqrt(H), 1/sqrt(H)).
    Weights stored pre-transposed for right-multiplication: (in, 3H), gates [r,z,n]."""
    params = {"layers": []}
    bound = 1.0 / jnp.sqrt(hidden_size)
    for layer in range(num_layers):
        d_in = input_size if layer == 0 else hidden_size
        key, k1, k2, k3, k4 = jax.random.split(key, 5)
        wih = jax.random.uniform(k1, (d_in, 3 * hidden_size), jnp.float32, -bound, bound)
        whh = jax.random.uniform(k2, (hidden_size, 3 * hidden_size), jnp.float32, -bound, bound)
        bih = jax.random.uniform(k3, (1, 3 * hidden_size), jnp.float32, -bound, bound)
        bhh = jax.random.uniform(k4, (1, 3 * hidden_size), jnp.float32, -bound, bound)
        params["layers"].append((wih, whh, bih, bhh))
    key, k1, k2 = jax.random.split(key, 3)
    fc_bound = 1.0 / jnp.sqrt(hidden_size)
    params["fc_w"] = jax.random.uniform(k1, (hidden_size, output_size), jnp.float32,
                                        -fc_bound, fc_bound)
    params["fc_b"] = jax.random.uniform(k2, (1, output_size), jnp.float32,
                                        -fc_bound, fc_bound)
    return params


if __name__ == "__main__":
    B, T = 2, 8
    input_size, hidden_size, output_size, num_layers = 16, 32, 4, 2

    key = jax.random.PRNGKey(0)
    key, xk = jax.random.split(key)
    x = jax.random.normal(xk, (B, T, input_size), jnp.float32)
    params = init_params(key, input_size, hidden_size, output_size, num_layers)

    fwd = jax.jit(gru_model_forward)
    out = jax.block_until_ready(fwd(x, params))

    ref = jax.block_until_ready(gru_model_reference(x, params))
    assert out.shape == (B, output_size)
    assert jnp.allclose(out, ref, atol=1e-5, rtol=1e-5), "mismatch vs JAX reference"

    print("KERNEL_OK")
</pallas_src>

<mosaic_0001>
module attributes {stable_mosaic.version = 11 : i64} {
  func.func @kernel(%arg0: i32, %arg1: memref<8x8x128xf32, #tpu.memory_space<vmem>>, %arg2: memref<128x384xf32, #tpu.memory_space<vmem>>, %arg3: memref<128x384xf32, #tpu.memory_space<vmem>>, %arg4: memref<1x384xf32, #tpu.memory_space<vmem>>, %arg5: memref<1x384xf32, #tpu.memory_space<vmem>>, %arg6: memref<128x384xf32, #tpu.memory_space<vmem>>, %arg7: memref<128x384xf32, #tpu.memory_space<vmem>>, %arg8: memref<1x384xf32, #tpu.memory_space<vmem>>, %arg9: memref<1x384xf32, #tpu.memory_space<vmem>>, %arg10: memref<128x128xf32, #tpu.memory_space<vmem>>, %arg11: memref<1x128xf32, #tpu.memory_space<vmem>>, %arg12: memref<8x128xf32, #tpu.memory_space<vmem>>, %arg13: memref<8x8x384xf32, #tpu.memory_space<vmem>>, %arg14: memref<8x8x128xf32, #tpu.memory_space<vmem>>, %arg15: memref<8x8x128xf32, #tpu.memory_space<vmem>>, %arg16: memref<8x128xf32, #tpu.memory_space<vmem>>, %arg17: memref<8x128xf32, #tpu.memory_space<vmem>>) attributes {dimension_semantics = [#tpu.dimension_semantics<arbitrary>], iteration_bounds = array<i64: 1>, scalar_prefetch = 0 : i64, scratch_operands = 5 : i64, tpu.core_type = #tpu.core_type<tc>, window_params = [{transform_indices = @transform_0, window_bounds = array<i64: 8, 8, 128>}, {pipeline_mode = #tpu.pipeline_mode<synchronous>, transform_indices = @transform_1, window_bounds = array<i64: 128, 384>}, {pipeline_mode = #tpu.pipeline_mode<synchronous>, transform_indices = @transform_2, window_bounds = array<i64: 128, 384>}, {pipeline_mode = #tpu.pipeline_mode<synchronous>, transform_indices = @transform_3, window_bounds = array<i64: 1, 384>}, {pipeline_mode = #tpu.pipeline_mode<synchronous>, transform_indices = @transform_4, window_bounds = array<i64: 1, 384>}, {pipeline_mode = #tpu.pipeline_mode<synchronous>, transform_indices = @transform_5, window_bounds = array<i64: 128, 384>}, {pipeline_mode = #tpu.pipeline_mode<synchronous>, transform_indices = @transform_6, window_bounds = array<i64: 128, 384>}, {pipeline_mode = #tpu.pipeline_mode<synchronous>, transform_indices = @transform_7, window_bounds = array<i64: 1, 384>}, {pipeline_mode = #tpu.pipeline_mode<synchronous>, transform_indices = @transform_8, window_bounds = array<i64: 1, 384>}, {pipeline_mode = #tpu.pipeline_mode<synchronous>, transform_indices = @transform_9, window_bounds = array<i64: 128, 128>}, {pipeline_mode = #tpu.pipeline_mode<synchronous>, transform_indices = @transform_10, window_bounds = array<i64: 1, 128>}, {pipeline_mode = #tpu.pipeline_mode<synchronous>, transform_indices = @transform_11, window_bounds = array<i64: 8, 128>}]} {
    %c0_i32 = arith.constant 0 : i32
    %0 = arith.cmpi eq, %arg0, %c0_i32 : i32
    %1 = arith.extui %0 : i1 to i32
    %c0_i32_0 = arith.constant 0 : i32
    %2 = arith.cmpi ne, %1, %c0_i32_0 : i32
    scf.if %2 {
      %cst_161 = arith.constant 0.000000e+00 : f32
      %576 = vector.broadcast %cst_161 : f32 to vector<8x128xf32>
      %c0_162 = arith.constant 0 : index
      %c0_163 = arith.constant 0 : index
      %577 = vector.load %arg16[%c0_162, %c0_163] : memref<8x128xf32, #tpu.memory_space<vmem>>, vector<8x128xf32>
      tpu.vector_store %arg16[%c0_162, %c0_163], %576 {strides = array<i32>} : memref<8x128xf32, #tpu.memory_space<vmem>>, vector<8x128xf32>,
      %cst_164 = arith.constant 0.000000e+00 : f32
      %578 = vector.broadcast %cst_164 : f32 to vector<8x128xf32>
      %c0_165 = arith.constant 0 : index
      %c0_166 = arith.constant 0 : index
      %579 = vector.load %arg17[%c0_165, %c0_166] : memref<8x128xf32, #tpu.memory_space<vmem>>, vector<8x128xf32>
      tpu.vector_store %arg17[%c0_165, %c0_166], %578 {strides = array<i32>} : memref<8x128xf32, #tpu.memory_space<vmem>>, vector<8x128xf32>,
    } else {
    }
    %c0 = arith.constant 0 : index
    %c0_1 = arith.constant 0 : index
    %c0_2 = arith.constant 0 : index
    %3 = vector.load %arg1[%c0, %c0_1, %c0_2] : memref<8x8x128xf32, #tpu.memory_space<vmem>>, vector<8x8x128xf32>
    %4 = vector.shape_cast %3 : vector<8x8x128xf32> to vector<64x128xf32>
    %c0_3 = arith.constant 0 : index
    %c0_4 = arith.constant 0 : index
    %5 = vector.load %arg2[%c0_3, %c0_4] : memref<128x384xf32, #tpu.memory_space<vmem>>, vector<128x384xf32>
    %cst = arith.constant dense<0.000000e+00> : vector<64x384xf32>
    %6 = tpu.matmul %4, %5, %cst {dimension_numbers = #tpu.dot_dimension_numbers<[1], [0], [0], [1], [0, 0, 1, 1], [], []>} : vector<64x128xf32>, vector<128x384xf32>, vector<64x384xf32> -> vector<64x384xf32>
    %c0_5 = arith.constant 0 : index
    %c0_6 = arith.constant 0 : index
    %7 = vector.load %arg4[%c0_5, %c0_6] : memref<1x384xf32, #tpu.memory_space<vmem>>, vector<1x384xf32>
    %8 = vector.broadcast %7 : vector<1x384xf32> to vector<64x384xf32>
    %9 = arith.addf %6, %8 : vector<64x384xf32>
    %10 = vector.shape_cast %9 : vector<64x384xf32> to vector<8x8x384xf32>
    %c0_7 = arith.constant 0 : index
    %c0_8 = arith.constant 0 : index
    %c0_9 = arith.constant 0 : index
    %11 = vector.load %arg13[%c0_7, %c0_8, %c0_9] : memref<8x8x384xf32, #tpu.memory_space<vmem>>, vector<8x8x384xf32>
    tpu.vector_store %arg13[%c0_7, %c0_8, %c0_9], %10 {strides = array<i32>} : memref<8x8x384xf32, #tpu.memory_space<vmem>>, vector<8x8x384xf32>,
    %c0_10 = arith.constant 0 : index
    %c0_11 = arith.constant 0 : index
    %12 = vector.load %arg3[%c0_10, %c0_11] : memref<128x384xf32, #tpu.memory_space<vmem>>, vector<128x384xf32>
    %c0_12 = arith.constant 0 : index
    %c0_13 = arith.constant 0 : index
    %13 = vector.load %arg5[%c0_12, %c0_13] : memref<1x384xf32, #tpu.memory_space<vmem>>, vector<1x384xf32>
    %c0_14 = arith.constant 0 : index
    %c0_15 = arith.constant 0 : index
    %14 = vector.load %arg16[%c0_14, %c0_15] : memref<8x128xf32, #tpu.memory_space<vmem>>, vector<8x128xf32>
    %c0_i32_16 = arith.constant 0 : i32
    %15 = arith.index_cast %c0_i32_16 : i32 to index
    %c0_17 = arith.constant 0 : index
    %c0_18 = arith.constant 0 : index
    %16 = vector.load %arg13[%15, %c0_17, %c0_18] : memref<8x8x384xf32, #tpu.memory_space<vmem>>, vector<1x8x384xf32>
    %17 = vector.shape_cast %16 : vector<1x8x384xf32> to vector<8x384xf32>
    %cst_19 = arith.constant dense<0.000000e+00> : vector<8x384xf32>
    %18 = tpu.matmul %14, %12, %cst_19 {dimension_numbers = #tpu.dot_dimension_numbers<[1], [0], [0], [1], [0, 0, 1, 1], [], []>} : vector<8x128xf32>, vector<128x384xf32>, vector<8x384xf32> -> vector<8x384xf32>
    %19 = vector.broadcast %13 : vector<1x384xf32> to vector<8x384xf32>
    %20 = arith.addf %18, %19 : vector<8x384xf32>
    %21 = vector.extract_strided_slice %17 {offsets = [0, 0], sizes = [8, 128], strides = [1, 1]} : vector<8x384xf32> to vector<8x128xf32>
    %22 = vector.extract_strided_slice %20 {offsets = [0, 0], sizes = [8, 128], strides = [1, 1]} : vector<8x384xf32> to vector<8x128xf32>
    %23 = arith.addf %21, %22 : vector<8x128xf32>
    %24 = arith.negf %23 : vector<8x128xf32>
    %25 = math.exp %24 : vector<8x128xf32>
    %cst_20 = arith.constant 1.000000e+00 : f32
    %26 = vector.broadcast %cst_20 : f32 to vector<8x128xf32>
    %27 = arith.addf %26, %25 : vector<8x128xf32>
    %28 = arith.divf %26, %27 : vector<8x128xf32>
    %29 = vector.extract_strided_slice %17 {offsets = [0, 128], sizes = [8, 128], strides = [1, 1]} : vector<8x384xf32> to vector<8x128xf32>
    %30 = vector.extract_strided_slice %20 {offsets = [0, 128], sizes = [8, 128], strides = [1, 1]} : vector<8x384xf32> to vector<8x128xf32>
    %31 = arith.addf %29, %30 : vector<8x128xf32>
    %32 = arith.negf %31 : vector<8x128xf32>
    %33 = math.exp %32 : vector<8x128xf32>
    %cst_21 = arith.constant 1.000000e+00 : f32
    %34 = vector.broadcast %cst_21 : f32 to vector<8x128xf32>
    %35 = arith.addf %34, %33 : vector<8x128xf32>
    %36 = arith.divf %34, %35 : vector<8x128xf32>
    %37 = vector.extract_strided_slice %17 {offsets = [0, 256], sizes = [8, 128], strides = [1, 1]} : vector<8x384xf32> to vector<8x128xf32>
    %38 = vector.extract_strided_slice %20 {offsets = [0, 256], sizes = [8, 128], strides = [1, 1]} : vector<8x384xf32> to vector<8x128xf32>
    %39 = arith.mulf %28, %38 : vector<8x128xf32>
    %40 = arith.addf %37, %39 : vector<8x128xf32>
    %41 = math.tanh %40 : vector<8x128xf32>
    %cst_22 = arith.constant 1.000000e+00 : f32
    %42 = vector.broadcast %cst_22 : f32 to vector<8x128xf32>
    %43 = arith.subf %42, %36 : vector<8x128xf32>
    %44 = arith.mulf %43, %41 : vector<8x128xf32>
    %45 = arith.mulf %36, %14 : vector<8x128xf32>
    %46 = arith.addf %44, %45 : vector<8x128xf32>
    %47 = arith.index_cast %c0_i32_16 : i32 to index
    %c0_23 = arith.constant 0 : index
    %c0_24 = arith.constant 0 : index
    %48 = vector.load %arg14[%47, %c0_23, %c0_24] : memref<8x8x128xf32, #tpu.memory_space<vmem>>, vector<1x8x128xf32>
    %49 = vector.shape_cast %48 : vector<1x8x128xf32> to vector<8x128xf32>
    %50 = vector.shape_cast %46 : vector<8x128xf32> to vector<1x8x128xf32>
    tpu.vector_store %arg14[%47, %c0_23, %c0_24], %50 {strides = array<i32>} : memref<8x8x128xf32, #tpu.memory_space<vmem>>, vector<1x8x128xf32>,
    %c1_i32 = arith.constant 1 : i32
    %51 = arith.index_cast %c1_i32 : i32 to index
    %c0_25 = arith.constant 0 : index
    %c0_26 = arith.constant 0 : index
    %52 = vector.load %arg13[%51, %c0_25, %c0_26] : memref<8x8x384xf32, #tpu.memory_space<vmem>>, vector<1x8x384xf32>
    %53 = vector.shape_cast %52 : vector<1x8x384xf32> to vector<8x384xf32>
    %cst_27 = arith.constant dense<0.000000e+00> : vector<8x384xf32>
    %54 = tpu.matmul %46, %12, %cst_27 {dimension_numbers = #tpu.dot_dimension_numbers<[1], [0], [0], [1], [0, 0, 1, 1], [], []>} : vector<8x128xf32>, vector<128x384xf32>, vector<8x384xf32> -> vector<8x384xf32>
    %55 = vector.broadcast %13 : vector<1x384xf32> to vector<8x384xf32>
    %56 = arith.addf %54, %55 : vector<8x384xf32>
    %57 = vector.extract_strided_slice %53 {offsets = [0, 0], sizes = [8, 128], strides = [1, 1]} : vector<8x384xf32> to vector<8x128xf32>
    %58 = vector.extract_strided_slice %56 {offsets = [0, 0], sizes = [8, 128], strides = [1, 1]} : vector<8x384xf32> to vector<8x128xf32>
    %59 = arith.addf %57, %58 : vector<8x128xf32>
    %60 = arith.negf %59 : vector<8x128xf32>
    %61 = math.exp %60 : vector<8x128xf32>
    %cst_28 = arith.constant 1.000000e+00 : f32
    %62 = vector.broadcast %cst_28 : f32 to vector<8x128xf32>
    %63 = arith.addf %62, %61 : vector<8x128xf32>
    %64 = arith.divf %62, %63 : vector<8x128xf32>
    %65 = vector.extract_strided_slice %53 {offsets = [0, 128], sizes = [8, 128], strides = [1, 1]} : vector<8x384xf32> to vector<8x128xf32>
    %66 = vector.extract_strided_slice %56 {offsets = [0, 128], sizes = [8, 128], strides = [1, 1]} : vector<8x384xf32> to vector<8x128xf32>
    %67 = arith.addf %65, %66 : vector<8x128xf32>
    %68 = arith.negf %67 : vector<8x128xf32>
    %69 = math.exp %68 : vector<8x128xf32>
    %cst_29 = arith.constant 1.000000e+00 : f32
    %70 = vector.broadcast %cst_29 : f32 to vector<8x128xf32>
    %71 = arith.addf %70, %69 : vector<8x128xf32>
    %72 = arith.divf %70, %71 : vector<8x128xf32>
    %73 = vector.extract_strided_slice %53 {offsets = [0, 256], sizes = [8, 128], strides = [1, 1]} : vector<8x384xf32> to vector<8x128xf32>
    %74 = vector.extract_strided_slice %56 {offsets = [0, 256], sizes = [8, 128], strides = [1, 1]} : vector<8x384xf32> to vector<8x128xf32>
    %75 = arith.mulf %64, %74 : vector<8x128xf32>
    %76 = arith.addf %73, %75 : vector<8x128xf32>
    %77 = math.tanh %76 : vector<8x128xf32>
    %cst_30 = arith.constant 1.000000e+00 : f32
    %78 = vector.broadcast %cst_30 : f32 to vector<8x128xf32>
    %79 = arith.subf %78, %72 : vector<8x128xf32>
    %80 = arith.mulf %79, %77 : vector<8x128xf32>
    %81 = arith.mulf %72, %46 : vector<8x128xf32>
    %82 = arith.addf %80, %81 : vector<8x128xf32>
    %83 = arith.index_cast %c1_i32 : i32 to index
    %c0_31 = arith.constant 0 : index
    %c0_32 = arith.constant 0 : index
    %84 = vector.load %arg14[%83, %c0_31, %c0_32] : memref<8x8x128xf32, #tpu.memory_space<vmem>>, vector<1x8x128xf32>
    %85 = vector.shape_cast %84 : vector<1x8x128xf32> to vector<8x128xf32>
    %86 = vector.shape_cast %82 : vector<8x128xf32> to vector<1x8x128xf32>
    tpu.vector_store %arg14[%83, %c0_31, %c0_32], %86 {strides = array<i32>} : memref<8x8x128xf32, #tpu.memory_space<vmem>>, vector<1x8x128xf32>,
    %c2_i32 = arith.constant 2 : i32
    %87 = arith.index_cast %c2_i32 : i32 to index
    %c0_33 = arith.constant 0 : index
    %c0_34 = arith.constant 0 : index
    %88 = vector.load %arg13[%87, %c0_33, %c0_34] : memref<8x8x384xf32, #tpu.memory_space<vmem>>, vector<1x8x384xf32>
    %89 = vector.shape_cast %88 : vector<1x8x384xf32> to vector<8x384xf32>
    %cst_35 = arith.constant dense<0.000000e+00> : vector<8x384xf32>
    %90 = tpu.matmul %82, %12, %cst_35 {dimension_numbers = #tpu.dot_dimension_numbers<[1], [0], [0], [1], [0, 0, 1, 1], [], []>} : vector<8x128xf32>, vector<128x384xf32>, vector<8x384xf32> -> vector<8x384xf32>
    %91 = vector.broadcast %13 : vector<1x384xf32> to vector<8x384xf32>
    %92 = arith.addf %90, %91 : vector<8x384xf32>
    %93 = vector.extract_strided_slice %89 {offsets = [0, 0], sizes = [8, 128], strides = [1, 1]} : vector<8x384xf32> to vector<8x128xf32>
    %94 = vector.extract_strided_slice %92 {offsets = [0, 0], sizes = [8, 128], strides = [1, 1]} : vector<8x384xf32> to vector<8x128xf32>
    %95 = arith.addf %93, %94 : vector<8x128xf32>
    %96 = arith.negf %95 : vector<8x128xf32>
    %97 = math.exp %96 : vector<8x128xf32>
    %cst_36 = arith.constant 1.000000e+00 : f32
    %98 = vector.broadcast %cst_36 : f32 to vector<8x128xf32>
    %99 = arith.addf %98, %97 : vector<8x128xf32>
    %100 = arith.divf %98, %99 : vector<8x128xf32>
    %101 = vector.extract_strided_slice %89 {offsets = [0, 128], sizes = [8, 128], strides = [1, 1]} : vector<8x384xf32> to vector<8x128xf32>
    %102 = vector.extract_strided_slice %92 {offsets = [0, 128], sizes = [8, 128], strides = [1, 1]} : vector<8x384xf32> to vector<8x128xf32>
    %103 = arith.addf %101, %102 : vector<8x128xf32>
    %104 = arith.negf %103 : vector<8x128xf32>
    %105 = math.exp %104 : vector<8x128xf32>
    %cst_37 = arith.constant 1.000000e+00 : f32
    %106 = vector.broadcast %cst_37 : f32 to vector<8x128xf32>
    %107 = arith.addf %106, %105 : vector<8x128xf32>
    %108 = arith.divf %106, %107 : vector<8x128xf32>
    %109 = vector.extract_strided_slice %89 {offsets = [0, 256], sizes = [8, 128], strides = [1, 1]} : vector<8x384xf32> to vector<8x128xf32>
    %110 = vector.extract_strided_slice %92 {offsets = [0, 256], sizes = [8, 128], strides = [1, 1]} : vector<8x384xf32> to vector<8x128xf32>
    %111 = arith.mulf %100, %110 : vector<8x128xf32>
    %112 = arith.addf %109, %111 : vector<8x128xf32>
    %113 = math.tanh %112 : vector<8x128xf32>
    %cst_38 = arith.constant 1.000000e+00 : f32
    %114 = vector.broadcast %cst_38 : f32 to vector<8x128xf32>
    %115 = arith.subf %114, %108 : vector<8x128xf32>
    %116 = arith.mulf %115, %113 : vector<8x128xf32>
    %117 = arith.mulf %108, %82 : vector<8x128xf32>
    %118 = arith.addf %116, %117 : vector<8x128xf32>
    %119 = arith.index_cast %c2_i32 : i32 to index
    %c0_39 = arith.constant 0 : index
    %c0_40 = arith.constant 0 : index
    %120 = vector.load %arg14[%119, %c0_39, %c0_40] : memref<8x8x128xf32, #tpu.memory_space<vmem>>, vector<1x8x128xf32>
    %121 = vector.shape_cast %120 : vector<1x8x128xf32> to vector<8x128xf32>
    %122 = vector.shape_cast %118 : vector<8x128xf32> to vector<1x8x128xf32>
    tpu.vector_store %arg14[%119, %c0_39, %c0_40], %122 {strides = array<i32>} : memref<8x8x128xf32, #tpu.memory_space<vmem>>, vector<1x8x128xf32>,
    %c3_i32 = arith.constant 3 : i32
    %123 = arith.index_cast %c3_i32 : i32 to index
    %c0_41 = arith.constant 0 : index
    %c0_42 = arith.constant 0 : index
    %124 = vector.load %arg13[%123, %c0_41, %c0_42] : memref<8x8x384xf32, #tpu.memory_space<vmem>>, vector<1x8x384xf32>
    %125 = vector.shape_cast %124 : vector<1x8x384xf32> to vector<8x384xf32>
    %cst_43 = arith.constant dense<0.000000e+00> : vector<8x384xf32>
    %126 = tpu.matmul %118, %12, %cst_43 {dimension_numbers = #tpu.dot_dimension_numbers<[1], [0], [0], [1], [0, 0, 1, 1], [], []>} : vector<8x128xf32>, vector<128x384xf32>, vector<8x384xf32> -> vector<8x384xf32>
    %127 = vector.broadcast %13 : vector<1x384xf32> to vector<8x384xf32>
    %128 = arith.addf %126, %127 : vector<8x384xf32>
    %129 = vector.extract_strided_slice %125 {offsets = [0, 0], sizes = [8, 128], strides = [1, 1]} : vector<8x384xf32> to vector<8x128xf32>
    %130 = vector.extract_strided_slice %128 {offsets = [0, 0], sizes = [8, 128], strides = [1, 1]} : vector<8x384xf32> to vector<8x128xf32>
    %131 = arith.addf %129, %130 : vector<8x128xf32>
    %132 = arith.negf %131 : vector<8x128xf32>
    %133 = math.exp %132 : vector<8x128xf32>
    %cst_44 = arith.constant 1.000000e+00 : f32
    %134 = vector.broadcast %cst_44 : f32 to vector<8x128xf32>
    %135 = arith.addf %134, %133 : vector<8x128xf32>
    %136 = arith.divf %134, %135 : vector<8x128xf32>
    %137 = vector.extract_strided_slice %125 {offsets = [0, 128], sizes = [8, 128], strides = [1, 1]} : vector<8x384xf32> to vector<8x128xf32>
    %138 = vector.extract_strided_slice %128 {offsets = [0, 128], sizes = [8, 128], strides = [1, 1]} : vector<8x384xf32> to vector<8x128xf32>
    %139 = arith.addf %137, %138 : vector<8x128xf32>
    %140 = arith.negf %139 : vector<8x128xf32>
    %141 = math.exp %140 : vector<8x128xf32>
    %cst_45 = arith.constant 1.000000e+00 : f32
    %142 = vector.broadcast %cst_45 : f32 to vector<8x128xf32>
    %143 = arith.addf %142, %141 : vector<8x128xf32>
    %144 = arith.divf %142, %143 : vector<8x128xf32>
    %145 = vector.extract_strided_slice %125 {offsets = [0, 256], sizes = [8, 128], strides = [1, 1]} : vector<8x384xf32> to vector<8x128xf32>
    %146 = vector.extract_strided_slice %128 {offsets = [0, 256], sizes = [8, 128], strides = [1, 1]} : vector<8x384xf32> to vector<8x128xf32>
    %147 = arith.mulf %136, %146 : vector<8x128xf32>
    %148 = arith.addf %145, %147 : vector<8x128xf32>
    %149 = math.tanh %148 : vector<8x128xf32>
    %cst_46 = arith.constant 1.000000e+00 : f32
    %150 = vector.broadcast %cst_46 : f32 to vector<8x128xf32>
    %151 = arith.subf %150, %144 : vector<8x128xf32>
    %152 = arith.mulf %151, %149 : vector<8x128xf32>
    %153 = arith.mulf %144, %118 : vector<8x128xf32>
    %154 = arith.addf %152, %153 : vector<8x128xf32>
    %155 = arith.index_cast %c3_i32 : i32 to index
    %c0_47 = arith.constant 0 : index
    %c0_48 = arith.constant 0 : index
    %156 = vector.load %arg14[%155, %c0_47, %c0_48] : memref<8x8x128xf32, #tpu.memory_space<vmem>>, vector<1x8x128xf32>
    %157 = vector.shape_cast %156 : vector<1x8x128xf32> to vector<8x128xf32>
    %158 = vector.shape_cast %154 : vector<8x128xf32> to vector<1x8x128xf32>
    tpu.vector_store %arg14[%155, %c0_47, %c0_48], %158 {strides = array<i32>} : memref<8x8x128xf32, #tpu.memory_space<vmem>>, vector<1x8x128xf32>,
    %c4_i32 = arith.constant 4 : i32
    %159 = arith.index_cast %c4_i32 : i32 to index
    %c0_49 = arith.constant 0 : index
    %c0_50 = arith.constant 0 : index
    %160 = vector.load %arg13[%159, %c0_49, %c0_50] : memref<8x8x384xf32, #tpu.memory_space<vmem>>, vector<1x8x384xf32>
    %161 = vector.shape_cast %160 : vector<1x8x384xf32> to vector<8x384xf32>
    %cst_51 = arith.constant dense<0.000000e+00> : vector<8x384xf32>
    %162 = tpu.matmul %154, %12, %cst_51 {dimension_numbers = #tpu.dot_dimension_numbers<[1], [0], [0], [1], [0, 0, 1, 1], [], []>} : vector<8x128xf32>, vector<128x384xf32>, vector<8x384xf32> -> vector<8x384xf32>
    %163 = vector.broadcast %13 : vector<1x384xf32> to vector<8x384xf32>
    %164 = arith.addf %162, %163 : vector<8x384xf32>
    %165 = vector.extract_strided_slice %161 {offsets = [0, 0], sizes = [8, 128], strides = [1, 1]} : vector<8x384xf32> to vector<8x128xf32>
    %166 = vector.extract_strided_slice %164 {offsets = [0, 0], sizes = [8, 128], strides = [1, 1]} : vector<8x384xf32> to vector<8x128xf32>
    %167 = arith.addf %165, %166 : vector<8x128xf32>
    %168 = arith.negf %167 : vector<8x128xf32>
    %169 = math.exp %168 : vector<8x128xf32>
    %cst_52 = arith.constant 1.000000e+00 : f32
    %170 = vector.broadcast %cst_52 : f32 to vector<8x128xf32>
    %171 = arith.addf %170, %169 : vector<8x128xf32>
    %172 = arith.divf %170, %171 : vector<8x128xf32>
    %173 = vector.extract_strided_slice %161 {offsets = [0, 128], sizes = [8, 128], strides = [1, 1]} : vector<8x384xf32> to vector<8x128xf32>
    %174 = vector.extract_strided_slice %164 {offsets = [0, 128], sizes = [8, 128], strides = [1, 1]} : vector<8x384xf32> to vector<8x128xf32>
    %175 = arith.addf %173, %174 : vector<8x128xf32>
    %176 = arith.negf %175 : vector<8x128xf32>
    %177 = math.exp %176 : vector<8x128xf32>
    %cst_53 = arith.constant 1.000000e+00 : f32
    %178 = vector.broadcast %cst_53 : f32 to vector<8x128xf32>
    %179 = arith.addf %178, %177 : vector<8x128xf32>
    %180 = arith.divf %178, %179 : vector<8x128xf32>
    %181 = vector.extract_strided_slice %161 {offsets = [0, 256], sizes = [8, 128], strides = [1, 1]} : vector<8x384xf32> to vector<8x128xf32>
    %182 = vector.extract_strided_slice %164 {offsets = [0, 256], sizes = [8, 128], strides = [1, 1]} : vector<8x384xf32> to vector<8x128xf32>
    %183 = arith.mulf %172, %182 : vector<8x128xf32>
    %184 = arith.addf %181, %183 : vector<8x128xf32>
    %185 = math.tanh %184 : vector<8x128xf32>
    %cst_54 = arith.constant 1.000000e+00 : f32
    %186 = vector.broadcast %cst_54 : f32 to vector<8x128xf32>
    %187 = arith.subf %186, %180 : vector<8x128xf32>
    %188 = arith.mulf %187, %185 : vector<8x128xf32>
    %189 = arith.mulf %180, %154 : vector<8x128xf32>
    %190 = arith.addf %188, %189 : vector<8x128xf32>
    %191 = arith.index_cast %c4_i32 : i32 to index
    %c0_55 = arith.constant 0 : index
    %c0_56 = arith.constant 0 : index
    %192 = vector.load %arg14[%191, %c0_55, %c0_56] : memref<8x8x128xf32, #tpu.memory_space<vmem>>, vector<1x8x128xf32>
    %193 = vector.shape_cast %192 : vector<1x8x128xf32> to vector<8x128xf32>
    %194 = vector.shape_cast %190 : vector<8x128xf32> to vector<1x8x128xf32>
    tpu.vector_store %arg14[%191, %c0_55, %c0_56], %194 {strides = array<i32>} : memref<8x8x128xf32, #tpu.memory_space<vmem>>, vector<1x8x128xf32>,
    %c5_i32 = arith.constant 5 : i32
    %195 = arith.index_cast %c5_i32 : i32 to index
    %c0_57 = arith.constant 0 : index
    %c0_58 = arith.constant 0 : index
    %196 = vector.load %arg13[%195, %c0_57, %c0_58] : memref<8x8x384xf32, #tpu.memory_space<vmem>>, vector<1x8x384xf32>
    %197 = vector.shape_cast %196 : vector<1x8x384xf32> to vector<8x384xf32>
    %cst_59 = arith.constant dense<0.000000e+00> : vector<8x384xf32>
    %198 = tpu.matmul %190, %12, %cst_59 {dimension_numbers = #tpu.dot_dimension_numbers<[1], [0], [0], [1], [0, 0, 1, 1], [], []>} : vector<8x128xf32>, vector<128x384xf32>, vector<8x384xf32> -> vector<8x384xf32>
    %199 = vector.broadcast %13 : vector<1x384xf32> to vector<8x384xf32>
    %200 = arith.addf %198, %199 : vector<8x384xf32>
    %201 = vector.extract_strided_slice %197 {offsets = [0, 0], sizes = [8, 128], strides = [1, 1]} : vector<8x384xf32> to vector<8x128xf32>
    %202 = vector.extract_strided_slice %200 {offsets = [0, 0], sizes = [8, 128], strides = [1, 1]} : vector<8x384xf32> to vector<8x128xf32>
    %203 = arith.addf %201, %202 : vector<8x128xf32>
    %204 = arith.negf %203 : vector<8x128xf32>
    %205 = math.exp %204 : vector<8x128xf32>
    %cst_60 = arith.constant 1.000000e+00 : f32
    %206 = vector.broadcast %cst_60 : f32 to vector<8x128xf32>
    %207 = arith.addf %206, %205 : vector<8x128xf32>
    %208 = arith.divf %206, %207 : vector<8x128xf32>
    %209 = vector.extract_strided_slice %197 {offsets = [0, 128], sizes = [8, 128], strides = [1, 1]} : vector<8x384xf32> to vector<8x128xf32>
    %210 = vector.extract_strided_slice %200 {offsets = [0, 128], sizes = [8, 128], strides = [1, 1]} : vector<8x384xf32> to vector<8x128xf32>
    %211 = arith.addf %209, %210 : vector<8x128xf32>
    %212 = arith.negf %211 : vector<8x128xf32>
    %213 = math.exp %212 : vector<8x128xf32>
    %cst_61 = arith.constant 1.000000e+00 : f32
    %214 = vector.broadcast %cst_61 : f32 to vector<8x128xf32>
    %215 = arith.addf %214, %213 : vector<8x128xf32>
    %216 = arith.divf %214, %215 : vector<8x128xf32>
    %217 = vector.extract_strided_slice %197 {offsets = [0, 256], sizes = [8, 128], strides = [1, 1]} : vector<8x384xf32> to vector<8x128xf32>
    %218 = vector.extract_strided_slice %200 {offsets = [0, 256], sizes = [8, 128], strides = [1, 1]} : vector<8x384xf32> to vector<8x128xf32>
    %219 = arith.mulf %208, %218 : vector<8x128xf32>
    %220 = arith.addf %217, %219 : vector<8x128xf32>
    %221 = math.tanh %220 : vector<8x128xf32>
    %cst_62 = arith.constant 1.000000e+00 : f32
    %222 = vector.broadcast %cst_62 : f32 to vector<8x128xf32>
    %223 = arith.subf %222, %216 : vector<8x128xf32>
    %224 = arith.mulf %223, %221 : vector<8x128xf32>
    %225 = arith.mulf %216, %190 : vector<8x128xf32>
    %226 = arith.addf %224, %225 : vector<8x128xf32>
    %227 = arith.index_cast %c5_i32 : i32 to index
    %c0_63 = arith.constant 0 : index
    %c0_64 = arith.constant 0 : index
    %228 = vector.load %arg14[%227, %c0_63, %c0_64] : memref<8x8x128xf32, #tpu.memory_space<vmem>>, vector<1x8x128xf32>
    %229 = vector.shape_cast %228 : vector<1x8x128xf32> to vector<8x128xf32>
    %230 = vector.shape_cast %226 : vector<8x128xf32> to vector<1x8x128xf32>
    tpu.vector_store %arg14[%227, %c0_63, %c0_64], %230 {strides = array<i32>} : memref<8x8x128xf32, #tpu.memory_space<vmem>>, vector<1x8x128xf32>,
    %c6_i32 = arith.constant 6 : i32
    %231 = arith.index_cast %c6_i32 : i32 to index
    %c0_65 = arith.constant 0 : index
    %c0_66 = arith.constant 0 : index
    %232 = vector.load %arg13[%231, %c0_65, %c0_66] : memref<8x8x384xf32, #tpu.memory_space<vmem>>, vector<1x8x384xf32>
    %233 = vector.shape_cast %232 : vector<1x8x384xf32> to vector<8x384xf32>
    %cst_67 = arith.constant dense<0.000000e+00> : vector<8x384xf32>
    %234 = tpu.matmul %226, %12, %cst_67 {dimension_numbers = #tpu.dot_dimension_numbers<[1], [0], [0], [1], [0, 0, 1, 1], [], []>} : vector<8x128xf32>, vector<128x384xf32>, vector<8x384xf32> -> vector<8x384xf32>
    %235 = vector.broadcast %13 : vector<1x384xf32> to vector<8x384xf32>
    %236 = arith.addf %234, %235 : vector<8x384xf32>
    %237 = vector.extract_strided_slice %233 {offsets = [0, 0], sizes = [8, 128], strides = [1, 1]} : vector<8x384xf32> to vector<8x128xf32>
    %238 = vector.extract_strided_slice %236 {offsets = [0, 0], sizes = [8, 128], strides = [1, 1]} : vector<8x384xf32> to vector<8x128xf32>
    %239 = arith.addf %237, %238 : vector<8x128xf32>
    %240 = arith.negf %239 : vector<8x128xf32>
    %241 = math.exp %240 : vector<8x128xf32>
    %cst_68 = arith.constant 1.000000e+00 : f32
    %242 = vector.broadcast %cst_68 : f32 to vector<8x128xf32>
    %243 = arith.addf %242, %241 : vector<8x128xf32>
    %244 = arith.divf %242, %243 : vector<8x128xf32>
    %245 = vector.extract_strided_slice %233 {offsets = [0, 128], sizes = [8, 128], strides = [1, 1]} : vector<8x384xf32> to vector<8x128xf32>
    %246 = vector.extract_strided_slice %236 {offsets = [0, 128], sizes = [8, 128], strides = [1, 1]} : vector<8x384xf32> to vector<8x128xf32>
    %247 = arith.addf %245, %246 : vector<8x128xf32>
    %248 = arith.negf %247 : vector<8x128xf32>
    %249 = math.exp %248 : vector<8x128xf32>
    %cst_69 = arith.constant 1.000000e+00 : f32
    %250 = vector.broadcast %cst_69 : f32 to vector<8x128xf32>
    %251 = arith.addf %250, %249 : vector<8x128xf32>
    %252 = arith.divf %250, %251 : vector<8x128xf32>
    %253 = vector.extract_strided_slice %233 {offsets = [0, 256], sizes = [8, 128], strides = [1, 1]} : vector<8x384xf32> to vector<8x128xf32>
    %254 = vector.extract_strided_slice %236 {offsets = [0, 256], sizes = [8, 128], strides = [1, 1]} : vector<8x384xf32> to vector<8x128xf32>
    %255 = arith.mulf %244, %254 : vector<8x128xf32>
    %256 = arith.addf %253, %255 : vector<8x128xf32>
    %257 = math.tanh %256 : vector<8x128xf32>
    %cst_70 = arith.constant 1.000000e+00 : f32
    %258 = vector.broadcast %cst_70 : f32 to vector<8x128xf32>
    %259 = arith.subf %258, %252 : vector<8x128xf32>
    %260 = arith.mulf %259, %257 : vector<8x128xf32>
    %261 = arith.mulf %252, %226 : vector<8x128xf32>
    %262 = arith.addf %260, %261 : vector<8x128xf32>
    %263 = arith.index_cast %c6_i32 : i32 to index
    %c0_71 = arith.constant 0 : index
    %c0_72 = arith.constant 0 : index
    %264 = vector.load %arg14[%263, %c0_71, %c0_72] : memref<8x8x128xf32, #tpu.memory_space<vmem>>, vector<1x8x128xf32>
    %265 = vector.shape_cast %264 : vector<1x8x128xf32> to vector<8x128xf32>
    %266 = vector.shape_cast %262 : vector<8x128xf32> to vector<1x8x128xf32>
    tpu.vector_store %arg14[%263, %c0_71, %c0_72], %266 {strides = array<i32>} : memref<8x8x128xf32, #tpu.memory_space<vmem>>, vector<1x8x128xf32>,
    %c7_i32 = arith.constant 7 : i32
    %267 = arith.index_cast %c7_i32 : i32 to index
    %c0_73 = arith.constant 0 : index
    %c0_74 = arith.constant 0 : index
    %268 = vector.load %arg13[%267, %c0_73, %c0_74] : memref<8x8x384xf32, #tpu.memory_space<vmem>>, vector<1x8x384xf32>
    %269 = vector.shape_cast %268 : vector<1x8x384xf32> to vector<8x384xf32>
    %cst_75 = arith.constant dense<0.000000e+00> : vector<8x384xf32>
    %270 = tpu.matmul %262, %12, %cst_75 {dimension_numbers = #tpu.dot_dimension_numbers<[1], [0], [0], [1], [0, 0, 1, 1], [], []>} : vector<8x128xf32>, vector<128x384xf32>, vector<8x384xf32> -> vector<8x384xf32>
    %271 = vector.broadcast %13 : vector<1x384xf32> to vector<8x384xf32>
    %272 = arith.addf %270, %271 : vector<8x384xf32>
    %273 = vector.extract_strided_slice %269 {offsets = [0, 0], sizes = [8, 128], strides = [1, 1]} : vector<8x384xf32> to vector<8x128xf32>
    %274 = vector.extract_strided_slice %272 {offsets = [0, 0], sizes = [8, 128], strides = [1, 1]} : vector<8x384xf32> to vector<8x128xf32>
    %275 = arith.addf %273, %274 : vector<8x128xf32>
    %276 = arith.negf %275 : vector<8x128xf32>
    %277 = math.exp %276 : vector<8x128xf32>
    %cst_76 = arith.constant 1.000000e+00 : f32
    %278 = vector.broadcast %cst_76 : f32 to vector<8x128xf32>
    %279 = arith.addf %278, %277 : vector<8x128xf32>
    %280 = arith.divf %278, %279 : vector<8x128xf32>
    %281 = vector.extract_strided_slice %269 {offsets = [0, 128], sizes = [8, 128], strides = [1, 1]} : vector<8x384xf32> to vector<8x128xf32>
    %282 = vector.extract_strided_slice %272 {offsets = [0, 128], sizes = [8, 128], strides = [1, 1]} : vector<8x384xf32> to vector<8x128xf32>
    %283 = arith.addf %281, %282 : vector<8x128xf32>
    %284 = arith.negf %283 : vector<8x128xf32>
    %285 = math.exp %284 : vector<8x128xf32>
    %cst_77 = arith.constant 1.000000e+00 : f32
    %286 = vector.broadcast %cst_77 : f32 to vector<8x128xf32>
    %287 = arith.addf %286, %285 : vector<8x128xf32>
    %288 = arith.divf %286, %287 : vector<8x128xf32>
    %289 = vector.extract_strided_slice %269 {offsets = [0, 256], sizes = [8, 128], strides = [1, 1]} : vector<8x384xf32> to vector<8x128xf32>
    %290 = vector.extract_strided_slice %272 {offsets = [0, 256], sizes = [8, 128], strides = [1, 1]} : vector<8x384xf32> to vector<8x128xf32>
    %291 = arith.mulf %280, %290 : vector<8x128xf32>
    %292 = arith.addf %289, %291 : vector<8x128xf32>
    %293 = math.tanh %292 : vector<8x128xf32>
    %cst_78 = arith.constant 1.000000e+00 : f32
    %294 = vector.broadcast %cst_78 : f32 to vector<8x128xf32>
    %295 = arith.subf %294, %288 : vector<8x128xf32>
    %296 = arith.mulf %295, %293 : vector<8x128xf32>
    %297 = arith.mulf %288, %262 : vector<8x128xf32>
    %298 = arith.addf %296, %297 : vector<8x128xf32>
    %299 = arith.index_cast %c7_i32 : i32 to index
    %c0_79 = arith.constant 0 : index
    %c0_80 = arith.constant 0 : index
    %300 = vector.load %arg14[%299, %c0_79, %c0_80] : memref<8x8x128xf32, #tpu.memory_space<vmem>>, vector<1x8x128xf32>
    %301 = vector.shape_cast %300 : vector<1x8x128xf32> to vector<8x128xf32>
    %302 = vector.shape_cast %298 : vector<8x128xf32> to vector<1x8x128xf32>
    tpu.vector_store %arg14[%299, %c0_79, %c0_80], %302 {strides = array<i32>} : memref<8x8x128xf32, #tpu.memory_space<vmem>>, vector<1x8x128xf32>,
    %c8_i32 = arith.constant 8 : i32
    %c0_81 = arith.constant 0 : index
    %c0_82 = arith.constant 0 : index
    %303 = vector.load %arg16[%c0_81, %c0_82] : memref<8x128xf32, #tpu.memory_space<vmem>>, vector<8x128xf32>
    tpu.vector_store %arg16[%c0_81, %c0_82], %298 {strides = array<i32>} : memref<8x128xf32, #tpu.memory_space<vmem>>, vector<8x128xf32>,
    %c0_83 = arith.constant 0 : index
    %c0_84 = arith.constant 0 : index
    %c0_85 = arith.constant 0 : index
    %304 = vector.load %arg14[%c0_83, %c0_84, %c0_85] : memref<8x8x128xf32, #tpu.memory_space<vmem>>, vector<8x8x128xf32>
    %305 = vector.shape_cast %304 : vector<8x8x128xf32> to vector<64x128xf32>
    %c0_86 = arith.constant 0 : index
    %c0_87 = arith.constant 0 : index
    %306 = vector.load %arg6[%c0_86, %c0_87] : memref<128x384xf32, #tpu.memory_space<vmem>>, vector<128x384xf32>
    %cst_88 = arith.constant dense<0.000000e+00> : vector<64x384xf32>
    %307 = tpu.matmul %305, %306, %cst_88 {dimension_numbers = #tpu.dot_dimension_numbers<[1], [0], [0], [1], [0, 0, 1, 1], [], []>} : vector<64x128xf32>, vector<128x384xf32>, vector<64x384xf32> -> vector<64x384xf32>
    %c0_89 = arith.constant 0 : index
    %c0_90 = arith.constant 0 : index
    %308 = vector.load %arg8[%c0_89, %c0_90] : memref<1x384xf32, #tpu.memory_space<vmem>>, vector<1x384xf32>
    %309 = vector.broadcast %308 : vector<1x384xf32> to vector<64x384xf32>
    %310 = arith.addf %307, %309 : vector<64x384xf32>
    %311 = vector.shape_cast %310 : vector<64x384xf32> to vector<8x8x384xf32>
    %c0_91 = arith.constant 0 : index
    %c0_92 = arith.constant 0 : index
    %c0_93 = arith.constant 0 : index
    %312 = vector.load %arg13[%c0_91, %c0_92, %c0_93] : memref<8x8x384xf32, #tpu.memory_space<vmem>>, vector<8x8x384xf32>
    tpu.vector_store %arg13[%c0_91, %c0_92, %c0_93], %311 {strides = array<i32>} : memref<8x8x384xf32, #tpu.memory_space<vmem>>, vector<8x8x384xf32>,
    %c0_94 = arith.constant 0 : index
    %c0_95 = arith.constant 0 : index
    %313 = vector.load %arg7[%c0_94, %c0_95] : memref<128x384xf32, #tpu.memory_space<vmem>>, vector<128x384xf32>
    %c0_96 = arith.constant 0 : index
    %c0_97 = arith.constant 0 : index
    %314 = vector.load %arg9[%c0_96, %c0_97] : memref<1x384xf32, #tpu.memory_space<vmem>>, vector<1x384xf32>
    %c0_98 = arith.constant 0 : index
    %c0_99 = arith.constant 0 : index
    %315 = vector.load %arg17[%c0_98, %c0_99] : memref<8x128xf32, #tpu.memory_space<vmem>>, vector<8x128xf32>
    %c0_i32_100 = arith.constant 0 : i32
    %316 = arith.index_cast %c0_i32_100 : i32 to index
    %c0_101 = arith.constant 0 : index
    %c0_102 = arith.constant 0 : index
    %317 = vector.load %arg13[%316, %c0_101, %c0_102] : memref<8x8x384xf32, #tpu.memory_space<vmem>>, vector<1x8x384xf32>
    %318 = vector.shape_cast %317 : vector<1x8x384xf32> to vector<8x384xf32>
    %cst_103 = arith.constant dense<0.000000e+00> : vector<8x384xf32>
    %319 = tpu.matmul %315, %313, %cst_103 {dimension_numbers = #tpu.dot_dimension_numbers<[1], [0], [0], [1], [0, 0, 1, 1], [], []>} : vector<8x128xf32>, vector<128x384xf32>, vector<8x384xf32> -> vector<8x384xf32>
    %320 = vector.broadcast %314 : vector<1x384xf32> to vector<8x384xf32>
    %321 = arith.addf %319, %320 : vector<8x384xf32>
    %322 = vector.extract_strided_slice %318 {offsets = [0, 0], sizes = [8, 128], strides = [1, 1]} : vector<8x384xf32> to vector<8x128xf32>
    %323 = vector.extract_strided_slice %321 {offsets = [0, 0], sizes = [8, 128], strides = [1, 1]} : vector<8x384xf32> to vector<8x128xf32>
    %324 = arith.addf %322, %323 : vector<8x128xf32>
    %325 = arith.negf %324 : vector<8x128xf32>
    %326 = math.exp %325 : vector<8x128xf32>
    %cst_104 = arith.constant 1.000000e+00 : f32
    %327 = vector.broadcast %cst_104 : f32 to vector<8x128xf32>
    %328 = arith.addf %327, %326 : vector<8x128xf32>
    %329 = arith.divf %327, %328 : vector<8x128xf32>
    %330 = vector.extract_strided_slice %318 {offsets = [0, 128], sizes = [8, 128], strides = [1, 1]} : vector<8x384xf32> to vector<8x128xf32>
    %331 = vector.extract_strided_slice %321 {offsets = [0, 128], sizes = [8, 128], strides = [1, 1]} : vector<8x384xf32> to vector<8x128xf32>
    %332 = arith.addf %330, %331 : vector<8x128xf32>
    %333 = arith.negf %332 : vector<8x128xf32>
    %334 = math.exp %333 : vector<8x128xf32>
    %cst_105 = arith.constant 1.000000e+00 : f32
    %335 = vector.broadcast %cst_105 : f32 to vector<8x128xf32>
    %336 = arith.addf %335, %334 : vector<8x128xf32>
    %337 = arith.divf %335, %336 : vector<8x128xf32>
    %338 = vector.extract_strided_slice %318 {offsets = [0, 256], sizes = [8, 128], strides = [1, 1]} : vector<8x384xf32> to vector<8x128xf32>
    %339 = vector.extract_strided_slice %321 {offsets = [0, 256], sizes = [8, 128], strides = [1, 1]} : vector<8x384xf32> to vector<8x128xf32>
    %340 = arith.mulf %329, %339 : vector<8x128xf32>
    %341 = arith.addf %338, %340 : vector<8x128xf32>
    %342 = math.tanh %341 : vector<8x128xf32>
    %cst_106 = arith.constant 1.000000e+00 : f32
    %343 = vector.broadcast %cst_106 : f32 to vector<8x128xf32>
    %344 = arith.subf %343, %337 : vector<8x128xf32>
    %345 = arith.mulf %344, %342 : vector<8x128xf32>
    %346 = arith.mulf %337, %315 : vector<8x128xf32>
    %347 = arith.addf %345, %346 : vector<8x128xf32>
    %c1_i32_107 = arith.constant 1 : i32
    %348 = arith.index_cast %c1_i32_107 : i32 to index
    %c0_108 = arith.constant 0 : index
    %c0_109 = arith.constant 0 : index
    %349 = vector.load %arg13[%348, %c0_108, %c0_109] : memref<8x8x384xf32, #tpu.memory_space<vmem>>, vector<1x8x384xf32>
    %350 = vector.shape_cast %349 : vector<1x8x384xf32> to vector<8x384xf32>
    %cst_110 = arith.constant dense<0.000000e+00> : vector<8x384xf32>
    %351 = tpu.matmul %347, %313, %cst_110 {dimension_numbers = #tpu.dot_dimension_numbers<[1], [0], [0], [1], [0, 0, 1, 1], [], []>} : vector<8x128xf32>, vector<128x384xf32>, vector<8x384xf32> -> vector<8x384xf32>
    %352 = vector.broadcast %314 : vector<1x384xf32> to vector<8x384xf32>
    %353 = arith.addf %351, %352 : vector<8x384xf32>
    %354 = vector.extract_strided_slice %350 {offsets = [0, 0], sizes = [8, 128], strides = [1, 1]} : vector<8x384xf32> to vector<8x128xf32>
    %355 = vector.extract_strided_slice %353 {offsets = [0, 0], sizes = [8, 128], strides = [1, 1]} : vector<8x384xf32> to vector<8x128xf32>
    %356 = arith.addf %354, %355 : vector<8x128xf32>
    %357 = arith.negf %356 : vector<8x128xf32>
    %358 = math.exp %357 : vector<8x128xf32>
    %cst_111 = arith.constant 1.000000e+00 : f32
    %359 = vector.broadcast %cst_111 : f32 to vector<8x128xf32>
    %360 = arith.addf %359, %358 : vector<8x128xf32>
    %361 = arith.divf %359, %360 : vector<8x128xf32>
    %362 = vector.extract_strided_slice %350 {offsets = [0, 128], sizes = [8, 128], strides = [1, 1]} : vector<8x384xf32> to vector<8x128xf32>
    %363 = vector.extract_strided_slice %353 {offsets = [0, 128], sizes = [8, 128], strides = [1, 1]} : vector<8x384xf32> to vector<8x128xf32>
    %364 = arith.addf %362, %363 : vector<8x128xf32>
    %365 = arith.negf %364 : vector<8x128xf32>
    %366 = math.exp %365 : vector<8x128xf32>
    %cst_112 = arith.constant 1.000000e+00 : f32
    %367 = vector.broadcast %cst_112 : f32 to vector<8x128xf32>
    %368 = arith.addf %367, %366 : vector<8x128xf32>
    %369 = arith.divf %367, %368 : vector<8x128xf32>
    %370 = vector.extract_strided_slice %350 {offsets = [0, 256], sizes = [8, 128], strides = [1, 1]} : vector<8x384xf32> to vector<8x128xf32>
    %371 = vector.extract_strided_slice %353 {offsets = [0, 256], sizes = [8, 128], strides = [1, 1]} : vector<8x384xf32> to vector<8x128xf32>
    %372 = arith.mulf %361, %371 : vector<8x128xf32>
    %373 = arith.addf %370, %372 : vector<8x128xf32>
    %374 = math.tanh %373 : vector<8x128xf32>
    %cst_113 = arith.constant 1.000000e+00 : f32
    %375 = vector.broadcast %cst_113 : f32 to vector<8x128xf32>
    %376 = arith.subf %375, %369 : vector<8x128xf32>
    %377 = arith.mulf %376, %374 : vector<8x128xf32>
    %378 = arith.mulf %369, %347 : vector<8x128xf32>
    %379 = arith.addf %377, %378 : vector<8x128xf32>
    %c2_i32_114 = arith.constant 2 : i32
    %380 = arith.index_cast %c2_i32_114 : i32 to index
    %c0_115 = arith.constant 0 : index
    %c0_116 = arith.constant 0 : index
    %381 = vector.load %arg13[%380, %c0_115, %c0_116] : memref<8x8x384xf32, #tpu.memory_space<vmem>>, vector<1x8x384xf32>
    %382 = vector.shape_cast %381 : vector<1x8x384xf32> to vector<8x384xf32>
    %cst_117 = arith.constant dense<0.000000e+00> : vector<8x384xf32>
    %383 = tpu.matmul %379, %313, %cst_117 {dimension_numbers = #tpu.dot_dimension_numbers<[1], [0], [0], [1], [0, 0, 1, 1], [], []>} : vector<8x128xf32>, vector<128x384xf32>, vector<8x384xf32> -> vector<8x384xf32>
    %384 = vector.broadcast %314 : vector<1x384xf32> to vector<8x384xf32>
    %385 = arith.addf %383, %384 : vector<8x384xf32>
    %386 = vector.extract_strided_slice %382 {offsets = [0, 0], sizes = [8, 128], strides = [1, 1]} : vector<8x384xf32> to vector<8x128xf32>
    %387 = vector.extract_strided_slice %385 {offsets = [0, 0], sizes = [8, 128], strides = [1, 1]} : vector<8x384xf32> to vector<8x128xf32>
    %388 = arith.addf %386, %387 : vector<8x128xf32>
    %389 = arith.negf %388 : vector<8x128xf32>
    %390 = math.exp %389 : vector<8x128xf32>
    %cst_118 = arith.constant 1.000000e+00 : f32
    %391 = vector.broadcast %cst_118 : f32 to vector<8x128xf32>
    %392 = arith.addf %391, %390 : vector<8x128xf32>
    %393 = arith.divf %391, %392 : vector<8x128xf32>
    %394 = vector.extract_strided_slice %382 {offsets = [0, 128], sizes = [8, 128], strides = [1, 1]} : vector<8x384xf32> to vector<8x128xf32>
    %395 = vector.extract_strided_slice %385 {offsets = [0, 128], sizes = [8, 128], strides = [1, 1]} : vector<8x384xf32> to vector<8x128xf32>
    %396 = arith.addf %394, %395 : vector<8x128xf32>
    %397 = arith.negf %396 : vector<8x128xf32>
    %398 = math.exp %397 : vector<8x128xf32>
    %cst_119 = arith.constant 1.000000e+00 : f32
    %399 = vector.broadcast %cst_119 : f32 to vector<8x128xf32>
    %400 = arith.addf %399, %398 : vector<8x128xf32>
    %401 = arith.divf %399, %400 : vector<8x128xf32>
    %402 = vector.extract_strided_slice %382 {offsets = [0, 256], sizes = [8, 128], strides = [1, 1]} : vector<8x384xf32> to vector<8x128xf32>
    %403 = vector.extract_strided_slice %385 {offsets = [0, 256], sizes = [8, 128], strides = [1, 1]} : vector<8x384xf32> to vector<8x128xf32>
    %404 = arith.mulf %393, %403 : vector<8x128xf32>
    %405 = arith.addf %402, %404 : vector<8x128xf32>
    %406 = math.tanh %405 : vector<8x128xf32>
    %cst_120 = arith.constant 1.000000e+00 : f32
    %407 = vector.broadcast %cst_120 : f32 to vector<8x128xf32>
    %408 = arith.subf %407, %401 : vector<8x128xf32>
    %409 = arith.mulf %408, %406 : vector<8x128xf32>
    %410 = arith.mulf %401, %379 : vector<8x128xf32>
    %411 = arith.addf %409, %410 : vector<8x128xf32>
    %c3_i32_121 = arith.constant 3 : i32
    %412 = arith.index_cast %c3_i32_121 : i32 to index
    %c0_122 = arith.constant 0 : index
    %c0_123 = arith.constant 0 : index
    %413 = vector.load %arg13[%412, %c0_122, %c0_123] : memref<8x8x384xf32, #tpu.memory_space<vmem>>, vector<1x8x384xf32>
    %414 = vector.shape_cast %413 : vector<1x8x384xf32> to vector<8x384xf32>
    %cst_124 = arith.constant dense<0.000000e+00> : vector<8x384xf32>
    %415 = tpu.matmul %411, %313, %cst_124 {dimension_numbers = #tpu.dot_dimension_numbers<[1], [0], [0], [1], [0, 0, 1, 1], [], []>} : vector<8x128xf32>, vector<128x384xf32>, vector<8x384xf32> -> vector<8x384xf32>
    %416 = vector.broadcast %314 : vector<1x384xf32> to vector<8x384xf32>
    %417 = arith.addf %415, %416 : vector<8x384xf32>
    %418 = vector.extract_strided_slice %414 {offsets = [0, 0], sizes = [8, 128], strides = [1, 1]} : vector<8x384xf32> to vector<8x128xf32>
    %419 = vector.extract_strided_slice %417 {offsets = [0, 0], sizes = [8, 128], strides = [1, 1]} : vector<8x384xf32> to vector<8x128xf32>
    %420 = arith.addf %418, %419 : vector<8x128xf32>
    %421 = arith.negf %420 : vector<8x128xf32>
    %422 = math.exp %421 : vector<8x128xf32>
    %cst_125 = arith.constant 1.000000e+00 : f32
    %423 = vector.broadcast %cst_125 : f32 to vector<8x128xf32>
    %424 = arith.addf %423, %422 : vector<8x128xf32>
    %425 = arith.divf %423, %424 : vector<8x128xf32>
    %426 = vector.extract_strided_slice %414 {offsets = [0, 128], sizes = [8, 128], strides = [1, 1]} : vector<8x384xf32> to vector<8x128xf32>
    %427 = vector.extract_strided_slice %417 {offsets = [0, 128], sizes = [8, 128], strides = [1, 1]} : vector<8x384xf32> to vector<8x128xf32>
    %428 = arith.addf %426, %427 : vector<8x128xf32>
    %429 = arith.negf %428 : vector<8x128xf32>
    %430 = math.exp %429 : vector<8x128xf32>
    %cst_126 = arith.constant 1.000000e+00 : f32
    %431 = vector.broadcast %cst_126 : f32 to vector<8x128xf32>
    %432 = arith.addf %431, %430 : vector<8x128xf32>
    %433 = arith.divf %431, %432 : vector<8x128xf32>
    %434 = vector.extract_strided_slice %414 {offsets = [0, 256], sizes = [8, 128], strides = [1, 1]} : vector<8x384xf32> to vector<8x128xf32>
    %435 = vector.extract_strided_slice %417 {offsets = [0, 256], sizes = [8, 128], strides = [1, 1]} : vector<8x384xf32> to vector<8x128xf32>
    %436 = arith.mulf %425, %435 : vector<8x128xf32>
    %437 = arith.addf %434, %436 : vector<8x128xf32>
    %438 = math.tanh %437 : vector<8x128xf32>
    %cst_127 = arith.constant 1.000000e+00 : f32
    %439 = vector.broadcast %cst_127 : f32 to vector<8x128xf32>
    %440 = arith.subf %439, %433 : vector<8x128xf32>
    %441 = arith.mulf %440, %438 : vector<8x128xf32>
    %442 = arith.mulf %433, %411 : vector<8x128xf32>
    %443 = arith.addf %441, %442 : vector<8x128xf32>
    %c4_i32_128 = arith.constant 4 : i32
    %444 = arith.index_cast %c4_i32_128 : i32 to index
    %c0_129 = arith.constant 0 : index
    %c0_130 = arith.constant 0 : index
    %445 = vector.load %arg13[%444, %c0_129, %c0_130] : memref<8x8x384xf32, #tpu.memory_space<vmem>>, vector<1x8x384xf32>
    %446 = vector.shape_cast %445 : vector<1x8x384xf32> to vector<8x384xf32>
    %cst_131 = arith.constant dense<0.000000e+00> : vector<8x384xf32>
    %447 = tpu.matmul %443, %313, %cst_131 {dimension_numbers = #tpu.dot_dimension_numbers<[1], [0], [0], [1], [0, 0, 1, 1], [], []>} : vector<8x128xf32>, vector<128x384xf32>, vector<8x384xf32> -> vector<8x384xf32>
    %448 = vector.broadcast %314 : vector<1x384xf32> to vector<8x384xf32>
    %449 = arith.addf %447, %448 : vector<8x384xf32>
    %450 = vector.extract_strided_slice %446 {offsets = [0, 0], sizes = [8, 128], strides = [1, 1]} : vector<8x384xf32> to vector<8x128xf32>
    %451 = vector.extract_strided_slice %449 {offsets = [0, 0], sizes = [8, 128], strides = [1, 1]} : vector<8x384xf32> to vector<8x128xf32>
    %452 = arith.addf %450, %451 : vector<8x128xf32>
    %453 = arith.negf %452 : vector<8x128xf32>
    %454 = math.exp %453 : vector<8x128xf32>
    %cst_132 = arith.constant 1.000000e+00 : f32
    %455 = vector.broadcast %cst_132 : f32 to vector<8x128xf32>
    %456 = arith.addf %455, %454 : vector<8x128xf32>
    %457 = arith.divf %455, %456 : vector<8x128xf32>
    %458 = vector.extract_strided_slice %446 {offsets = [0, 128], sizes = [8, 128], strides = [1, 1]} : vector<8x384xf32> to vector<8x128xf32>
    %459 = vector.extract_strided_slice %449 {offsets = [0, 128], sizes = [8, 128], strides = [1, 1]} : vector<8x384xf32> to vector<8x128xf32>
    %460 = arith.addf %458, %459 : vector<8x128xf32>
    %461 = arith.negf %460 : vector<8x128xf32>
    %462 = math.exp %461 : vector<8x128xf32>
    %cst_133 = arith.constant 1.000000e+00 : f32
    %463 = vector.broadcast %cst_133 : f32 to vector<8x128xf32>
    %464 = arith.addf %463, %462 : vector<8x128xf32>
    %465 = arith.divf %463, %464 : vector<8x128xf32>
    %466 = vector.extract_strided_slice %446 {offsets = [0, 256], sizes = [8, 128], strides = [1, 1]} : vector<8x384xf32> to vector<8x128xf32>
    %467 = vector.extract_strided_slice %449 {offsets = [0, 256], sizes = [8, 128], strides = [1, 1]} : vector<8x384xf32> to vector<8x128xf32>
    %468 = arith.mulf %457, %467 : vector<8x128xf32>
    %469 = arith.addf %466, %468 : vector<8x128xf32>
    %470 = math.tanh %469 : vector<8x128xf32>
    %cst_134 = arith.constant 1.000000e+00 : f32
    %471 = vector.broadcast %cst_134 : f32 to vector<8x128xf32>
    %472 = arith.subf %471, %465 : vector<8x128xf32>
    %473 = arith.mulf %472, %470 : vector<8x128xf32>
    %474 = arith.mulf %465, %443 : vector<8x128xf32>
    %475 = arith.addf %473, %474 : vector<8x128xf32>
    %c5_i32_135 = arith.constant 5 : i32
    %476 = arith.index_cast %c5_i32_135 : i32 to index
    %c0_136 = arith.constant 0 : index
    %c0_137 = arith.constant 0 : index
    %477 = vector.load %arg13[%476, %c0_136, %c0_137] : memref<8x8x384xf32, #tpu.memory_space<vmem>>, vector<1x8x384xf32>
    %478 = vector.shape_cast %477 : vector<1x8x384xf32> to vector<8x384xf32>
    %cst_138 = arith.constant dense<0.000000e+00> : vector<8x384xf32>
    %479 = tpu.matmul %475, %313, %cst_138 {dimension_numbers = #tpu.dot_dimension_numbers<[1], [0], [0], [1], [0, 0, 1, 1], [], []>} : vector<8x128xf32>, vector<128x384xf32>, vector<8x384xf32> -> vector<8x384xf32>
    %480 = vector.broadcast %314 : vector<1x384xf32> to vector<8x384xf32>
    %481 = arith.addf %479, %480 : vector<8x384xf32>
    %482 = vector.extract_strided_slice %478 {offsets = [0, 0], sizes = [8, 128], strides = [1, 1]} : vector<8x384xf32> to vector<8x128xf32>
    %483 = vector.extract_strided_slice %481 {offsets = [0, 0], sizes = [8, 128], strides = [1, 1]} : vector<8x384xf32> to vector<8x128xf32>
    %484 = arith.addf %482, %483 : vector<8x128xf32>
    %485 = arith.negf %484 : vector<8x128xf32>
    %486 = math.exp %485 : vector<8x128xf32>
    %cst_139 = arith.constant 1.000000e+00 : f32
    %487 = vector.broadcast %cst_139 : f32 to vector<8x128xf32>
    %488 = arith.addf %487, %486 : vector<8x128xf32>
    %489 = arith.divf %487, %488 : vector<8x128xf32>
    %490 = vector.extract_strided_slice %478 {offsets = [0, 128], sizes = [8, 128], strides = [1, 1]} : vector<8x384xf32> to vector<8x128xf32>
    %491 = vector.extract_strided_slice %481 {offsets = [0, 128], sizes = [8, 128], strides = [1, 1]} : vector<8x384xf32> to vector<8x128xf32>
    %492 = arith.addf %490, %491 : vector<8x128xf32>
    %493 = arith.negf %492 : vector<8x128xf32>
    %494 = math.exp %493 : vector<8x128xf32>
    %cst_140 = arith.constant 1.000000e+00 : f32
    %495 = vector.broadcast %cst_140 : f32 to vector<8x128xf32>
    %496 = arith.addf %495, %494 : vector<8x128xf32>
    %497 = arith.divf %495, %496 : vector<8x128xf32>
    %498 = vector.extract_strided_slice %478 {offsets = [0, 256], sizes = [8, 128], strides = [1, 1]} : vector<8x384xf32> to vector<8x128xf32>
    %499 = vector.extract_strided_slice %481 {offsets = [0, 256], sizes = [8, 128], strides = [1, 1]} : vector<8x384xf32> to vector<8x128xf32>
    %500 = arith.mulf %489, %499 : vector<8x128xf32>
    %501 = arith.addf %498, %500 : vector<8x128xf32>
    %502 = math.tanh %501 : vector<8x128xf32>
    %cst_141 = arith.constant 1.000000e+00 : f32
    %503 = vector.broadcast %cst_141 : f32 to vector<8x128xf32>
    %504 = arith.subf %503, %497 : vector<8x128xf32>
    %505 = arith.mulf %504, %502 : vector<8x128xf32>
    %506 = arith.mulf %497, %475 : vector<8x128xf32>
    %507 = arith.addf %505, %506 : vector<8x128xf32>
    %c6_i32_142 = arith.constant 6 : i32
    %508 = arith.index_cast %c6_i32_142 : i32 to index
    %c0_143 = arith.constant 0 : index
    %c0_144 = arith.constant 0 : index
    %509 = vector.load %arg13[%508, %c0_143, %c0_144] : memref<8x8x384xf32, #tpu.memory_space<vmem>>, vector<1x8x384xf32>
    %510 = vector.shape_cast %509 : vector<1x8x384xf32> to vector<8x384xf32>
    %cst_145 = arith.constant dense<0.000000e+00> : vector<8x384xf32>
    %511 = tpu.matmul %507, %313, %cst_145 {dimension_numbers = #tpu.dot_dimension_numbers<[1], [0], [0], [1], [0, 0, 1, 1], [], []>} : vector<8x128xf32>, vector<128x384xf32>, vector<8x384xf32> -> vector<8x384xf32>
    %512 = vector.broadcast %314 : vector<1x384xf32> to vector<8x384xf32>
    %513 = arith.addf %511, %512 : vector<8x384xf32>
    %514 = vector.extract_strided_slice %510 {offsets = [0, 0], sizes = [8, 128], strides = [1, 1]} : vector<8x384xf32> to vector<8x128xf32>
    %515 = vector.extract_strided_slice %513 {offsets = [0, 0], sizes = [8, 128], strides = [1, 1]} : vector<8x384xf32> to vector<8x128xf32>
    %516 = arith.addf %514, %515 : vector<8x128xf32>
    %517 = arith.negf %516 : vector<8x128xf32>
    %518 = math.exp %517 : vector<8x128xf32>
    %cst_146 = arith.constant 1.000000e+00 : f32
    %519 = vector.broadcast %cst_146 : f32 to vector<8x128xf32>
    %520 = arith.addf %519, %518 : vector<8x128xf32>
    %521 = arith.divf %519, %520 : vector<8x128xf32>
    %522 = vector.extract_strided_slice %510 {offsets = [0, 128], sizes = [8, 128], strides = [1, 1]} : vector<8x384xf32> to vector<8x128xf32>
    %523 = vector.extract_strided_slice %513 {offsets = [0, 128], sizes = [8, 128], strides = [1, 1]} : vector<8x384xf32> to vector<8x128xf32>
    %524 = arith.addf %522, %523 : vector<8x128xf32>
    %525 = arith.negf %524 : vector<8x128xf32>
    %526 = math.exp %525 : vector<8x128xf32>
    %cst_147 = arith.constant 1.000000e+00 : f32
    %527 = vector.broadcast %cst_147 : f32 to vector<8x128xf32>
    %528 = arith.addf %527, %526 : vector<8x128xf32>
    %529 = arith.divf %527, %528 : vector<8x128xf32>
    %530 = vector.extract_strided_slice %510 {offsets = [0, 256], sizes = [8, 128], strides = [1, 1]} : vector<8x384xf32> to vector<8x128xf32>
    %531 = vector.extract_strided_slice %513 {offsets = [0, 256], sizes = [8, 128], strides = [1, 1]} : vector<8x384xf32> to vector<8x128xf32>
    %532 = arith.mulf %521, %531 : vector<8x128xf32>
    %533 = arith.addf %530, %532 : vector<8x128xf32>
    %534 = math.tanh %533 : vector<8x128xf32>
    %cst_148 = arith.constant 1.000000e+00 : f32
    %535 = vector.broadcast %cst_148 : f32 to vector<8x128xf32>
    %536 = arith.subf %535, %529 : vector<8x128xf32>
    %537 = arith.mulf %536, %534 : vector<8x128xf32>
    %538 = arith.mulf %529, %507 : vector<8x128xf32>
    %539 = arith.addf %537, %538 : vector<8x128xf32>
    %c7_i32_149 = arith.constant 7 : i32
    %540 = arith.index_cast %c7_i32_149 : i32 to index
    %c0_150 = arith.constant 0 : index
    %c0_151 = arith.constant 0 : index
    %541 = vector.load %arg13[%540, %c0_150, %c0_151] : memref<8x8x384xf32, #tpu.memory_space<vmem>>, vector<1x8x384xf32>
    %542 = vector.shape_cast %541 : vector<1x8x384xf32> to vector<8x384xf32>
    %cst_152 = arith.constant dense<0.000000e+00> : vector<8x384xf32>
    %543 = tpu.matmul %539, %313, %cst_152 {dimension_numbers = #tpu.dot_dimension_numbers<[1], [0], [0], [1], [0, 0, 1, 1], [], []>} : vector<8x128xf32>, vector<128x384xf32>, vector<8x384xf32> -> vector<8x384xf32>
    %544 = vector.broadcast %314 : vector<1x384xf32> to vector<8x384xf32>
    %545 = arith.addf %543, %544 : vector<8x384xf32>
    %546 = vector.extract_strided_slice %542 {offsets = [0, 0], sizes = [8, 128], strides = [1, 1]} : vector<8x384xf32> to vector<8x128xf32>
    %547 = vector.extract_strided_slice %545 {offsets = [0, 0], sizes = [8, 128], strides = [1, 1]} : vector<8x384xf32> to vector<8x128xf32>
    %548 = arith.addf %546, %547 : vector<8x128xf32>
    %549 = arith.negf %548 : vector<8x128xf32>
    %550 = math.exp %549 : vector<8x128xf32>
    %cst_153 = arith.constant 1.000000e+00 : f32
    %551 = vector.broadcast %cst_153 : f32 to vector<8x128xf32>
    %552 = arith.addf %551, %550 : vector<8x128xf32>
    %553 = arith.divf %551, %552 : vector<8x128xf32>
    %554 = vector.extract_strided_slice %542 {offsets = [0, 128], sizes = [8, 128], strides = [1, 1]} : vector<8x384xf32> to vector<8x128xf32>
    %555 = vector.extract_strided_slice %545 {offsets = [0, 128], sizes = [8, 128], strides = [1, 1]} : vector<8x384xf32> to vector<8x128xf32>
    %556 = arith.addf %554, %555 : vector<8x128xf32>
    %557 = arith.negf %556 : vector<8x128xf32>
    %558 = math.exp %557 : vector<8x128xf32>
    %cst_154 = arith.constant 1.000000e+00 : f32
    %559 = vector.broadcast %cst_154 : f32 to vector<8x128xf32>
    %560 = arith.addf %559, %558 : vector<8x128xf32>
    %561 = arith.divf %559, %560 : vector<8x128xf32>
    %562 = vector.extract_strided_slice %542 {offsets = [0, 256], sizes = [8, 128], strides = [1, 1]} : vector<8x384xf32> to vector<8x128xf32>
    %563 = vector.extract_strided_slice %545 {offsets = [0, 256], sizes = [8, 128], strides = [1, 1]} : vector<8x384xf32> to vector<8x128xf32>
    %564 = arith.mulf %553, %563 : vector<8x128xf32>
    %565 = arith.addf %562, %564 : vector<8x128xf32>
    %566 = math.tanh %565 : vector<8x128xf32>
    %cst_155 = arith.constant 1.000000e+00 : f32
    %567 = vector.broadcast %cst_155 : f32 to vector<8x128xf32>
    %568 = arith.subf %567, %561 : vector<8x128xf32>
    %569 = arith.mulf %568, %566 : vector<8x128xf32>
    %570 = arith.mulf %561, %539 : vector<8x128xf32>
    %571 = arith.addf %569, %570 : vector<8x128xf32>
    %c8_i32_156 = arith.constant 8 : i32
    %c0_157 = arith.constant 0 : index
    %c0_158 = arith.constant 0 : index
    %572 = vector.load %arg17[%c0_157, %c0_158] : memref<8x128xf32, #tpu.memory_space<vmem>>, vector<8x128xf32>
    tpu.vector_store %arg17[%c0_157, %c0_158], %571 {strides = array<i32>} : memref<8x128xf32, #tpu.memory_space<vmem>>, vector<8x128xf32>,
    %c0_i32_159 = arith.constant 0 : i32
    %573 = arith.cmpi eq, %arg0, %c0_i32_159 : i32
    %574 = arith.extui %573 : i1 to i32
    %c0_i32_160 = arith.constant 0 : i32
    %575 = arith.cmpi ne, %574, %c0_i32_160 : i32
    scf.if %575 {
      %c0_161 = arith.constant 0 : index
      %c0_162 = arith.constant 0 : index
      %576 = vector.load %arg17[%c0_161, %c0_162] : memref<8x128xf32, #tpu.memory_space<vmem>>, vector<8x128xf32>
      %c0_163 = arith.constant 0 : index
      %c0_164 = arith.constant 0 : index
      %577 = vector.load %arg10[%c0_163, %c0_164] : memref<128x128xf32, #tpu.memory_space<vmem>>, vector<128x128xf32>
      %cst_165 = arith.constant dense<0.000000e+00> : vector<8x128xf32>
      %578 = tpu.matmul %576, %577, %cst_165 {dimension_numbers = #tpu.dot_dimension_numbers<[1], [0], [0], [1], [0, 0, 1, 1], [], []>} : vector<8x128xf32>, vector<128x128xf32>, vector<8x128xf32> -> vector<8x128xf32>
      %c0_166 = arith.constant 0 : index
      %c0_167 = arith.constant 0 : index
      %579 = vector.load %arg11[%c0_166, %c0_167] : memref<1x128xf32, #tpu.memory_space<vmem>>, vector<1x128xf32>
      %580 = vector.broadcast %579 : vector<1x128xf32> to vector<8x128xf32>
      %581 = arith.addf %578, %580 : vector<8x128xf32>
      %c0_168 = arith.constant 0 : index
      %c0_169 = arith.constant 0 : index
      %582 = vector.load %arg12[%c0_168, %c0_169] : memref<8x128xf32, #tpu.memory_space<vmem>>, vector<8x128xf32>
      tpu.vector_store %arg12[%c0_168, %c0_169], %581 {strides = array<i32>} : memref<8x128xf32, #tpu.memory_space<vmem>>, vector<8x128xf32>,
    } else {
    }
    return
  }
  func.func @transform_0(%arg0: i32) -> (i32, i32, i32) {
    %c0_i32 = arith.constant 0 : i32
    %c0_i32_0 = arith.constant 0 : i32
    %c0_i32_1 = arith.constant 0 : i32
    return %arg0, %c0_i32, %c0_i32_0 : i32, i32, i32
  }
  func.func @transform_1(%arg0: i32) -> (i32, i32) {
    %c0_i32 = arith.constant 0 : i32
    %c0_i32_0 = arith.constant 0 : i32
    %c0_i32_1 = arith.constant 0 : i32
    return %c0_i32, %c0_i32_0 : i32, i32
  }
  func.func @transform_2(%arg0: i32) -> (i32, i32) {
    %c0_i32 = arith.constant 0 : i32
    %c0_i32_0 = arith.constant 0 : i32
    %c0_i32_1 = arith.constant 0 : i32
    return %c0_i32, %c0_i32_0 : i32, i32
  }
  func.func @transform_3(%arg0: i32) -> (i32, i32) {
    %c0_i32 = arith.constant 0 : i32
    %c0_i32_0 = arith.constant 0 : i32
    %c0_i32_1 = arith.constant 0 : i32
    return %c0_i32, %c0_i32_0 : i32, i32
  }
  func.func @transform_4(%arg0: i32) -> (i32, i32) {
    %c0_i32 = arith.constant 0 : i32
    %c0_i32_0 = arith.constant 0 : i32
    %c0_i32_1 = arith.constant 0 : i32
    return %c0_i32, %c0_i32_0 : i32, i32
  }
  func.func @transform_5(%arg0: i32) -> (i32, i32) {
    %c0_i32 = arith.constant 0 : i32
    %c0_i32_0 = arith.constant 0 : i32
    %c0_i32_1 = arith.constant 0 : i32
    return %c0_i32, %c0_i32_0 : i32, i32
  }
  func.func @transform_6(%arg0: i32) -> (i32, i32) {
    %c0_i32 = arith.constant 0 : i32
    %c0_i32_0 = arith.constant 0 : i32
    %c0_i32_1 = arith.constant 0 : i32
    return %c0_i32, %c0_i32_0 : i32, i32
  }
  func.func @transform_7(%arg0: i32) -> (i32, i32) {
    %c0_i32 = arith.constant 0 : i32
    %c0_i32_0 = arith.constant 0 : i32
    %c0_i32_1 = arith.constant 0 : i32
    return %c0_i32, %c0_i32_0 : i32, i32
  }
  func.func @transform_8(%arg0: i32) -> (i32, i32) {
    %c0_i32 = arith.constant 0 : i32
    %c0_i32_0 = arith.constant 0 : i32
    %c0_i32_1 = arith.constant 0 : i32
    return %c0_i32, %c0_i32_0 : i32, i32
  }
  func.func @transform_9(%arg0: i32) -> (i32, i32) {
    %c0_i32 = arith.constant 0 : i32
    %c0_i32_0 = arith.constant 0 : i32
    %c0_i32_1 = arith.constant 0 : i32
    return %c0_i32, %c0_i32_0 : i32, i32
  }
  func.func @transform_10(%arg0: i32) -> (i32, i32) {
    %c0_i32 = arith.constant 0 : i32
    %c0_i32_0 = arith.constant 0 : i32
    %c0_i32_1 = arith.constant 0 : i32
    return %c0_i32, %c0_i32_0 : i32, i32
  }
  func.func @transform_11(%arg0: i32) -> (i32, i32) {
    %c0_i32 = arith.constant 0 : i32
    %c0_i32_0 = arith.constant 0 : i32
    %c0_i32_1 = arith.constant 0 : i32
    return %c0_i32, %c0_i32_0 : i32, i32
  }
}

</mosaic_0001>

<bundles_post_ra>
// kernel: gru_model_forward.1
= control target key start
LH: loop header
LB: loop body
LE: loop exit
PB: predicated region body
PF: predicated region fallthrough
CT: control target
= control target key end

     0   :  { %v5932_v3 = vmov 0.0   ;;  %vm5934_vm0 = vmmov 0   ;;  %s7563_s1 = inlined_call_operand.vmem [shape: f32[128,384], index: 1, kind: input, shape index: {}]   ;;  %s7564_s0 = inlined_call_operand.vmem [shape: f32[8,8,128], index: 0, kind: input, shape index: {}]   ;;  %s7565_s2 = inlined_call_operand.vmem [shape: f32[128,384], index: 2, kind: input, shape index: {}]   ;;  %s7566_s3 = inlined_call_operand.vmem [shape: f32[1,384], index: 3, kind: input, shape index: {}]   ;;  %s7567_s4 = inlined_call_operand.vmem [shape: f32[1,384], index: 4, kind: input, shape index: {}]   ;;  %s7568_s5 = inlined_call_operand.vmem [shape: f32[128,384], index: 5, kind: input, shape index: {}]   ;;  %s7569_s6 = inlined_call_operand.vmem [shape: f32[128,384], index: 6, kind: input, shape index: {}]   ;;  %s7570_s8 = inlined_call_operand.vmem [shape: f32[1,384], index: 8, kind: input, shape index: {}]   ;;  %s7571_s7 = inlined_call_operand.vmem [shape: f32[1,384], index: 7, kind: input, shape index: {}]   ;;  %s7572_s9 = inlined_call_operand.vmem [shape: f32[128,128], index: 9, kind: input, shape index: {}]   ;;  %s7573_s10 = inlined_call_operand.vmem [shape: f32[1,128], index: 10, kind: input, shape index: {}]   ;;  %s7574_s11 = inlined_call_operand.vmem [shape: f32[8,128], index: 11, kind: output, shape index: {}]  }
   0x1   :  { %v53_v0 = vld [vmem:[%s7563_s1 + $0x8] sm:$0xff]  ;;  %v56_v1 = vld [vmem:[%s7563_s1 + $0x20] sm:$0xff]  ;;  %181 = vmatprep.mubr.f32.mxu0 %v5932_v3  ;;  %v55_v5 = vld [vmem:[%s7563_s1 + $0x18] sm:$0xff] }
   0x2   :  { %v52_v2 = vld [vmem:[%s7563_s1] sm:$0xff]  ;;  %v4625_v4 = vpack.c.bf16 %v56_v1, %v53_v0  ;;  %v59_v6 = vld [vmem:[%s7563_s1 + $0x38] sm:$0xff]  ;;  %v62_v7 = vld [vmem:[%s7563_s1 + $0x50] sm:$0xff] }
   0x3   :  { %v4627_v8 = vpack.c.bf16 %v55_v5, %v52_v2  ;;  %v4629_v9 = vpack.c.bf16 %v62_v7, %v59_v6  ;;  %v58_v10 = vld [vmem:[%s7563_s1 + $0x30] sm:$0xff]  ;;  %v61_v11 = vld [vmem:[%s7563_s1 + $0x48] sm:$0xff]  ;;  %v68_v13 = vld [vmem:[%s7563_s1 + $0x80] sm:$0xff] }
   0x4   :  { %v65_v12 = vld [vmem:[%s7563_s1 + $0x68] sm:$0xff]  ;;  %4626 = vmatprep.subr.bf16.mxu0 %v4625_v4  ;;  %v4631_v14 = vpack.c.bf16 %v61_v11, %v58_v10  ;;  %v64_v16 = vld [vmem:[%s7563_s1 + $0x60] sm:$0xff]  ;;  %v67_v17 = vld [vmem:[%s7563_s1 + $0x78] sm:$0xff] }
   0x5   :  { %4628 = vmatpush1.bf16.msra.mxu0 %v4627_v8  ;;  %v4633_v15 = vpack.c.bf16 %v68_v13, %v65_v12  ;;  %v71_v18 = vld [vmem:[%s7563_s1 + $0x98] sm:$0xff]  ;;  %v74_v19 = vld [vmem:[%s7563_s1 + $0xb0] sm:$0xff]  ;;  %v4635_v20 = vpack.c.bf16 %v67_v17, %v64_v16  ;;  %v73_v23 = vld [vmem:[%s7563_s1 + $0xa8] sm:$0xff] }
   0x6   :  { %4630 = vmatprep.subr.bf16.mxu0 %v4629_v9  ;;  %v70_v21 = vld [vmem:[%s7563_s1 + $0x90] sm:$0xff]  ;;  %v4637_v22 = vpack.c.bf16 %v74_v19, %v71_v18  ;;  %v57_v25 = vld [vmem:[%s7563_s1 + $0x28] sm:$0xff]  ;;  %v80_v27 = vld [vmem:[%s7563_s1 + $0xe0] sm:$0xff] }
   0x7   :  { %v54_v24 = vld [vmem:[%s7563_s1 + $0x10] sm:$0xff]  ;;  %v77_v26 = vld [vmem:[%s7563_s1 + $0xc8] sm:$0xff]  ;;  %v60_v29 = vld [vmem:[%s7563_s1 + $0x40] sm:$0xff]  ;;  %v4639_v31 = vpack.c.bf16 %v73_v23, %v70_v21 }
   0x8   :  { %v4657_v28 = vpack.c.bf16 %v57_v25, %v54_v24  ;;  %v63_v30 = vld [vmem:[%s7563_s1 + $0x58] sm:$0xff]  ;;  %v76_v32 = vld [vmem:[%s7563_s1 + $0xc0] sm:$0xff]  ;;  %v4641_v34 = vpack.c.bf16 %v80_v27, %v77_v26  ;;  %v66_v37 = vld [vmem:[%s7563_s1 + $0x70] sm:$0xff] }
   0x9   :  { %4632 = vmatpush1.bf16.msra.mxu0 %v4631_v14  ;;  %v4661_v33 = vpack.c.bf16 %v63_v30, %v60_v29  ;;  %v79_v35 = vld [vmem:[%s7563_s1 + $0xd8] sm:$0xff]  ;;  %v6071_v36 = vld [vmem:[%s7564_s0] sm:$0xff]  ;;  %v86_v39 = vld [vmem:[%s7563_s1 + $0x110] sm:$0xff] }
   0xa   :  { %4634 = vmatprep.subr.bf16.mxu0 %v4633_v15  ;;  %4658 = vmatprep.subr.bf16.mxu1 %v4657_v28  ;;  %v83_v38 = vld [vmem:[%s7563_s1 + $0xf8] sm:$0xff]  ;;  %v69_v40 = vld [vmem:[%s7563_s1 + $0x88] sm:$0xff]  ;;  %v4643_v42 = vpack.c.bf16 %v79_v35, %v76_v32  ;;  %v72_v43 = vld [vmem:[%s7563_s1 + $0xa0] sm:$0xff] }
   0xb   :  { %4660 = vmatpush3.bf16.msra.mxu1 %v4657_v28  ;;  %3974 = vmatprep.mubr.f32.mxu1 %v6071_v36  ;;  %v4665_v41 = vpack.c.bf16 %v69_v40, %v66_v37  ;;  %v75_v44 = vld [vmem:[%s7563_s1 + $0xb8] sm:$0xff]  ;;  %v4645_v45 = vpack.c.bf16 %v86_v39, %v83_v38  ;;  %v82_v46 = vld [vmem:[%s7563_s1 + $0xf0] sm:$0xff]  ;;  %v85_v47 = vld [vmem:[%s7563_s1 + $0x108] sm:$0xff]  ;;  %v5933_v40 = vmov 0.0|0.0  }
   0xc   :  { %4662 = vmatprep.subr.bf16.mxu1 %v4661_v33  ;;  %v89_v48 = vld [vmem:[%s7563_s1 + $0x128] sm:$0xff]  ;;  %v92_v49 = vld [vmem:[%s7563_s1 + $0x140] sm:$0xff]  ;;  %v4669_v50 = vpack.c.bf16 %v75_v44, %v72_v43  ;;  %v78_v51 = vld [vmem:[%s7563_s1 + $0xd0] sm:$0xff]  ;;  %v4647_v53 = vpack.c.bf16 %v85_v47, %v82_v46 }
   0xd   :  { %4636 = vmatpush1.bf16.msra.mxu0 %v4635_v20  ;;  %v81_v52 = vld [vmem:[%s7563_s1 + $0xe8] sm:$0xff]  ;;  %v4649_v54 = vpack.c.bf16 %v92_v49, %v89_v48  ;;  %v88_v55 = vld [vmem:[%s7563_s1 + $0x120] sm:$0xff]  ;;  %v91_v56 = vld [vmem:[%s7563_s1 + $0x138] sm:$0xff] }
   0xe   :  { %4638 = vmatprep.subr.bf16.mxu0 %v4637_v22  ;;  %v95_v57 = vld [vmem:[%s7563_s1 + $0x158] sm:$0xff]  ;;  %v98_v58 = vld [vmem:[%s7563_s1 + $0x170] sm:$0xff]  ;;  %v4673_v59 = vpack.c.bf16 %v81_v52, %v78_v51  ;;  %v84_v60 = vld [vmem:[%s7563_s1 + $0x100] sm:$0xff]  ;;  %v4651_v62 = vpack.c.bf16 %v91_v56, %v88_v55 }
   0xf   :  { %4664 = vmatpush3.bf16.msra.mxu1 %v4661_v33  ;;  %v87_v61 = vld [vmem:[%s7563_s1 + $0x118] sm:$0xff]  ;;  %v4653_v63 = vpack.c.bf16 %v98_v58, %v95_v57  ;;  %v94_v0 = vld [vmem:[%s7563_s1 + $0x150] sm:$0xff]  ;;  %v97_v1 = vld [vmem:[%s7563_s1 + $0x168] sm:$0xff] }
  0x10   :  { %4666 = vmatprep.subr.bf16.mxu1 %v4665_v41  ;;  %v360_v2 = vld [vmem:[%s7565_s2 + $0x8] sm:$0xff]  ;;  %v363_v4 = vld [vmem:[%s7565_s2 + $0x20] sm:$0xff]  ;;  %v4677_v5 = vpack.c.bf16 %v87_v61, %v84_v60  ;;  %v90_v6 = vld [vmem:[%s7563_s1 + $0x130] sm:$0xff]  ;;  %v4655_v8 = vpack.c.bf16 %v97_v1, %v94_v0 }
  0x11   :  { %4640 = vmatpush1.bf16.msra.mxu0 %v4639_v31  ;;  %v93_v7 = vld [vmem:[%s7563_s1 + $0x148] sm:$0xff]  ;;  %v6146_v9 = vpack.c.bf16 %v363_v4, %v360_v2  ;;  %v359_v10 = vld [vmem:[%s7565_s2] sm:$0xff]  ;;  %v362_v11 = vld [vmem:[%s7565_s2 + $0x18] sm:$0xff] }
  0x12   :  { %4642 = vmatprep.subr.bf16.mxu0 %v4641_v34  ;;  %v366_v12 = vld [vmem:[%s7565_s2 + $0x38] sm:$0xff]  ;;  %v369_v13 = vld [vmem:[%s7565_s2 + $0x50] sm:$0xff]  ;;  %v4681_v14 = vpack.c.bf16 %v93_v7, %v90_v6  ;;  %v96_v15 = vld [vmem:[%s7563_s1 + $0x160] sm:$0xff]  ;;  %v6166_v17 = vpack.c.bf16 %v362_v11, %v359_v10 }
  0x13   :  { %4668 = vmatpush3.bf16.msra.mxu1 %v4665_v41  ;;  %v99_v16 = vld [vmem:[%s7563_s1 + $0x178] sm:$0xff]  ;;  %v6169_v18 = vpack.c.bf16 %v369_v13, %v366_v12  ;;  %v365_v19 = vld [vmem:[%s7565_s2 + $0x30] sm:$0xff]  ;;  %v368_v20 = vld [vmem:[%s7565_s2 + $0x48] sm:$0xff] }
  0x14   :  { %4670 = vmatprep.subr.bf16.mxu1 %v4669_v50  ;;  %v372_v21 = vld [vmem:[%s7565_s2 + $0x68] sm:$0xff]  ;;  %v375_v22 = vld [vmem:[%s7565_s2 + $0x80] sm:$0xff]  ;;  %v4685_v23 = vpack.c.bf16 %v99_v16, %v96_v15  ;;  %v6189_v25 = vpack.c.bf16 %v368_v20, %v365_v19  ;;  %v374_v28 = vld [vmem:[%s7565_s2 + $0x78] sm:$0xff] }
  0x15   :  { %4644 = vmatpush1.bf16.msra.mxu0 %v4643_v42  ;;  %v45_v24 = vld [vmem:[%s7564_s0 + $0x8] sm:$0xff]  ;;  %v6192_v26 = vpack.c.bf16 %v375_v22, %v372_v21  ;;  %v371_v27 = vld [vmem:[%s7565_s2 + $0x60] sm:$0xff]  ;;  %v378_v29 = vld [vmem:[%s7565_s2 + $0x98] sm:$0xff] }
  0x16   :  { %4646 = vmatprep.subr.bf16.mxu0 %v4645_v45  ;;  %v381_v30 = vld [vmem:[%s7565_s2 + $0xb0] sm:$0xff]  ;;  %v364_v32 = vld [vmem:[%s7565_s2 + $0x28] sm:$0xff]  ;;  %v6217_v34 = vpack.c.bf16 %v374_v28, %v371_v27  ;;  %v387_v39 = vld [vmem:[%s7565_s2 + $0xe0] sm:$0xff] }
  0x17   :  { %4672 = vmatpush3.bf16.msra.mxu1 %v4669_v50  ;;  %v361_v31 = vld [vmem:[%s7565_s2 + $0x10] sm:$0xff]  ;;  %v6220_v35 = vpack.c.bf16 %v381_v30, %v378_v29  ;;  %v380_v37 = vld [vmem:[%s7565_s2 + $0xa8] sm:$0xff]  ;;  %v367_v42 = vld [vmem:[%s7565_s2 + $0x40] sm:$0xff] }
  0x18   :  { %4674 = vmatprep.subr.bf16.mxu1 %v4673_v59  ;;  %v46_v33 = vld [vmem:[%s7564_s0 + $0x10] sm:$0xff]  ;;  %v384_v38 = vld [vmem:[%s7565_s2 + $0xc8] sm:$0xff]  ;;  %v6235_v41 = vpack.c.bf16 %v364_v32, %v361_v31  ;;  %v370_v43 = vld [vmem:[%s7565_s2 + $0x58] sm:$0xff] }
  0x19   :  { %4648 = vmatpush1.bf16.msra.mxu0 %v4647_v53  ;;  %v47_v44 = vld [vmem:[%s7564_s0 + $0x18] sm:$0xff]  ;;  %v6251_v46 = vpack.c.bf16 %v387_v39, %v384_v38  ;;  %v383_v47 = vld [vmem:[%s7565_s2 + $0xc0] sm:$0xff]  ;;  %v393_v50 = vld [vmem:[%s7565_s2 + $0x110] sm:$0xff]  ;;  %v6266_v51 = vpack.c.bf16 %v370_v43, %v367_v42 }
  0x1a   :  { %4650 = vmatprep.subr.bf16.mxu0 %v4649_v54  ;;  %v386_v48 = vld [vmem:[%s7565_s2 + $0xd8] sm:$0xff]  ;;  %v373_v52 = vld [vmem:[%s7565_s2 + $0x70] sm:$0xff]  ;;  %v376_v53 = vld [vmem:[%s7565_s2 + $0x88] sm:$0xff] }
  0x1b   :  { %4676 = vmatpush3.bf16.msra.mxu1 %v4673_v59  ;;  %v390_v49 = vld [vmem:[%s7565_s2 + $0xf8] sm:$0xff]  ;;  %v48_v54 = vld [vmem:[%s7564_s0 + $0x20] sm:$0xff]  ;;  %v6280_v55 = vpack.c.bf16 %v386_v48, %v383_v47  ;;  %v389_v57 = vld [vmem:[%s7565_s2 + $0xf0] sm:$0xff]  ;;  %v6298_v61 = vpack.c.bf16 %v376_v53, %v373_v52 }
  0x1c   :  { %4678 = vmatprep.subr.bf16.mxu1 %v4677_v5  ;;  %v6283_v56 = vpack.c.bf16 %v393_v50, %v390_v49  ;;  %v392_v58 = vld [vmem:[%s7565_s2 + $0x108] sm:$0xff]  ;;  %v399_v60 = vld [vmem:[%s7565_s2 + $0x140] sm:$0xff]  ;;  %v50_v2 = vld [vmem:[%s7564_s0 + $0x30] sm:$0xff] }
  0x1d   :  { %4652 = vmatpush1.bf16.msra.mxu0 %v4651_v62  ;;  %v396_v59 = vld [vmem:[%s7565_s2 + $0x128] sm:$0xff]  ;;  %v379_v62 = vld [vmem:[%s7565_s2 + $0xa0] sm:$0xff]  ;;  %v6312_v1 = vpack.c.bf16 %v392_v58, %v389_v57  ;;  %v398_v6 = vld [vmem:[%s7565_s2 + $0x138] sm:$0xff] }
  0x1e   :  { %4654 = vmatprep.subr.bf16.mxu0 %v4653_v63  ;;  %v382_v63 = vld [vmem:[%s7565_s2 + $0xb8] sm:$0xff]  ;;  %v49_v0 = vld [vmem:[%s7564_s0 + $0x28] sm:$0xff]  ;;  %v6318_v4 = vpack.c.bf16 %v399_v60, %v396_v59  ;;  %v385_v11 = vld [vmem:[%s7565_s2 + $0xd0] sm:$0xff] }
  0x1f   :  { %4680 = vmatpush3.bf16.msra.mxu1 %v4677_v5  ;;  %v395_v5 = vld [vmem:[%s7565_s2 + $0x120] sm:$0xff]  ;;  %v402_v7 = vld [vmem:[%s7565_s2 + $0x158] sm:$0xff]  ;;  %v6333_v10 = vpack.c.bf16 %v382_v63, %v379_v62  ;;  %v388_v12 = vld [vmem:[%s7565_s2 + $0xe8] sm:$0xff] }
  0x20   :  { %4682 = vmatprep.subr.bf16.mxu1 %v4681_v14  ;;  %v6344_v13 = vpack.c.bf16 %v398_v6, %v395_v5  ;;  %v401_v16 = vld [vmem:[%s7565_s2 + $0x150] sm:$0xff]  ;;  %v404_v19 = vld [vmem:[%s7565_s2 + $0x168] sm:$0xff]  ;;  %v6359_v20 = vpack.c.bf16 %v388_v12, %v385_v11  ;;  %v391_v21 = vld [vmem:[%s7565_s2 + $0x100] sm:$0xff] }
  0x21   :  { %4656 = vmatpush1.bf16.msra.mxu0 %v4655_v8  ;;  %v405_v8 = vld [vmem:[%s7565_s2 + $0x170] sm:$0xff]  ;;  %v394_v22 = vld [vmem:[%s7565_s2 + $0x118] sm:$0xff]  ;;  %v400_v28 = vld [vmem:[%s7565_s2 + $0x148] sm:$0xff] }
  0x22   :  { %4690 = vmatprep.subr.bf16.mxu0 %v6146_v9  ;;  %v6350_v15 = vpack.c.bf16 %v405_v8, %v402_v7  ;;  %v397_v27 = vld [vmem:[%s7565_s2 + $0x130] sm:$0xff]  ;;  %v403_v30 = vld [vmem:[%s7565_s2 + $0x160] sm:$0xff]  ;;  %v406_v31 = vld [vmem:[%s7565_s2 + $0x178] sm:$0xff] }
  0x23   :  { %4684 = vmatpush3.bf16.msra.mxu1 %v4681_v14  ;;  %v51_v14 = vld [vmem:[%s7564_s0 + $0x38] sm:$0xff]  ;;  %v6389_v29 = vpack.c.bf16 %v400_v28, %v397_v27  ;;  %v6403_v32 = vpack.c.bf16 %v406_v31, %v403_v30  ;;  %v100_v38 = vld [vmem:[%s7566_s3] sm:$0x7] }
  0x24   :  { %182 = vmatmul.mubr.f32.vlgmr.msra.gmra.mrb[0].mxu0 %v6071_v36  ;;  %4686 = vmatprep.subr.bf16.mxu1 %v4685_v23  ;;  %v377_v36 = vld [vmem:[%s7565_s2 + $0x90] sm:$0xff]  ;;  %v407_v59 = vld [vmem:[%s7567_s4] sm:$0x7] }
  0x25   :  { %4692 = vmatpush1.bf16.msra.mxu0 %v6166_v17  ;;  %187 = vmatprep.mubr.f32.mxu0 %v5932_v3  ;;  %v6248_v45 = vpack.c.bf16 %v380_v37, %v377_v36 }
  0x26   :  { %4694 = vmatprep.subr.bf16.mxu0 %v6169_v18 }
  0x27   :  { %4688 = vmatpush3.bf16.msra.mxu1 %v4685_v23  ;;  %v6372_v23 = vpack.c.bf16 %v404_v19, %v401_v16 }
  0x28   :  { %188 = vmatmul.mubr.f32.gmra.mrb[2].mxu0 %v45_v24  ;;  %4721 = vmatprep.subr.bf16.mxu1 %v5933_v40 }
  0x29   :  { %4696 = vmatpush1.bf16.msra.mxu0 %v6189_v25  ;;  %193 = vmatprep.mubr.f32.mxu0 %v5932_v3 }
  0x2a   :  { %4698 = vmatprep.subr.bf16.mxu0 %v6192_v26  ;;  %3975 = vmatmul.mubr.f32.vlgmr.msra.gmra.mrb[0].mxu1 %v45_v24  ;;  %v6376_v24 = vpack.c.bf16 %v394_v22, %v391_v21 }
  0x2b   :  { %4723 = vmatpush3.bf16.msra.mxu1 %v6235_v41  ;;  %3977 = vmatprep.mubr.f32.mxu1 %v46_v33 }
  0x2c   :  { %194 = vmatmul.mubr.f32.gmra.mrb[4].mxu0 %v46_v33  ;;  %4724 = vmatprep.subr.bf16.mxu1 %v5933_v40  ;;  %v102_v33 = vlaneseq }
  0x2d   :  { %4700 = vmatpush1.bf16.msra.mxu0 %v6217_v34  ;;  %199 = vmatprep.mubr.f32.mxu0 %v5932_v3 }
  0x2e   :  { %4702 = vmatprep.subr.bf16.mxu0 %v6220_v35  ;;  %3978 = vmatmul.mubr.f32.gmra.mrb[2].mxu1 %v47_v44  ;;  %v103_v36 = vshrl.u32 %v102_v33, 7 }
  0x2f   :  { %4726 = vmatpush3.bf16.msra.mxu1 %v6266_v51  ;;  %3980 = vmatprep.mubr.f32.mxu1 %v48_v54 }
  0x30   :  { %200 = vmatmul.mubr.f32.gmra.mrb[6].mxu0 %v47_v44  ;;  %4727 = vmatprep.subr.bf16.mxu1 %v5933_v40  ;;  %v6441_v37 = vsub.s32 2, %v103_v36  ;;  %v6457_v58 = vsub.s32 0, %v103_v36 }
  0x31   :  { %4704 = vmatpush1.bf16.msra.mxu0 %v6248_v45  ;;  %205 = vmatprep.mubr.f32.mxu0 %v5932_v3 }
  0x32   :  { %4706 = vmatprep.subr.bf16.mxu0 %v6251_v46  ;;  %3981 = vmatmul.mubr.f32.gmra.mrb[4].mxu1 %v49_v0  ;;  %v113_v39 = vrot.slane %v100_v38, %v6441_v37  ;;  %v105_v5 = vrot.slane %v100_v38, %v6457_v58  ;;  %v416_v6 = vrot.slane %v407_v59, %v6457_v58 }
  0x33   :  { %4729 = vmatpush3.bf16.msra.mxu1 %v6298_v61  ;;  %3983 = vmatprep.mubr.f32.mxu1 %v50_v2 }
  0x34   :  { %206 = vmatmul.mubr.f32.gmra.mrb[8].mxu0 %v48_v54  ;;  %4730 = vmatprep.subr.bf16.mxu1 %v5933_v40  ;;  %v6472_v11 = vadd.f32 %v416_v6, %v105_v5 }
  0x35   :  { %4708 = vmatpush1.bf16.msra.mxu0 %v6280_v55  ;;  %211 = vmatprep.mubr.f32.mxu0 %v5932_v3 }
  0x36   :  { %4710 = vmatprep.subr.bf16.mxu0 %v6283_v56  ;;  %3984 = vmatmul.mubr.f32.gmra.mrb[6].mxu1 %v51_v14 }
  0x37   :  { %4732 = vmatpush3.bf16.msra.mxu1 %v6333_v10  ;;  %4018 = vmatprep.mubr.msk.f32.mxu1 %vm5934_vm0, %v5932_v3 }
  0x38   :  { %212 = vmatmul.mubr.f32.gmra.mrb[10].mxu0 %v49_v0  ;;  %4733 = vmatprep.subr.bf16.mxu1 %v5933_v40  ;;  %v6464_v0 = vsub.s32 1, %v103_v36  ;;  %v6479_v36 = vrot.slane %v407_v59, %v6441_v37 }
  0x39   :  { %4712 = vmatpush1.bf16.msra.mxu0 %v6312_v1  ;;  %217 = vmatprep.mubr.f32.mxu0 %v5932_v3 }
  0x3a   :  { %4714 = vmatprep.subr.bf16.mxu0 %v6318_v4  ;;  %v109_v7 = vrot.slane %v100_v38, %v6464_v0  ;;  %v420_v8 = vrot.slane %v407_v59, %v6464_v0 }
  0x3b   :  { %4735 = vmatpush3.bf16.msra.mxu1 %v6359_v20 }
  0x3c   :  { %218 = vmatmul.mubr.f32.gmra.mrb[12].mxu0 %v50_v2  ;;  %4736 = vmatprep.subr.bf16.mxu1 %v5933_v40 }
  0x3d   :  { %4716 = vmatpush1.bf16.msra.mxu0 %v6344_v13  ;;  %223 = vmatprep.mubr.f32.mxu0 %v5932_v3 }
  0x3e   :  { %4718 = vmatprep.subr.bf16.mxu0 %v6350_v15 }
  0x3f   :  { %4738 = vmatpush3.bf16.msra.mxu1 %v6376_v24 }
  0x40   :  { %224 = vmatmul.mubr.f32.gmra.mrb[14].mxu0 %v51_v14  ;;  %4739 = vmatprep.subr.bf16.mxu1 %v5933_v40  ;;  %v6474_v14 = vadd.f32 %v420_v8, %v109_v7 }
  0x41   :  { %4720 = vmatpush1.bf16.msra.mxu0 %v6372_v23  ;;  %492 = vmatprep.mubr.f32.mxu0 %v5932_v3 }
  0x42   :  { %4746 = vmatprep.subr.bf16.mxu0 %v6146_v9 }
  0x43   :  { %4741 = vmatpush3.bf16.msra.mxu1 %v6389_v29 }
  0x44   :  { %493 = vmatmul.mubr.f32.vlgmr.msra.gmra.mrb[0].mxu0 %v5932_v3  ;;  %4742 = vmatprep.subr.bf16.mxu1 %v5933_v40 }
  0x45   :  { %4748 = vmatpush1.bf16.msra.mxu0 %v6166_v17  ;;  %659 = vmatprep.mubr.f32.mxu0 %v5932_v3 }
  0x46   :  { %4750 = vmatprep.subr.bf16.mxu0 %v6169_v18 }
  0x47   :  { %4744 = vmatpush3.bf16.msra.mxu1 %v6403_v32 }
  0x48   :  { %4777 = vmatprep.subr.bf16.mxu1 %v5933_v40 }
  0x49   :  { %4752 = vmatpush1.bf16.msra.mxu0 %v6189_v25 }
  0x4a   :  { %4754 = vmatprep.subr.bf16.mxu0 %v6192_v26  ;;  %4019 = vmatmul.mubr.f32.vlgmr.msra.gmra.mrb[8].mxu1 %v5932_v3 }
  0x4b   :  { %4779 = vmatpush3.bf16.msra.mxu1 %v6235_v41  ;;  %4053 = vmatprep.mubr.msk.f32.mxu1 %vm5934_vm0, %v5932_v3 }
  0x4c   :  { %4780 = vmatprep.subr.bf16.mxu1 %v5933_v40 }
  0x4d   :  { %4756 = vmatpush1.bf16.msra.mxu0 %v6217_v34 }
  0x4e   :  { %4758 = vmatprep.subr.bf16.mxu0 %v6220_v35 }
  0x4f   :  { %4782 = vmatpush3.bf16.msra.mxu1 %v6266_v51 }
  0x50   :  { %4783 = vmatprep.subr.bf16.mxu1 %v5933_v40 }
  0x51   :  { %4760 = vmatpush1.bf16.msra.mxu0 %v6248_v45 }
  0x52   :  { %4762 = vmatprep.subr.bf16.mxu0 %v6251_v46 }
  0x53   :  { %4785 = vmatpush3.bf16.msra.mxu1 %v6298_v61 }
  0x54   :  { %4786 = vmatprep.subr.bf16.mxu1 %v5933_v40 }
  0x55   :  { %4764 = vmatpush1.bf16.msra.mxu0 %v6280_v55 }
  0x56   :  { %4766 = vmatprep.subr.bf16.mxu0 %v6283_v56 }
  0x57   :  { %4788 = vmatpush3.bf16.msra.mxu1 %v6333_v10 }
  0x58   :  { %4789 = vmatprep.subr.bf16.mxu1 %v5933_v40 }
  0x59   :  { %4768 = vmatpush1.bf16.msra.mxu0 %v6312_v1 }
  0x5a   :  { %4770 = vmatprep.subr.bf16.mxu0 %v6318_v4 }
  0x5b   :  { %4791 = vmatpush3.bf16.msra.mxu1 %v6359_v20 }
  0x5c   :  { %4792 = vmatprep.subr.bf16.mxu1 %v5933_v40 }
  0x5d   :  { %4772 = vmatpush1.bf16.msra.mxu0 %v6344_v13 }
  0x5e   :  { %4774 = vmatprep.subr.bf16.mxu0 %v6350_v15 }
  0x5f   :  { %4794 = vmatpush3.bf16.msra.mxu1 %v6376_v24 }
  0x60   :  { %4795 = vmatprep.subr.bf16.mxu1 %v5933_v40 }
  0x61   :  { %4776 = vmatpush1.bf16.msra.mxu0 %v6372_v23 }
  0x62   :  { %4802 = vmatprep.subr.bf16.mxu0 %v6146_v9 }
  0x63   :  { %4797 = vmatpush3.bf16.msra.mxu1 %v6389_v29 }
  0x64   :  { %4798 = vmatprep.subr.bf16.mxu1 %v5933_v40 }
  0x67   :  { %4800 = vmatpush3.bf16.msra.mxu1 %v6403_v32 }
  0x68   :  { %4833 = vmatprep.subr.bf16.mxu1 %v5933_v40 }
  0xfd   :  { %v3976_v42 = vpop.f32.mrb[0].mxu1 }
  0xfe   :  { %v6447_v43 = vadd.f32 %v3976_v42, %v113_v39  ;;  %v296_v44 = vpop.f32.mrb[1].mxu1 }
 0x101   :  { %v3979_v47 = vpop.f32.mrb[2].mxu1 }
 0x102   :  { %v6449_v48 = vadd.f32 %v3979_v47, %v113_v39  ;;  %v306_v49 = vpop.f32.mrb[3].mxu1 }
 0x103   :  { %v6451_v50 = vadd.f32 %v306_v49, %v113_v39 }
 0x105   :  { %v3982_v52 = vpop.f32.mrb[4].mxu1 }
 0x106   :  { %v6453_v53 = vadd.f32 %v3982_v52, %v113_v39  ;;  %v316_v54 = vpop.f32.mrb[5].mxu1  ;;  %v297_v52 = vadd.f32 %v296_v44, %v113_v39 }
 0x107   :  { %v6455_v57 = vadd.f32 %v316_v54, %v113_v39 }
 0x109   :  { %v3985_v60 = vpop.f32.mrb[6].mxu1 }
 0x10a   :  { %v6462_v62 = vadd.f32 %v3985_v60, %v113_v39  ;;  %v326_v63 = vpop.f32.mrb[7].mxu1 }
 0x10b   :  { %v6466_v2 = vadd.f32 %v326_v63, %v113_v39 }
 0x117   :  { %v494_v12 = vpop.f32.mrb[0].mxu0 }
 0x118   :  { %v5674_v16 = vadd.f32 %v6472_v11, %v494_v12  ;;  %v496_v19 = vpop.f32.mrb[1].mxu0 }
 0x119   :  { %v5676_v22 = vadd.f32 %v6474_v14, %v496_v19 }
 0x11a   :  { %v3572_v21 = vmul.f32 -1.442695, %v5674_v16 }
 0x11b   :  { %v3573_v27 = vmul.f32 -1.442695, %v5676_v22 }
 0x11c   :  { %5772 = vpow2.f32 %v3572_v21 }
 0x11d   :  { %v565_v28 = vpop.f32.mrb[8].mxu1  ;;  %5774 = vpow2.f32 %v3573_v27 }
 0x11e   :  { %v4020_v30 = vpop.f32.mrb[9].mxu1  ;;  %v566_v47 = vadd.f32 %v565_v28, %v6479_v36 }
 0x126   :  { %v5773_v31 = vpop.eup %5772 }
 0x127   :  { %v573_v33 = vadd.f32 1.0, %v5773_v31  ;;  %v5775_v38 = vpop.eup %5774 }
 0x128   :  { %v580_v42 = vadd.f32 1.0, %v5775_v38 }
 0x129   :  { %5776 = vrcp.f32 %v573_v33 }
 0x12a   :  { %5778 = vrcp.f32 %v580_v42 }
 0x133   :  { %v5777_v49 = vpop.eup %5776 }
 0x134   :  { %v583_v54 = vmul.f32 %v5777_v49, %v566_v47  ;;  %v5779_v63 = vpop.eup %5778 }
 0x135   :  { %v586_v5 = vsub.f32 1.0, %v5779_v63  ;;  %v588_v8 = vmul.f32 0.0, %v5779_v63 }
 0x136   :  { %v584_v60 = vadd.f32 %v583_v54, %v297_v52 }
 0x138   :  { %5780 = vtanh.f32 %v584_v60 }
 0x142   :  { %v5781_v6 = vpop.eup %5780 }
 0x143   :  { %v587_v7 = vmul.f32 %v5781_v6, %v586_v5 }
 0x145   :  { %v6482_v12 = vadd.f32 %v588_v8, %v587_v7 }
 0x147   :  { %660 = vmatmul.mubr.f32.vlgmr.msra.gmra.mrb[2].mxu0 %v6482_v12  ;;  %4054 = vmatmul.mubr.f32.vlgmr.msra.gmra.mrb[10].mxu1 %v6482_v12 }
 0x148   :  { %4804 = vmatpush1.bf16.msra.mxu0 %v6166_v17  ;;  %4835 = vmatpush3.bf16.msra.mxu1 %v6235_v41 }
 0x149   :  { %4806 = vmatprep.subr.bf16.mxu0 %v6169_v18  ;;  %4836 = vmatprep.subr.bf16.mxu1 %v5933_v40 }
 0x14a   :  { %827 = vmatprep.mubr.f32.mxu0 %v5932_v3  ;;  %4088 = vmatprep.mubr.msk.f32.mxu1 %vm5934_vm0, %v5932_v3 }
 0x14c   :  { %4808 = vmatpush1.bf16.msra.mxu0 %v6189_v25  ;;  %4838 = vmatpush3.bf16.msra.mxu1 %v6266_v51 }
 0x14d   :  { %4810 = vmatprep.subr.bf16.mxu0 %v6192_v26  ;;  %4839 = vmatprep.subr.bf16.mxu1 %v5933_v40 }
 0x150   :  { %4812 = vmatpush1.bf16.msra.mxu0 %v6217_v34  ;;  %4841 = vmatpush3.bf16.msra.mxu1 %v6298_v61 }
 0x151   :  { %4814 = vmatprep.subr.bf16.mxu0 %v6220_v35  ;;  %4842 = vmatprep.subr.bf16.mxu1 %v5933_v40 }
 0x154   :  { %4816 = vmatpush1.bf16.msra.mxu0 %v6248_v45  ;;  %4844 = vmatpush3.bf16.msra.mxu1 %v6333_v10 }
 0x155   :  { %4818 = vmatprep.subr.bf16.mxu0 %v6251_v46  ;;  %4845 = vmatprep.subr.bf16.mxu1 %v5933_v40 }
 0x158   :  { %4820 = vmatpush1.bf16.msra.mxu0 %v6280_v55  ;;  %4847 = vmatpush3.bf16.msra.mxu1 %v6359_v20 }
 0x159   :  { %4822 = vmatprep.subr.bf16.mxu0 %v6283_v56  ;;  %4848 = vmatprep.subr.bf16.mxu1 %v5933_v40 }
 0x15c   :  { %4824 = vmatpush1.bf16.msra.mxu0 %v6312_v1  ;;  %4850 = vmatpush3.bf16.msra.mxu1 %v6376_v24 }
 0x15d   :  { %4826 = vmatprep.subr.bf16.mxu0 %v6318_v4  ;;  %4851 = vmatprep.subr.bf16.mxu1 %v5933_v40 }
 0x160   :  { %4828 = vmatpush1.bf16.msra.mxu0 %v6344_v13  ;;  %4853 = vmatpush3.bf16.msra.mxu1 %v6389_v29 }
 0x161   :  { %4830 = vmatprep.subr.bf16.mxu0 %v6350_v15  ;;  %4854 = vmatprep.subr.bf16.mxu1 %v5933_v40 }
 0x164   :  { %4832 = vmatpush1.bf16.msra.mxu0 %v6372_v23  ;;  %4856 = vmatpush3.bf16.msra.mxu1 %v6403_v32 }
 0x165   :  { %4858 = vmatprep.subr.bf16.mxu0 %v6146_v9  ;;  %4889 = vmatprep.subr.bf16.mxu1 %v5933_v40 }
 0x21a   :  { %v661_v39 = vpop.f32.mrb[2].mxu0  ;;  %v732_v44 = vpop.f32.mrb[10].mxu1 }
 0x21b   :  { %v5678_v59 = vadd.f32 %v6472_v11, %v661_v39  ;;  %v663_v16 = vpop.f32.mrb[3].mxu0  ;;  %v4055_v19 = vpop.f32.mrb[11].mxu1  ;;  %v733_v38 = vadd.f32 %v732_v44, %v6479_v36 }
 0x21c   :  { %v5680_v22 = vadd.f32 %v6474_v14, %v663_v16 }
 0x21d   :  { %v3574_v21 = vmul.f32 -1.442695, %v5678_v59 }
 0x21e   :  { %v3575_v27 = vmul.f32 -1.442695, %v5680_v22 }
 0x21f   :  { %5782 = vpow2.f32 %v3574_v21 }
 0x220   :  { %5784 = vpow2.f32 %v3575_v27 }
 0x229   :  { %v5783_v28 = vpop.eup %5782 }
 0x22a   :  { %v740_v30 = vadd.f32 1.0, %v5783_v28  ;;  %v5785_v31 = vpop.eup %5784 }
 0x22b   :  { %v747_v33 = vadd.f32 1.0, %v5785_v31 }
 0x22c   :  { %5786 = vrcp.f32 %v740_v30 }
 0x22d   :  { %5788 = vrcp.f32 %v747_v33 }
 0x236   :  { %v5787_v42 = vpop.eup %5786 }
 0x237   :  { %v750_v47 = vmul.f32 %v5787_v42, %v733_v38  ;;  %v5789_v52 = vpop.eup %5788 }
 0x238   :  { %v753_v54 = vsub.f32 1.0, %v5789_v52  ;;  %v755_v5 = vmul.f32 %v5789_v52, %v6482_v12 }
 0x239   :  { %v751_v49 = vadd.f32 %v750_v47, %v6447_v43 }
 0x23b   :  { %5790 = vtanh.f32 %v751_v49 }
 0x245   :  { %v5791_v60 = vpop.eup %5790 }
 0x246   :  { %v754_v63 = vmul.f32 %v5791_v60, %v753_v54 }
 0x248   :  { %v6526_v6 = vadd.f32 %v755_v5, %v754_v63 }
 0x24a   :  { %828 = vmatmul.mubr.f32.vlgmr.msra.gmra.mrb[4].mxu0 %v6526_v6  ;;  %4089 = vmatmul.mubr.f32.vlgmr.msra.gmra.mrb[12].mxu1 %v6526_v6 }
 0x24b   :  { %4860 = vmatpush1.bf16.msra.mxu0 %v6166_v17  ;;  %4891 = vmatpush3.bf16.msra.mxu1 %v6235_v41 }
 0x24c   :  { %4862 = vmatprep.subr.bf16.mxu0 %v6169_v18  ;;  %4892 = vmatprep.subr.bf16.mxu1 %v5933_v40 }
 0x24d   :  { %995 = vmatprep.mubr.f32.mxu0 %v5932_v3  ;;  %4123 = vmatprep.mubr.msk.f32.mxu1 %vm5934_vm0, %v5932_v3 }
 0x24f   :  { %4864 = vmatpush1.bf16.msra.mxu0 %v6189_v25  ;;  %4894 = vmatpush3.bf16.msra.mxu1 %v6266_v51 }
 0x250   :  { %4866 = vmatprep.subr.bf16.mxu0 %v6192_v26  ;;  %4895 = vmatprep.subr.bf16.mxu1 %v5933_v40 }
 0x253   :  { %4868 = vmatpush1.bf16.msra.mxu0 %v6217_v34  ;;  %4897 = vmatpush3.bf16.msra.mxu1 %v6298_v61 }
 0x254   :  { %4870 = vmatprep.subr.bf16.mxu0 %v6220_v35  ;;  %4898 = vmatprep.subr.bf16.mxu1 %v5933_v40 }
 0x257   :  { %4872 = vmatpush1.bf16.msra.mxu0 %v6248_v45  ;;  %4900 = vmatpush3.bf16.msra.mxu1 %v6333_v10 }
 0x258   :  { %4874 = vmatprep.subr.bf16.mxu0 %v6251_v46  ;;  %4901 = vmatprep.subr.bf16.mxu1 %v5933_v40 }
 0x25b   :  { %4876 = vmatpush1.bf16.msra.mxu0 %v6280_v55  ;;  %4903 = vmatpush3.bf16.msra.mxu1 %v6359_v20 }
 0x25c   :  { %4878 = vmatprep.subr.bf16.mxu0 %v6283_v56  ;;  %4904 = vmatprep.subr.bf16.mxu1 %v5933_v40 }
 0x25f   :  { %4880 = vmatpush1.bf16.msra.mxu0 %v6312_v1  ;;  %4906 = vmatpush3.bf16.msra.mxu1 %v6376_v24 }
 0x260   :  { %4882 = vmatprep.subr.bf16.mxu0 %v6318_v4  ;;  %4907 = vmatprep.subr.bf16.mxu1 %v5933_v40 }
 0x263   :  { %4884 = vmatpush1.bf16.msra.mxu0 %v6344_v13  ;;  %4909 = vmatpush3.bf16.msra.mxu1 %v6389_v29 }
 0x264   :  { %4886 = vmatprep.subr.bf16.mxu0 %v6350_v15  ;;  %4910 = vmatprep.subr.bf16.mxu1 %v5933_v40 }
 0x267   :  { %4888 = vmatpush1.bf16.msra.mxu0 %v6372_v23  ;;  %4912 = vmatpush3.bf16.msra.mxu1 %v6403_v32 }
 0x268   :  { %4914 = vmatprep.subr.bf16.mxu0 %v6146_v9  ;;  %4945 = vmatprep.subr.bf16.mxu1 %v5933_v40 }
 0x31d   :  { %v829_v43 = vpop.f32.mrb[4].mxu0  ;;  %v900_v7 = vpop.f32.mrb[12].mxu1 }
 0x31e   :  { %v5682_v8 = vadd.f32 %v6472_v11, %v829_v43  ;;  %v831_v39 = vpop.f32.mrb[5].mxu0  ;;  %v4090_v44 = vpop.f32.mrb[13].mxu1  ;;  %v901_v30 = vadd.f32 %v900_v7, %v6479_v36 }
 0x31f   :  { %v5684_v16 = vadd.f32 %v6474_v14, %v831_v39 }
 0x320   :  { %v3576_v59 = vmul.f32 -1.442695, %v5682_v8 }
 0x321   :  { %v3577_v19 = vmul.f32 -1.442695, %v5684_v16 }
 0x322   :  { %5792 = vpow2.f32 %v3576_v59 }
 0x323   :  { %5794 = vpow2.f32 %v3577_v19 }
 0x32c   :  { %v5793_v21 = vpop.eup %5792 }
 0x32d   :  { %v908_v22 = vadd.f32 1.0, %v5793_v21  ;;  %v5795_v27 = vpop.eup %5794 }
 0x32e   :  { %v915_v28 = vadd.f32 1.0, %v5795_v27 }
 0x32f   :  { %5796 = vrcp.f32 %v908_v22 }
 0x330   :  { %5798 = vrcp.f32 %v915_v28 }
 0x339   :  { %v5797_v31 = vpop.eup %5796 }
 0x33a   :  { %v918_v33 = vmul.f32 %v5797_v31, %v901_v30  ;;  %v5799_v42 = vpop.eup %5798 }
 0x33b   :  { %v921_v47 = vsub.f32 1.0, %v5799_v42  ;;  %v923_v54 = vmul.f32 %v5799_v42, %v6526_v6 }
 0x33c   :  { %v919_v38 = vadd.f32 %v918_v33, %v6451_v50 }
 0x33e   :  { %5800 = vtanh.f32 %v919_v38 }
 0x348   :  { %v5801_v49 = vpop.eup %5800 }
 0x349   :  { %v922_v52 = vmul.f32 %v5801_v49, %v921_v47 }
 0x34b   :  { %v6570_v60 = vadd.f32 %v923_v54, %v922_v52 }
 0x34d   :  { %996 = vmatmul.mubr.f32.vlgmr.msra.gmra.mrb[6].mxu0 %v6570_v60  ;;  %4124 = vmatmul.mubr.f32.vlgmr.msra.gmra.mrb[14].mxu1 %v6570_v60 }
 0x34e   :  { %4916 = vmatpush1.bf16.msra.mxu0 %v6166_v17  ;;  %4947 = vmatpush3.bf16.msra.mxu1 %v6235_v41 }
 0x34f   :  { %4918 = vmatprep.subr.bf16.mxu0 %v6169_v18  ;;  %4948 = vmatprep.subr.bf16.mxu1 %v5933_v40 }
 0x350   :  { %1163 = vmatprep.mubr.f32.mxu0 %v5932_v3  ;;  %4158 = vmatprep.mubr.msk.f32.mxu1 %vm5934_vm0, %v5932_v3 }
 0x352   :  { %4920 = vmatpush1.bf16.msra.mxu0 %v6189_v25  ;;  %4950 = vmatpush3.bf16.msra.mxu1 %v6266_v51 }
 0x353   :  { %4922 = vmatprep.subr.bf16.mxu0 %v6192_v26  ;;  %4951 = vmatprep.subr.bf16.mxu1 %v5933_v40 }
 0x356   :  { %4924 = vmatpush1.bf16.msra.mxu0 %v6217_v34  ;;  %4953 = vmatpush3.bf16.msra.mxu1 %v6298_v61 }
 0x357   :  { %4926 = vmatprep.subr.bf16.mxu0 %v6220_v35  ;;  %4954 = vmatprep.subr.bf16.mxu1 %v5933_v40 }
 0x35a   :  { %4928 = vmatpush1.bf16.msra.mxu0 %v6248_v45  ;;  %4956 = vmatpush3.bf16.msra.mxu1 %v6333_v10 }
 0x35b   :  { %4930 = vmatprep.subr.bf16.mxu0 %v6251_v46  ;;  %4957 = vmatprep.subr.bf16.mxu1 %v5933_v40 }
 0x35e   :  { %4932 = vmatpush1.bf16.msra.mxu0 %v6280_v55  ;;  %4959 = vmatpush3.bf16.msra.mxu1 %v6359_v20 }
 0x35f   :  { %4934 = vmatprep.subr.bf16.mxu0 %v6283_v56  ;;  %4960 = vmatprep.subr.bf16.mxu1 %v5933_v40 }
 0x362   :  { %4936 = vmatpush1.bf16.msra.mxu0 %v6312_v1  ;;  %4962 = vmatpush3.bf16.msra.mxu1 %v6376_v24 }
 0x363   :  { %4938 = vmatprep.subr.bf16.mxu0 %v6318_v4  ;;  %4963 = vmatprep.subr.bf16.mxu1 %v5933_v40 }
 0x366   :  { %4940 = vmatpush1.bf16.msra.mxu0 %v6344_v13  ;;  %4965 = vmatpush3.bf16.msra.mxu1 %v6389_v29 }
 0x367   :  { %4942 = vmatprep.subr.bf16.mxu0 %v6350_v15  ;;  %4966 = vmatprep.subr.bf16.mxu1 %v5933_v40 }
 0x36a   :  { %4944 = vmatpush1.bf16.msra.mxu0 %v6372_v23  ;;  %4968 = vmatpush3.bf16.msra.mxu1 %v6403_v32 }
 0x36b   :  { %4970 = vmatprep.subr.bf16.mxu0 %v6146_v9  ;;  %5001 = vmatprep.subr.bf16.mxu1 %v5933_v40 }
 0x420   :  { %v997_v50 = vpop.f32.mrb[6].mxu0  ;;  %v1068_v63 = vpop.f32.mrb[14].mxu1 }
 0x421   :  { %v5686_v5 = vadd.f32 %v6472_v11, %v997_v50  ;;  %v999_v43 = vpop.f32.mrb[7].mxu0  ;;  %v4125_v7 = vpop.f32.mrb[15].mxu1  ;;  %v1069_v22 = vadd.f32 %v1068_v63, %v6479_v36 }
 0x422   :  { %v5688_v39 = vadd.f32 %v6474_v14, %v999_v43 }
 0x423   :  { %v3578_v8 = vmul.f32 -1.442695, %v5686_v5 }
 0x424   :  { %v3579_v44 = vmul.f32 -1.442695, %v5688_v39 }
 0x425   :  { %5802 = vpow2.f32 %v3578_v8 }
 0x426   :  { %5804 = vpow2.f32 %v3579_v44 }
 0x42f   :  { %v5803_v59 = vpop.eup %5802 }
 0x430   :  { %v1076_v16 = vadd.f32 1.0, %v5803_v59  ;;  %v5805_v19 = vpop.eup %5804 }
 0x431   :  { %v1083_v21 = vadd.f32 1.0, %v5805_v19 }
 0x432   :  { %5806 = vrcp.f32 %v1076_v16 }
 0x433   :  { %5808 = vrcp.f32 %v1083_v21 }
 0x43c   :  { %v5807_v27 = vpop.eup %5806 }
 0x43d   :  { %v1086_v28 = vmul.f32 %v5807_v27, %v1069_v22  ;;  %v5809_v31 = vpop.eup %5808 }
 0x43e   :  { %v1089_v33 = vsub.f32 1.0, %v5809_v31  ;;  %v1091_v47 = vmul.f32 %v5809_v31, %v6570_v60 }
 0x43f   :  { %v1087_v30 = vadd.f32 %v1086_v28, %v6449_v48 }
 0x441   :  { %5810 = vtanh.f32 %v1087_v30 }
 0x44b   :  { %v5811_v38 = vpop.eup %5810 }
 0x44c   :  { %v1090_v42 = vmul.f32 %v5811_v38, %v1089_v33 }
 0x44e   :  { %v6614_v49 = vadd.f32 %v1091_v47, %v1090_v42 }
 0x450   :  { %1164 = vmatmul.mubr.f32.vlgmr.msra.gmra.mrb[8].mxu0 %v6614_v49  ;;  %4159 = vmatmul.mubr.f32.vlgmr.msra.gmra.mrb[16].mxu1 %v6614_v49 }
 0x451   :  { %4972 = vmatpush1.bf16.msra.mxu0 %v6166_v17  ;;  %5003 = vmatpush3.bf16.msra.mxu1 %v6235_v41 }
 0x452   :  { %4974 = vmatprep.subr.bf16.mxu0 %v6169_v18  ;;  %5004 = vmatprep.subr.bf16.mxu1 %v5933_v40 }
 0x453   :  { %1331 = vmatprep.mubr.f32.mxu0 %v5932_v3  ;;  %4193 = vmatprep.mubr.msk.f32.mxu1 %vm5934_vm0, %v5932_v3 }
 0x455   :  { %4976 = vmatpush1.bf16.msra.mxu0 %v6189_v25  ;;  %5006 = vmatpush3.bf16.msra.mxu1 %v6266_v51 }
 0x456   :  { %4978 = vmatprep.subr.bf16.mxu0 %v6192_v26  ;;  %5007 = vmatprep.subr.bf16.mxu1 %v5933_v40 }
 0x459   :  { %4980 = vmatpush1.bf16.msra.mxu0 %v6217_v34  ;;  %5009 = vmatpush3.bf16.msra.mxu1 %v6298_v61 }
 0x45a   :  { %4982 = vmatprep.subr.bf16.mxu0 %v6220_v35  ;;  %5010 = vmatprep.subr.bf16.mxu1 %v5933_v40 }
 0x45d   :  { %4984 = vmatpush1.bf16.msra.mxu0 %v6248_v45  ;;  %5012 = vmatpush3.bf16.msra.mxu1 %v6333_v10 }
 0x45e   :  { %4986 = vmatprep.subr.bf16.mxu0 %v6251_v46  ;;  %5013 = vmatprep.subr.bf16.mxu1 %v5933_v40 }
 0x461   :  { %4988 = vmatpush1.bf16.msra.mxu0 %v6280_v55  ;;  %5015 = vmatpush3.bf16.msra.mxu1 %v6359_v20 }
 0x462   :  { %4990 = vmatprep.subr.bf16.mxu0 %v6283_v56  ;;  %5016 = vmatprep.subr.bf16.mxu1 %v5933_v40 }
 0x465   :  { %4992 = vmatpush1.bf16.msra.mxu0 %v6312_v1  ;;  %5018 = vmatpush3.bf16.msra.mxu1 %v6376_v24 }
 0x466   :  { %4994 = vmatprep.subr.bf16.mxu0 %v6318_v4  ;;  %5019 = vmatprep.subr.bf16.mxu1 %v5933_v40 }
 0x469   :  { %4996 = vmatpush1.bf16.msra.mxu0 %v6344_v13  ;;  %5021 = vmatpush3.bf16.msra.mxu1 %v6389_v29 }
 0x46a   :  { %4998 = vmatprep.subr.bf16.mxu0 %v6350_v15  ;;  %5022 = vmatprep.subr.bf16.mxu1 %v5933_v40 }
 0x46d   :  { %5000 = vmatpush1.bf16.msra.mxu0 %v6372_v23  ;;  %5024 = vmatpush3.bf16.msra.mxu1 %v6403_v32 }
 0x46e   :  { %5026 = vmatprep.subr.bf16.mxu0 %v6146_v9  ;;  %5057 = vmatprep.subr.bf16.mxu1 %v5933_v40 }
 0x523   :  { %v1165_v48 = vpop.f32.mrb[8].mxu0  ;;  %v1236_v52 = vpop.f32.mrb[16].mxu1 }
 0x524   :  { %v5690_v54 = vadd.f32 %v6472_v11, %v1165_v48  ;;  %v1167_v50 = vpop.f32.mrb[9].mxu0  ;;  %v4160_v63 = vpop.f32.mrb[17].mxu1  ;;  %v1237_v16 = vadd.f32 %v1236_v52, %v6479_v36 }
 0x525   :  { %v5692_v43 = vadd.f32 %v6474_v14, %v1167_v50 }
 0x526   :  { %v3580_v5 = vmul.f32 -1.442695, %v5690_v54 }
 0x527   :  { %v3581_v7 = vmul.f32 -1.442695, %v5692_v43 }
 0x528   :  { %5812 = vpow2.f32 %v3580_v5 }
 0x529   :  { %5814 = vpow2.f32 %v3581_v7 }
 0x532   :  { %v5813_v8 = vpop.eup %5812 }
 0x533   :  { %v1244_v39 = vadd.f32 1.0, %v5813_v8  ;;  %v5815_v44 = vpop.eup %5814 }
 0x534   :  { %v1251_v59 = vadd.f32 1.0, %v5815_v44 }
 0x535   :  { %5816 = vrcp.f32 %v1244_v39 }
 0x536   :  { %5818 = vrcp.f32 %v1251_v59 }
 0x53f   :  { %v5817_v19 = vpop.eup %5816 }
 0x540   :  { %v1254_v21 = vmul.f32 %v5817_v19, %v1237_v16  ;;  %v5819_v27 = vpop.eup %5818 }
 0x541   :  { %v1257_v28 = vsub.f32 1.0, %v5819_v27  ;;  %v1259_v33 = vmul.f32 %v5819_v27, %v6614_v49 }
 0x542   :  { %v1255_v22 = vadd.f32 %v1254_v21, %v6455_v57 }
 0x544   :  { %5820 = vtanh.f32 %v1255_v22 }
 0x54e   :  { %v5821_v30 = vpop.eup %5820 }
 0x54f   :  { %v1258_v31 = vmul.f32 %v5821_v30, %v1257_v28  ;;  %v1776_v30 = vld [vmem:[%s7568_s5] sm:$0xff] }
 0x551   :  { %v6658_v38 = vadd.f32 %v1259_v33, %v1258_v31  ;;  %v1779_v31 = vld [vmem:[%s7568_s5 + $0x18] sm:$0xff] }
 0x553   :  { %1332 = vmatmul.mubr.f32.vlgmr.msra.gmra.mrb[10].mxu0 %v6658_v38  ;;  %4194 = vmatmul.mubr.f32.vlgmr.msra.gmra.mrb[18].mxu1 %v6658_v38 }
 0x554   :  { %5028 = vmatpush1.bf16.msra.mxu0 %v6166_v17  ;;  %5059 = vmatpush3.bf16.msra.mxu1 %v6235_v41 }
 0x555   :  { %5030 = vmatprep.subr.bf16.mxu0 %v6169_v18  ;;  %5060 = vmatprep.subr.bf16.mxu1 %v5933_v40 }
 0x556   :  { %1499 = vmatprep.mubr.f32.mxu0 %v5932_v3  ;;  %4228 = vmatprep.mubr.msk.f32.mxu1 %vm5934_vm0, %v5932_v3 }
 0x558   :  { %5032 = vmatpush1.bf16.msra.mxu0 %v6189_v25  ;;  %5062 = vmatpush3.bf16.msra.mxu1 %v6266_v51 }
 0x559   :  { %5034 = vmatprep.subr.bf16.mxu0 %v6192_v26  ;;  %5063 = vmatprep.subr.bf16.mxu1 %v5933_v40 }
 0x55c   :  { %5036 = vmatpush1.bf16.msra.mxu0 %v6217_v34  ;;  %5065 = vmatpush3.bf16.msra.mxu1 %v6298_v61 }
 0x55d   :  { %5038 = vmatprep.subr.bf16.mxu0 %v6220_v35  ;;  %5066 = vmatprep.subr.bf16.mxu1 %v5933_v40 }
 0x560   :  { %5040 = vmatpush1.bf16.msra.mxu0 %v6248_v45  ;;  %5068 = vmatpush3.bf16.msra.mxu1 %v6333_v10 }
 0x561   :  { %5042 = vmatprep.subr.bf16.mxu0 %v6251_v46  ;;  %5069 = vmatprep.subr.bf16.mxu1 %v5933_v40 }
 0x564   :  { %5044 = vmatpush1.bf16.msra.mxu0 %v6280_v55  ;;  %5071 = vmatpush3.bf16.msra.mxu1 %v6359_v20 }
 0x565   :  { %5046 = vmatprep.subr.bf16.mxu0 %v6283_v56  ;;  %5072 = vmatprep.subr.bf16.mxu1 %v5933_v40 }
 0x568   :  { %5048 = vmatpush1.bf16.msra.mxu0 %v6312_v1  ;;  %5074 = vmatpush3.bf16.msra.mxu1 %v6376_v24 }
 0x569   :  { %5050 = vmatprep.subr.bf16.mxu0 %v6318_v4  ;;  %5075 = vmatprep.subr.bf16.mxu1 %v5933_v40 }
 0x56c   :  { %5052 = vmatpush1.bf16.msra.mxu0 %v6344_v13  ;;  %5077 = vmatpush3.bf16.msra.mxu1 %v6389_v29 }
 0x56d   :  { %5054 = vmatprep.subr.bf16.mxu0 %v6350_v15  ;;  %5078 = vmatprep.subr.bf16.mxu1 %v5933_v40 }
 0x570   :  { %5056 = vmatpush1.bf16.msra.mxu0 %v6372_v23  ;;  %5080 = vmatpush3.bf16.msra.mxu1 %v6403_v32 }
 0x571   :  { %5082 = vmatprep.subr.bf16.mxu0 %v6146_v9  ;;  %5113 = vmatprep.subr.bf16.mxu1 %v5933_v40 }
 0x626   :  { %v1333_v57 = vpop.f32.mrb[10].mxu0  ;;  %v1404_v42 = vpop.f32.mrb[18].mxu1 }
 0x627   :  { %v5694_v47 = vadd.f32 %v6472_v11, %v1333_v57  ;;  %v1335_v48 = vpop.f32.mrb[11].mxu0  ;;  %v4195_v52 = vpop.f32.mrb[19].mxu1  ;;  %v1405_v9 = vadd.f32 %v1404_v42, %v6479_v36  ;;  %v1783_v57 = vld [vmem:[%s7568_s5 + $0x38] sm:$0xff] }
 0x628   :  { %v5696_v50 = vadd.f32 %v6474_v14, %v1335_v48  ;;  %v1784_v48 = vld [vmem:[%s7568_s5 + $0x40] sm:$0xff]  ;;  %v1787_v52 = vld [vmem:[%s7568_s5 + $0x58] sm:$0xff] }
 0x629   :  { %v3582_v54 = vmul.f32 -1.442695, %v5694_v47 }
 0x62a   :  { %v3583_v63 = vmul.f32 -1.442695, %v5696_v50 }
 0x62b   :  { %5822 = vpow2.f32 %v3582_v54  ;;  %v5139_v54 = vpack.c.bf16 %v1779_v31, %v1776_v30  ;;  %v1806_v30 = vld [vmem:[%s7568_s5 + $0xf0] sm:$0xff]  ;;  %v1809_v31 = vld [vmem:[%s7568_s5 + $0x108] sm:$0xff] }
 0x62c   :  { %5824 = vpow2.f32 %v3583_v63 }
 0x635   :  { %v5823_v5 = vpop.eup %5822 }
 0x636   :  { %v1412_v43 = vadd.f32 1.0, %v5823_v5  ;;  %v5825_v7 = vpop.eup %5824  ;;  %v1782_v5 = vld [vmem:[%s7568_s5 + $0x30] sm:$0xff] }
 0x637   :  { %v1419_v8 = vadd.f32 1.0, %v5825_v7  ;;  %v1789_v7 = vld [vmem:[%s7568_s5 + $0x68] sm:$0xff] }
 0x638   :  { %5826 = vrcp.f32 %v1412_v43  ;;  %v1785_v43 = vld [vmem:[%s7568_s5 + $0x48] sm:$0xff] }
 0x639   :  { %5828 = vrcp.f32 %v1419_v8  ;;  %v5173_v8 = vpack.c.bf16 %v1787_v52, %v1784_v48 }
 0x642   :  { %v5827_v39 = vpop.eup %5826 }
 0x643   :  { %v1422_v44 = vmul.f32 %v5827_v39, %v1405_v9  ;;  %v5829_v16 = vpop.eup %5828  ;;  %v1792_v9 = vld [vmem:[%s7568_s5 + $0x80] sm:$0xff]  ;;  %v1790_v39 = vld [vmem:[%s7568_s5 + $0x70] sm:$0xff] }
 0x644   :  { %v1425_v19 = vsub.f32 1.0, %v5829_v16  ;;  %v1427_v27 = vmul.f32 %v5829_v16, %v6658_v38  ;;  %v5145_v16 = vpack.c.bf16 %v1792_v9, %v1789_v7  ;;  %v1820_v7 = vld [vmem:[%s7568_s5 + $0x160] sm:$0xff] }
 0x645   :  { %v1423_v59 = vadd.f32 %v1422_v44, %v6453_v53  ;;  %v1793_v44 = vld [vmem:[%s7568_s5 + $0x88] sm:$0xff] }
 0x647   :  { %5830 = vtanh.f32 %v1423_v59  ;;  %v5143_v59 = vpack.c.bf16 %v1785_v43, %v1782_v5  ;;  %v1819_v5 = vld [vmem:[%s7568_s5 + $0x158] sm:$0xff]  ;;  %v1822_v43 = vld [vmem:[%s7568_s5 + $0x170] sm:$0xff] }
 0x651   :  { %v5831_v21 = vpop.eup %5830 }
 0x652   :  { %v1426_v22 = vmul.f32 %v5831_v21, %v1425_v19  ;;  %v5177_v19 = vpack.c.bf16 %v1793_v44, %v1790_v39  ;;  %v1788_v21 = vld [vmem:[%s7568_s5 + $0x60] sm:$0xff]  ;;  %v5165_v39 = vpack.c.bf16 %v1822_v43, %v1819_v5  ;;  %v2126_v43 = vld [vmem:[%s7569_s6 + $0x158] sm:$0xff] }
 0x654   :  { %v6702_v28 = vadd.f32 %v1427_v27, %v1426_v22  ;;  %v1791_v22 = vld [vmem:[%s7568_s5 + $0x78] sm:$0xff] }
 0x655   :  { %v1795_v27 = vld [vmem:[%s7568_s5 + $0x98] sm:$0xff] }
 0x656   :  { %1500 = vmatmul.mubr.f32.vlgmr.msra.gmra.mrb[12].mxu0 %v6702_v28  ;;  %4229 = vmatmul.mubr.f32.vlgmr.msra.gmra.mrb[20].mxu1 %v6702_v28 }
 0x657   :  { %5084 = vmatpush1.bf16.msra.mxu0 %v6166_v17  ;;  %5115 = vmatpush3.bf16.msra.mxu1 %v6235_v41  ;;  %v1777_v17 = vld [vmem:[%s7568_s5 + $0x8] sm:$0xff] }
 0x658   :  { %5086 = vmatprep.subr.bf16.mxu0 %v6169_v18  ;;  %5116 = vmatprep.subr.bf16.mxu1 %v5933_v40  ;;  %v1780_v18 = vld [vmem:[%s7568_s5 + $0x20] sm:$0xff] }
 0x659   :  { %1667 = vmatprep.mubr.f32.mxu0 %v5932_v3  ;;  %4263 = vmatprep.mubr.msk.f32.mxu1 %vm5934_vm0, %v5932_v3 }
 0x65b   :  { %5088 = vmatpush1.bf16.msra.mxu0 %v6189_v25  ;;  %5118 = vmatpush3.bf16.msra.mxu1 %v6266_v51  ;;  %v1778_v25 = vld [vmem:[%s7568_s5 + $0x10] sm:$0xff] }
 0x65c   :  { %5090 = vmatprep.subr.bf16.mxu0 %v6192_v26  ;;  %5119 = vmatprep.subr.bf16.mxu1 %v5933_v40  ;;  %v5137_v26 = vpack.c.bf16 %v1780_v18, %v1777_v17  ;;  %v1798_v17 = vld [vmem:[%s7568_s5 + $0xb0] sm:$0xff]  ;;  %v1796_v18 = vld [vmem:[%s7568_s5 + $0xa0] sm:$0xff] }
 0x65f   :  { %5092 = vmatpush1.bf16.msra.mxu0 %v6217_v34  ;;  %5121 = vmatpush3.bf16.msra.mxu1 %v6298_v61  ;;  %v1781_v34 = vld [vmem:[%s7568_s5 + $0x28] sm:$0xff] }
 0x660   :  { %5094 = vmatprep.subr.bf16.mxu0 %v6220_v35  ;;  %5122 = vmatprep.subr.bf16.mxu1 %v5933_v40  ;;  %v5169_v35 = vpack.c.bf16 %v1781_v34, %v1778_v25  ;;  %v1799_v25 = vld [vmem:[%s7568_s5 + $0xb8] sm:$0xff]  ;;  %v5149_v34 = vpack.c.bf16 %v1798_v17, %v1795_v27  ;;  %v2089_v17 = vld [vmem:[%s7569_s6 + $0x30] sm:$0xff] }
 0x663   :  { %5096 = vmatpush1.bf16.msra.mxu0 %v6248_v45  ;;  %5124 = vmatpush3.bf16.msra.mxu1 %v6333_v10 }
 0x664   :  { %5098 = vmatprep.subr.bf16.mxu0 %v6251_v46  ;;  %5125 = vmatprep.subr.bf16.mxu1 %v5933_v40 }
 0x667   :  { %5100 = vmatpush1.bf16.msra.mxu0 %v6280_v55  ;;  %5127 = vmatpush3.bf16.msra.mxu1 %v6359_v20 }
 0x668   :  { %5102 = vmatprep.subr.bf16.mxu0 %v6283_v56  ;;  %5128 = vmatprep.subr.bf16.mxu1 %v5933_v40 }
 0x66b   :  { %5104 = vmatpush1.bf16.msra.mxu0 %v6312_v1  ;;  %5130 = vmatpush3.bf16.msra.mxu1 %v6376_v24 }
 0x66c   :  { %5106 = vmatprep.subr.bf16.mxu0 %v6318_v4  ;;  %5131 = vmatprep.subr.bf16.mxu1 %v5933_v40 }
 0x66f   :  { %5108 = vmatpush1.bf16.msra.mxu0 %v6344_v13  ;;  %5133 = vmatpush3.bf16.msra.mxu1 %v6389_v29 }
 0x670   :  { %5110 = vmatprep.subr.bf16.mxu0 %v6350_v15  ;;  %5134 = vmatprep.subr.bf16.mxu1 %v5933_v40 }
 0x673   :  { %5112 = vmatpush1.bf16.msra.mxu0 %v6372_v23  ;;  %5136 = vmatpush3.bf16.msra.mxu1 %v6403_v32 }
 0x674   :  { %5138 = vmatprep.subr.bf16.mxu0 %v5137_v26  ;;  %5170 = vmatprep.subr.bf16.mxu1 %v5169_v35  ;;  %v5147_v26 = vpack.c.bf16 %v1791_v22, %v1788_v21  ;;  %v2090_v21 = vld [vmem:[%s7569_s6 + $0x38] sm:$0xff]  ;;  %v2093_v22 = vld [vmem:[%s7569_s6 + $0x50] sm:$0xff] }
 0x675   :  { %v6939_v27 = vpack.c.bf16 %v2093_v22, %v2090_v21  ;;  %v2106_v21 = vld [vmem:[%s7569_s6 + $0xb8] sm:$0xff] }
 0x729   :  { %v1501_v41 = vpop.f32.mrb[12].mxu0  ;;  %v1572_v45 = vpop.f32.mrb[20].mxu1 }
 0x72a   :  { %v5698_v46 = vadd.f32 %v6472_v11, %v1501_v41  ;;  %v1503_v51 = vpop.f32.mrb[13].mxu0  ;;  %v4230_v55 = vpop.f32.mrb[21].mxu1  ;;  %v1573_v20 = vadd.f32 %v1572_v45, %v6479_v36  ;;  %v1794_v41 = vld [vmem:[%s7568_s5 + $0x90] sm:$0xff]  ;;  %v1797_v45 = vld [vmem:[%s7568_s5 + $0xa8] sm:$0xff] }
 0x72b   :  { %v5700_v61 = vadd.f32 %v6474_v14, %v1503_v51  ;;  %v1804_v51 = vld [vmem:[%s7568_s5 + $0xe0] sm:$0xff]  ;;  %v1802_v55 = vld [vmem:[%s7568_s5 + $0xd0] sm:$0xff] }
 0x72c   :  { %v3584_v56 = vmul.f32 -1.442695, %v5698_v46  ;;  %v1801_v46 = vld [vmem:[%s7568_s5 + $0xc8] sm:$0xff] }
 0x72d   :  { %v3585_v1 = vmul.f32 -1.442695, %v5700_v61  ;;  %v5151_v61 = vpack.c.bf16 %v1797_v45, %v1794_v41  ;;  %v2095_v41 = vld [vmem:[%s7569_s6 + $0x60] sm:$0xff]  ;;  %v2098_v45 = vld [vmem:[%s7569_s6 + $0x78] sm:$0xff] }
 0x72e   :  { %5832 = vpow2.f32 %v3584_v56  ;;  %v1805_v56 = vld [vmem:[%s7568_s5 + $0xe8] sm:$0xff] }
 0x72f   :  { %5834 = vpow2.f32 %v3585_v1  ;;  %v5153_v1 = vpack.c.bf16 %v1804_v51, %v1801_v46  ;;  %v6965_v46 = vpack.c.bf16 %v2098_v45, %v2095_v41  ;;  %v2102_v51 = vld [vmem:[%s7569_s6 + $0x98] sm:$0xff] }
 0x730   :  { %v2118_v41 = vld [vmem:[%s7569_s6 + $0x118] sm:$0xff] }
 0x738   :  { %v5833_v4 = vpop.eup %5832 }
 0x739   :  { %v1580_v10 = vadd.f32 1.0, %v5833_v4  ;;  %v5835_v13 = vpop.eup %5834  ;;  %v5185_v4 = vpack.c.bf16 %v1805_v56, %v1802_v55  ;;  %v2105_v55 = vld [vmem:[%s7569_s6 + $0xb0] sm:$0xff] }
 0x73a   :  { %v1587_v15 = vadd.f32 1.0, %v5835_v13  ;;  %v1803_v13 = vld [vmem:[%s7568_s5 + $0xd8] sm:$0xff]  ;;  %v6975_v56 = vpack.c.bf16 %v2105_v55, %v2102_v51  ;;  %v2121_v51 = vld [vmem:[%s7569_s6 + $0x130] sm:$0xff]  ;;  %v2124_v55 = vld [vmem:[%s7569_s6 + $0x148] sm:$0xff] }
 0x73b   :  { %5836 = vrcp.f32 %v1580_v10  ;;  %v1800_v10 = vld [vmem:[%s7568_s5 + $0xc0] sm:$0xff] }
 0x73c   :  { %5838 = vrcp.f32 %v1587_v15  ;;  %v1807_v15 = vld [vmem:[%s7568_s5 + $0xf8] sm:$0xff] }
 0x745   :  { %v5837_v23 = vpop.eup %5836 }
 0x746   :  { %v1590_v24 = vmul.f32 %v5837_v23, %v1573_v20  ;;  %v5839_v32 = vpop.eup %5838  ;;  %v1810_v20 = vld [vmem:[%s7568_s5 + $0x110] sm:$0xff]  ;;  %v1808_v23 = vld [vmem:[%s7568_s5 + $0x100] sm:$0xff] }
 0x747   :  { %v1593_v53 = vsub.f32 1.0, %v5839_v32  ;;  %v1595_v47 = vmul.f32 %v5839_v32, %v6702_v28  ;;  %v5157_v32 = vpack.c.bf16 %v1810_v20, %v1807_v15  ;;  %v2107_v20 = vld [vmem:[%s7569_s6 + $0xc0] sm:$0xff] }
 0x748   :  { %v1591_v29 = vadd.f32 %v1590_v24, %v6466_v2  ;;  %v1786_v2 = vld [vmem:[%s7568_s5 + $0x50] sm:$0xff]  ;;  %v1811_v24 = vld [vmem:[%s7568_s5 + $0x118] sm:$0xff] }
 0x749   :  { %v5141_v63 = vpack.c.bf16 %v1786_v2, %v1783_v57  ;;  %v1816_v57 = vld [vmem:[%s7568_s5 + $0x140] sm:$0xff]  ;;  %v1814_v2 = vld [vmem:[%s7568_s5 + $0x130] sm:$0xff] }
 0x74a   :  { %5840 = vtanh.f32 %v1591_v29  ;;  %v5155_v29 = vpack.c.bf16 %v1803_v13, %v1800_v10  ;;  %v2108_v10 = vld [vmem:[%s7569_s6 + $0xc8] sm:$0xff]  ;;  %v2111_v13 = vld [vmem:[%s7569_s6 + $0xe0] sm:$0xff] }
 0x74b   :  { %v6993_v15 = vpack.c.bf16 %v2111_v13, %v2108_v10  ;;  %v2130_v10 = vld [vmem:[%s7569_s6 + $0x178] sm:$0xff] }
 0x754   :  { %v5841_v33 = vpop.eup %5840 }
 0x755   :  { %v1594_v42 = vmul.f32 %v5841_v33, %v1593_v53  ;;  %v5189_v53 = vpack.c.bf16 %v1811_v24, %v1808_v23  ;;  %v1813_v33 = vld [vmem:[%s7568_s5 + $0x128] sm:$0xff]  ;;  %v2110_v23 = vld [vmem:[%s7569_s6 + $0xd8] sm:$0xff] }
 0x756   :  { %v5161_v48 = vpack.c.bf16 %v1816_v57, %v1813_v33  ;;  %v7001_v24 = vpack.c.bf16 %v2110_v23, %v2107_v20  ;;  %v2120_v57 = vld [vmem:[%s7569_s6 + $0x128] sm:$0xff] }
 0x757   :  { %v6774_v50 = vadd.f32 %v1595_v47, %v1594_v42  ;;  %v1817_v42 = vld [vmem:[%s7568_s5 + $0x148] sm:$0xff]  ;;  %v5159_v47 = vpack.c.bf16 %v1809_v31, %v1806_v30  ;;  %v2113_v30 = vld [vmem:[%s7569_s6 + $0xf0] sm:$0xff] }
 0x758   :  { %v5193_v52 = vpack.c.bf16 %v1817_v42, %v1814_v2  ;;  %v2116_v31 = vld [vmem:[%s7569_s6 + $0x108] sm:$0xff]  ;;  %v2123_v2 = vld [vmem:[%s7569_s6 + $0x140] sm:$0xff] }
 0x759   :  { %1668 = vmatmul.mubr.f32.vlgmr.msra.gmra.mrb[14].mxu0 %v6774_v50  ;;  %4264 = vmatmul.mubr.f32.vlgmr.msra.gmra.mrb[22].mxu1 %v6774_v50  ;;  %v7019_v33 = vpack.c.bf16 %v2116_v31, %v2113_v30  ;;  %v2119_v42 = vld [vmem:[%s7569_s6 + $0x120] sm:$0xff] }
 0x75a   :  { %5140 = vmatpush1.bf16.msra.mxu0 %v5139_v54  ;;  %5172 = vmatpush3.bf16.msra.mxu1 %v5169_v35  ;;  %v5181_v35 = vpack.c.bf16 %v1799_v25, %v1796_v18  ;;  %v1812_v54 = vld [vmem:[%s7568_s5 + $0x120] sm:$0xff]  ;;  %v2092_v18 = vld [vmem:[%s7569_s6 + $0x48] sm:$0xff] }
 0x75b   :  { %4298 = vmatprep.mubr.f32.mxu1 %v6482_v12  ;;  %5142 = vmatprep.subr.bf16.mxu0 %v5141_v63  ;;  %v1815_v63 = vld [vmem:[%s7568_s5 + $0x138] sm:$0xff]  ;;  %v6947_v25 = vpack.c.bf16 %v2092_v18, %v2089_v17  ;;  %v2109_v17 = vld [vmem:[%s7569_s6 + $0xd0] sm:$0xff]  ;;  %v2112_v18 = vld [vmem:[%s7569_s6 + $0xe8] sm:$0xff] }
 0x75c   :  { %5174 = vmatprep.subr.bf16.mxu1 %v5173_v8  ;;  %1905 = vmatprep.mubr.f32.mxu0 %v5932_v3  ;;  %v5163_v9 = vpack.c.bf16 %v1815_v63, %v1812_v54  ;;  %v2088_v54 = vld [vmem:[%s7569_s6 + $0x28] sm:$0xff] }
 0x75e   :  { %5144 = vmatpush1.bf16.msra.mxu0 %v5143_v59  ;;  %5176 = vmatpush3.bf16.msra.mxu1 %v5173_v8  ;;  %v1823_v8 = vld [vmem:[%s7568_s5 + $0x178] sm:$0xff]  ;;  %v1818_v59 = vld [vmem:[%s7568_s5 + $0x150] sm:$0xff] }
 0x75f   :  { %5146 = vmatprep.subr.bf16.mxu0 %v5145_v16  ;;  %5178 = vmatprep.subr.bf16.mxu1 %v5177_v19  ;;  %v5197_v44 = vpack.c.bf16 %v1823_v8, %v1820_v7  ;;  %v1821_v16 = vld [vmem:[%s7568_s5 + $0x168] sm:$0xff]  ;;  %v2129_v7 = vld [vmem:[%s7569_s6 + $0x170] sm:$0xff] }
 0x760   :  { %v7056_v8 = vpack.c.bf16 %v2129_v7, %v2126_v43 }
 0x762   :  { %5148 = vmatpush1.bf16.msra.mxu0 %v5147_v26  ;;  %5180 = vmatpush3.bf16.msra.mxu1 %v5177_v19  ;;  %v5167_v19 = vpack.c.bf16 %v1821_v16, %v1818_v59  ;;  %v2096_v26 = vld [vmem:[%s7569_s6 + $0x68] sm:$0xff]  ;;  %v2091_v59 = vld [vmem:[%s7569_s6 + $0x40] sm:$0xff]  ;;  %v2094_v16 = vld [vmem:[%s7569_s6 + $0x58] sm:$0xff] }
 0x763   :  { %5150 = vmatprep.subr.bf16.mxu0 %v5149_v34  ;;  %5182 = vmatprep.subr.bf16.mxu1 %v5181_v35  ;;  %v2099_v34 = vld [vmem:[%s7569_s6 + $0x80] sm:$0xff] }
 0x766   :  { %5152 = vmatpush1.bf16.msra.mxu0 %v5151_v61  ;;  %5184 = vmatpush3.bf16.msra.mxu1 %v5181_v35  ;;  %v6957_v35 = vpack.c.bf16 %v2099_v34, %v2096_v26  ;;  %v2101_v61 = vld [vmem:[%s7569_s6 + $0x90] sm:$0xff]  ;;  %v7105_v26 = vpack.c.bf16 %v2112_v18, %v2109_v17  ;;  %v2115_v34 = vld [vmem:[%s7569_s6 + $0x100] sm:$0xff] }
 0x767   :  { %5154 = vmatprep.subr.bf16.mxu0 %v5153_v1  ;;  %5186 = vmatprep.subr.bf16.mxu1 %v5185_v4  ;;  %v2104_v1 = vld [vmem:[%s7569_s6 + $0xa8] sm:$0xff]  ;;  %v7115_v45 = vpack.c.bf16 %v2118_v41, %v2115_v34  ;;  %v1824_v34 = vld [vmem:[%s7571_s7] sm:$0x7] }
 0x768   :  { %v1829_v41 = vrot.slane %v1824_v34, %v6457_v58 }
 0x76a   :  { %5156 = vmatpush1.bf16.msra.mxu0 %v5155_v29  ;;  %5188 = vmatpush3.bf16.msra.mxu1 %v5185_v4  ;;  %v6983_v4 = vpack.c.bf16 %v2104_v1, %v2101_v61  ;;  %v2114_v29 = vld [vmem:[%s7569_s6 + $0xf8] sm:$0xff]  ;;  %v7125_v61 = vpack.c.bf16 %v2124_v55, %v2121_v51  ;;  %v2127_v1 = vld [vmem:[%s7569_s6 + $0x160] sm:$0xff] }
 0x76b   :  { %5158 = vmatprep.subr.bf16.mxu0 %v5157_v32  ;;  %5190 = vmatprep.subr.bf16.mxu1 %v5189_v53  ;;  %v2117_v32 = vld [vmem:[%s7569_s6 + $0x110] sm:$0xff]  ;;  %v7135_v13 = vpack.c.bf16 %v2130_v10, %v2127_v1  ;;  %v1833_v1 = vrot.slane %v1824_v34, %v6464_v0 }
 0x76e   :  { %5160 = vmatpush1.bf16.msra.mxu0 %v5159_v47  ;;  %5192 = vmatpush3.bf16.msra.mxu1 %v5189_v53  ;;  %v7011_v53 = vpack.c.bf16 %v2117_v32, %v2114_v29  ;;  %v7032_v47 = vpack.c.bf16 %v2123_v2, %v2120_v57 }
 0x76f   :  { %5162 = vmatprep.subr.bf16.mxu0 %v5161_v48  ;;  %5194 = vmatprep.subr.bf16.mxu1 %v5193_v52  ;;  %v2122_v48 = vld [vmem:[%s7569_s6 + $0x138] sm:$0xff] }
 0x770   :  { %v7043_v63 = vpack.c.bf16 %v2122_v48, %v2119_v42 }
 0x772   :  { %5164 = vmatpush1.bf16.msra.mxu0 %v5163_v9  ;;  %5196 = vmatpush3.bf16.msra.mxu1 %v5193_v52  ;;  %v2085_v52 = vld [vmem:[%s7569_s6 + $0x10] sm:$0xff] }
 0x773   :  { %5166 = vmatprep.subr.bf16.mxu0 %v5165_v39  ;;  %5198 = vmatprep.subr.bf16.mxu1 %v5197_v44  ;;  %v7045_v5 = vpack.c.bf16 %v2088_v54, %v2085_v52  ;;  %v2125_v9 = vld [vmem:[%s7569_s6 + $0x150] sm:$0xff]  ;;  %v2128_v39 = vld [vmem:[%s7569_s6 + $0x168] sm:$0xff] }
 0x776   :  { %5168 = vmatpush1.bf16.msra.mxu0 %v5167_v19  ;;  %5200 = vmatpush3.bf16.msra.mxu1 %v5197_v44  ;;  %v7065_v44 = vpack.c.bf16 %v2128_v39, %v2125_v9  ;;  %v7074_v19 = vpack.c.bf16 %v2094_v16, %v2091_v59 }
 0x777   :  { %5233 = vmatprep.subr.bf16.mxu1 %v5933_v40 }
 0x779   :  { %1906 = vmatmul.mubr.f32.vlgmr.msra.gmra.mrb[16].mxu0 %v6482_v12  ;;  %4299 = vmatmul.mubr.f32.vlgmr.msra.gmra.mrb[24].mxu1 %v6526_v6  ;;  %v2084_v12 = vld [vmem:[%s7569_s6 + $0x8] sm:$0xff] }
 0x77a   :  { %4301 = vmatprep.mubr.f32.mxu1 %v6570_v60  ;;  %1911 = vmatprep.mubr.f32.mxu0 %v5932_v3 }
 0x77b   :  { %5235 = vmatpush3.bf16.msra.mxu1 %v7045_v5 }
 0x77c   :  { %5236 = vmatprep.subr.bf16.mxu1 %v5933_v40 }
 0x77d   :  { %1912 = vmatmul.mubr.f32.gmra.mrb[18].mxu0 %v6526_v6  ;;  %4302 = vmatmul.mubr.f32.gmra.mrb[26].mxu1 %v6614_v49  ;;  %v2087_v6 = vld [vmem:[%s7569_s6 + $0x20] sm:$0xff] }
 0x77e   :  { %4304 = vmatprep.mubr.f32.mxu1 %v6658_v38  ;;  %1917 = vmatprep.mubr.f32.mxu0 %v5932_v3 }
 0x77f   :  { %5238 = vmatpush3.bf16.msra.mxu1 %v7074_v19 }
 0x780   :  { %5239 = vmatprep.subr.bf16.mxu1 %v5933_v40 }
 0x781   :  { %1918 = vmatmul.mubr.f32.gmra.mrb[20].mxu0 %v6570_v60  ;;  %4305 = vmatmul.mubr.f32.gmra.mrb[28].mxu1 %v6702_v28  ;;  %v6921_v60 = vpack.c.bf16 %v2087_v6, %v2084_v12  ;;  %v2097_v12 = vld [vmem:[%s7569_s6 + $0x70] sm:$0xff]  ;;  %v2100_v6 = vld [vmem:[%s7569_s6 + $0x88] sm:$0xff] }
 0x782   :  { %4307 = vmatprep.mubr.f32.mxu1 %v6774_v50  ;;  %1923 = vmatprep.mubr.f32.mxu0 %v5932_v3 }
 0x783   :  { %5202 = vmatprep.subr.bf16.mxu0 %v6921_v60 }
 0x785   :  { %1924 = vmatmul.mubr.f32.gmra.mrb[22].mxu0 %v6614_v49  ;;  %v2083_v49 = vld [vmem:[%s7569_s6] sm:$0xff] }
 0x786   :  { %1929 = vmatprep.mubr.f32.mxu0 %v5932_v3 }
 0x789   :  { %1930 = vmatmul.mubr.f32.gmra.mrb[24].mxu0 %v6658_v38  ;;  %v2086_v38 = vld [vmem:[%s7569_s6 + $0x18] sm:$0xff] }
 0x78a   :  { %1935 = vmatprep.mubr.f32.mxu0 %v5932_v3 }
 0x78d   :  { %1936 = vmatmul.mubr.f32.gmra.mrb[26].mxu0 %v6702_v28  ;;  %v6929_v28 = vpack.c.bf16 %v2086_v38, %v2083_v49  ;;  %v2103_v49 = vld [vmem:[%s7569_s6 + $0xa0] sm:$0xff]  ;;  %v7089_v38 = vpack.c.bf16 %v2100_v6, %v2097_v12 }
 0x78e   :  { %1941 = vmatprep.mubr.f32.mxu0 %v5932_v3  ;;  %v7095_v22 = vpack.c.bf16 %v2106_v21, %v2103_v49 }
 0x78f   :  { %5204 = vmatpush1.bf16.msra.mxu0 %v6929_v28  ;;  %5241 = vmatpush3.bf16.msra.mxu1 %v7089_v38 }
 0x790   :  { %5206 = vmatprep.subr.bf16.mxu0 %v6939_v27  ;;  %5242 = vmatprep.subr.bf16.mxu1 %v5933_v40 }
 0x791   :  { %1942 = vmatmul.mubr.f32.gmra.mrb[28].mxu0 %v6774_v50 }
 0x792   :  { %1947 = vmatprep.mubr.f32.mxu0 %v5932_v3 }
 0x793   :  { %5208 = vmatpush1.bf16.msra.mxu0 %v6947_v25  ;;  %5244 = vmatpush3.bf16.msra.mxu1 %v7095_v22 }
 0x794   :  { %5210 = vmatprep.subr.bf16.mxu0 %v6957_v35  ;;  %5245 = vmatprep.subr.bf16.mxu1 %v5933_v40 }
 0x797   :  { %5212 = vmatpush1.bf16.msra.mxu0 %v6965_v46  ;;  %5247 = vmatpush3.bf16.msra.mxu1 %v7105_v26 }
 0x798   :  { %5214 = vmatprep.subr.bf16.mxu0 %v6975_v56  ;;  %5248 = vmatprep.subr.bf16.mxu1 %v5933_v40 }
 0x79b   :  { %5216 = vmatpush1.bf16.msra.mxu0 %v6983_v4  ;;  %5250 = vmatpush3.bf16.msra.mxu1 %v7115_v45 }
 0x79c   :  { %5218 = vmatprep.subr.bf16.mxu0 %v6993_v15  ;;  %5251 = vmatprep.subr.bf16.mxu1 %v5933_v40 }
 0x79f   :  { %5220 = vmatpush1.bf16.msra.mxu0 %v7001_v24  ;;  %5253 = vmatpush3.bf16.msra.mxu1 %v7125_v61 }
 0x7a0   :  { %5222 = vmatprep.subr.bf16.mxu0 %v7011_v53  ;;  %5254 = vmatprep.subr.bf16.mxu1 %v5933_v40 }
 0x7a3   :  { %5224 = vmatpush1.bf16.msra.mxu0 %v7019_v33  ;;  %5256 = vmatpush3.bf16.msra.mxu1 %v7135_v13 }
 0x7a4   :  { %5226 = vmatprep.subr.bf16.mxu0 %v7032_v47  ;;  %5289 = vmatprep.subr.bf16.mxu1 %v5933_v40 }
 0x7a7   :  { %5228 = vmatpush1.bf16.msra.mxu0 %v7043_v63 }
 0x7a8   :  { %5230 = vmatprep.subr.bf16.mxu0 %v7056_v8 }
 0x7ab   :  { %5232 = vmatpush1.bf16.msra.mxu0 %v7065_v44 }
 0x7ac   :  { %5258 = vmatprep.subr.bf16.mxu0 %v6921_v60 }
 0x82c   :  { %v1669_v20 = vpop.f32.mrb[14].mxu0  ;;  %v1740_v23 = vpop.f32.mrb[22].mxu1 }
 0x82d   :  { %v5702_v29 = vadd.f32 %v6472_v11, %v1669_v20  ;;  %v1671_v32 = vpop.f32.mrb[15].mxu0  ;;  %v4265_v30 = vpop.f32.mrb[23].mxu1  ;;  %v1741_v43 = vadd.f32 %v1740_v23, %v6479_v36 }
 0x82e   :  { %v5704_v57 = vadd.f32 %v6474_v14, %v1671_v32 }
 0x82f   :  { %v3586_v31 = vmul.f32 -1.442695, %v5702_v29 }
 0x830   :  { %v3587_v2 = vmul.f32 -1.442695, %v5704_v57 }
 0x831   :  { %5842 = vpow2.f32 %v3586_v31 }
 0x832   :  { %5844 = vpow2.f32 %v3587_v2 }
 0x83b   :  { %v5843_v42 = vpop.eup %5842 }
 0x83c   :  { %v1748_v48 = vadd.f32 1.0, %v5843_v42  ;;  %v5845_v52 = vpop.eup %5844 }
 0x83d   :  { %v1755_v54 = vadd.f32 1.0, %v5845_v52 }
 0x83e   :  { %5846 = vrcp.f32 %v1748_v48 }
 0x83f   :  { %5848 = vrcp.f32 %v1755_v54 }
 0x848   :  { %v5847_v7 = vpop.eup %5846 }
 0x849   :  { %v1758_v9 = vmul.f32 %v5847_v7, %v1741_v43  ;;  %v5849_v12 = vpop.eup %5848  ;;  %v7221_v7 = vrot.slane %v1824_v34, %v6441_v37 }
 0x84a   :  { %v1761_v36 = vsub.f32 1.0, %v5849_v12  ;;  %v1763_v18 = vmul.f32 %v5849_v12, %v6774_v50  ;;  %v2131_v50 = vld [vmem:[%s7570_s8] sm:$0x7] }
 0x84b   :  { %v1759_v11 = vadd.f32 %v1758_v9, %v6462_v62  ;;  %v2140_v51 = vrot.slane %v2131_v50, %v6457_v58  ;;  %v2144_v10 = vrot.slane %v2131_v50, %v6464_v0  ;;  %v7218_v54 = vrot.slane %v2131_v50, %v6441_v37 }
 0x84c   :  { %v7144_v39 = vpop.f32.mrb[24].mxu1 }
 0x84d   :  { %5850 = vtanh.f32 %v1759_v11  ;;  %v7146_v59 = vpop.f32.mrb[25].mxu1  ;;  %v7211_v23 = vadd.f32 %v2140_v51, %v1829_v41  ;;  %v7213_v32 = vadd.f32 %v2144_v10, %v1833_v1 }
 0x850   :  { %v7148_v14 = vpop.f32.mrb[26].mxu1 }
 0x851   :  { %v7150_v16 = vpop.f32.mrb[27].mxu1 }
 0x854   :  { %v7152_v6 = vpop.f32.mrb[28].mxu1 }
 0x855   :  { %v7154_v49 = vpop.f32.mrb[29].mxu1 }
 0x857   :  { %v5851_v21 = vpop.eup %5850 }
 0x858   :  { %v1762_v17 = vmul.f32 %v5851_v21, %v1761_v36  ;;  %v2021_v36 = vadd.f32 %v7146_v59, %v7221_v7 }
 0x85a   :  { %v1764_v62 = vadd.f32 %v1763_v18, %v1762_v17 }
 0x85c   :  { %1948 = vmatmul.mubr.f32.gmra.mrb[30].mxu0 %v1764_v62  ;;  %4308 = vmatmul.mubr.f32.gmra.mrb[30].mxu1 %v1764_v62 }
 0x85d   :  { %2216 = vmatprep.mubr.f32.mxu0 %v5932_v3  ;;  %4342 = vmatprep.mubr.msk.f32.mxu1 %vm5934_vm0, %v5932_v3 }
 0x860   :  { %2217 = vmatmul.mubr.f32.vlgmr.msra.gmra.mrb[16].mxu0 %v5932_v3  ;;  %4343 = vmatmul.mubr.f32.vlgmr.msra.gmra.mrb[32].mxu1 %v5932_v3 }
 0x861   :  { %5260 = vmatpush1.bf16.msra.mxu0 %v6929_v28  ;;  %5291 = vmatpush3.bf16.msra.mxu1 %v7045_v5 }
 0x862   :  { %5262 = vmatprep.subr.bf16.mxu0 %v6939_v27  ;;  %5292 = vmatprep.subr.bf16.mxu1 %v5933_v40 }
 0x863   :  { %2381 = vmatprep.mubr.f32.mxu0 %v5932_v3  ;;  %4377 = vmatprep.mubr.msk.f32.mxu1 %vm5934_vm0, %v5932_v3 }
 0x865   :  { %5264 = vmatpush1.bf16.msra.mxu0 %v6947_v25  ;;  %5294 = vmatpush3.bf16.msra.mxu1 %v7074_v19 }
 0x866   :  { %5266 = vmatprep.subr.bf16.mxu0 %v6957_v35  ;;  %5295 = vmatprep.subr.bf16.mxu1 %v5933_v40 }
 0x869   :  { %5268 = vmatpush1.bf16.msra.mxu0 %v6965_v46  ;;  %5297 = vmatpush3.bf16.msra.mxu1 %v7089_v38 }
 0x86a   :  { %5270 = vmatprep.subr.bf16.mxu0 %v6975_v56  ;;  %5298 = vmatprep.subr.bf16.mxu1 %v5933_v40 }
 0x86d   :  { %5272 = vmatpush1.bf16.msra.mxu0 %v6983_v4  ;;  %5300 = vmatpush3.bf16.msra.mxu1 %v7095_v22 }
 0x86e   :  { %5274 = vmatprep.subr.bf16.mxu0 %v6993_v15  ;;  %5301 = vmatprep.subr.bf16.mxu1 %v5933_v40 }
 0x871   :  { %5276 = vmatpush1.bf16.msra.mxu0 %v7001_v24  ;;  %5303 = vmatpush3.bf16.msra.mxu1 %v7105_v26 }
 0x872   :  { %5278 = vmatprep.subr.bf16.mxu0 %v7011_v53  ;;  %5304 = vmatprep.subr.bf16.mxu1 %v5933_v40 }
 0x875   :  { %5280 = vmatpush1.bf16.msra.mxu0 %v7019_v33  ;;  %5306 = vmatpush3.bf16.msra.mxu1 %v7115_v45 }
 0x876   :  { %5282 = vmatprep.subr.bf16.mxu0 %v7032_v47  ;;  %5307 = vmatprep.subr.bf16.mxu1 %v5933_v40 }
 0x879   :  { %5284 = vmatpush1.bf16.msra.mxu0 %v7043_v63  ;;  %5309 = vmatpush3.bf16.msra.mxu1 %v7125_v61 }
 0x87a   :  { %5286 = vmatprep.subr.bf16.mxu0 %v7056_v8  ;;  %5310 = vmatprep.subr.bf16.mxu1 %v5933_v40 }
 0x87d   :  { %5288 = vmatpush1.bf16.msra.mxu0 %v7065_v44  ;;  %5312 = vmatpush3.bf16.msra.mxu1 %v7135_v13 }
 0x87e   :  { %5314 = vmatprep.subr.bf16.mxu0 %v6921_v60  ;;  %5345 = vmatprep.subr.bf16.mxu1 %v5933_v40 }
 0x92f   :  { %v7205_v55 = vpop.f32.mrb[30].mxu1 }
 0x930   :  { %v7209_v20 = vpop.f32.mrb[31].mxu1 }
 0x933   :  { %v2218_v29 = vpop.f32.mrb[16].mxu0  ;;  %v2289_v30 = vpop.f32.mrb[32].mxu1 }
 0x934   :  { %v5706_v31 = vadd.f32 %v7211_v23, %v2218_v29  ;;  %v2220_v57 = vpop.f32.mrb[17].mxu0  ;;  %v4344_v2 = vpop.f32.mrb[33].mxu1  ;;  %v2290_v11 = vadd.f32 %v2289_v30, %v7218_v54 }
 0x935   :  { %v5708_v58 = vadd.f32 %v7213_v32, %v2220_v57 }
 0x936   :  { %v3588_v42 = vmul.f32 -1.442695, %v5706_v31 }
 0x937   :  { %v3589_v48 = vmul.f32 -1.442695, %v5708_v58 }
 0x938   :  { %5852 = vpow2.f32 %v3588_v42 }
 0x939   :  { %5854 = vpow2.f32 %v3589_v48 }
 0x942   :  { %v5853_v52 = vpop.eup %5852 }
 0x943   :  { %v2297_v0 = vadd.f32 1.0, %v5853_v52  ;;  %v5855_v43 = vpop.eup %5854 }
 0x944   :  { %v2304_v9 = vadd.f32 1.0, %v5855_v43  ;;  %v2026_v43 = vadd.f32 %v7144_v39, %v7221_v7 }
 0x945   :  { %5856 = vrcp.f32 %v2297_v0 }
 0x946   :  { %5858 = vrcp.f32 %v2304_v9 }
 0x94f   :  { %v5857_v12 = vpop.eup %5856 }
 0x950   :  { %v2307_v21 = vmul.f32 %v5857_v12, %v2290_v11  ;;  %v5859_v18 = vpop.eup %5858 }
 0x951   :  { %v2310_v62 = vsub.f32 1.0, %v5859_v18  ;;  %v2312_v51 = vmul.f32 0.0, %v5859_v18 }
 0x952   :  { %v2308_v17 = vadd.f32 %v2307_v21, %v2021_v36 }
 0x954   :  { %5860 = vtanh.f32 %v2308_v17 }
 0x95e   :  { %v5861_v41 = vpop.eup %5860 }
 0x95f   :  { %v2311_v50 = vmul.f32 %v5861_v41, %v2310_v62 }
 0x961   :  { %v7226_v1 = vadd.f32 %v2312_v51, %v2311_v50 }
 0x963   :  { %2382 = vmatmul.mubr.f32.vlgmr.msra.gmra.mrb[18].mxu0 %v7226_v1  ;;  %4378 = vmatmul.mubr.f32.vlgmr.msra.gmra.mrb[34].mxu1 %v7226_v1 }
 0x964   :  { %5316 = vmatpush1.bf16.msra.mxu0 %v6929_v28  ;;  %5347 = vmatpush3.bf16.msra.mxu1 %v7045_v5 }
 0x965   :  { %5318 = vmatprep.subr.bf16.mxu0 %v6939_v27  ;;  %5348 = vmatprep.subr.bf16.mxu1 %v5933_v40 }
 0x966   :  { %2546 = vmatprep.mubr.f32.mxu0 %v5932_v3  ;;  %4412 = vmatprep.mubr.msk.f32.mxu1 %vm5934_vm0, %v5932_v3 }
 0x968   :  { %5320 = vmatpush1.bf16.msra.mxu0 %v6947_v25  ;;  %5350 = vmatpush3.bf16.msra.mxu1 %v7074_v19 }
 0x969   :  { %5322 = vmatprep.subr.bf16.mxu0 %v6957_v35  ;;  %5351 = vmatprep.subr.bf16.mxu1 %v5933_v40 }
 0x96c   :  { %5324 = vmatpush1.bf16.msra.mxu0 %v6965_v46  ;;  %5353 = vmatpush3.bf16.msra.mxu1 %v7089_v38 }
 0x96d   :  { %5326 = vmatprep.subr.bf16.mxu0 %v6975_v56  ;;  %5354 = vmatprep.subr.bf16.mxu1 %v5933_v40 }
 0x970   :  { %5328 = vmatpush1.bf16.msra.mxu0 %v6983_v4  ;;  %5356 = vmatpush3.bf16.msra.mxu1 %v7095_v22 }
 0x971   :  { %5330 = vmatprep.subr.bf16.mxu0 %v6993_v15  ;;  %5357 = vmatprep.subr.bf16.mxu1 %v5933_v40 }
 0x974   :  { %5332 = vmatpush1.bf16.msra.mxu0 %v7001_v24  ;;  %5359 = vmatpush3.bf16.msra.mxu1 %v7105_v26 }
 0x975   :  { %5334 = vmatprep.subr.bf16.mxu0 %v7011_v53  ;;  %5360 = vmatprep.subr.bf16.mxu1 %v5933_v40 }
 0x978   :  { %5336 = vmatpush1.bf16.msra.mxu0 %v7019_v33  ;;  %5362 = vmatpush3.bf16.msra.mxu1 %v7115_v45 }
 0x979   :  { %5338 = vmatprep.subr.bf16.mxu0 %v7032_v47  ;;  %5363 = vmatprep.subr.bf16.mxu1 %v5933_v40 }
 0x97c   :  { %5340 = vmatpush1.bf16.msra.mxu0 %v7043_v63  ;;  %5365 = vmatpush3.bf16.msra.mxu1 %v7125_v61 }
 0x97d   :  { %5342 = vmatprep.subr.bf16.mxu0 %v7056_v8  ;;  %5366 = vmatprep.subr.bf16.mxu1 %v5933_v40 }
 0x980   :  { %5344 = vmatpush1.bf16.msra.mxu0 %v7065_v44  ;;  %5368 = vmatpush3.bf16.msra.mxu1 %v7135_v13 }
 0x981   :  { %5370 = vmatprep.subr.bf16.mxu0 %v6921_v60  ;;  %5401 = vmatprep.subr.bf16.mxu1 %v5933_v40 }
 0xa36   :  { %v2383_v37 = vpop.f32.mrb[18].mxu0  ;;  %v2454_v59 = vpop.f32.mrb[34].mxu1 }
 0xa37   :  { %v5710_v34 = vadd.f32 %v7211_v23, %v2383_v37  ;;  %v2385_v10 = vpop.f32.mrb[19].mxu0  ;;  %v4379_v29 = vpop.f32.mrb[35].mxu1  ;;  %v2455_v52 = vadd.f32 %v2454_v59, %v7218_v54 }
 0xa38   :  { %v5712_v31 = vadd.f32 %v7213_v32, %v2385_v10 }
 0xa39   :  { %v3590_v30 = vmul.f32 -1.442695, %v5710_v34 }
 0xa3a   :  { %v3591_v57 = vmul.f32 -1.442695, %v5712_v31 }
 0xa3b   :  { %5862 = vpow2.f32 %v3590_v30 }
 0xa3c   :  { %5864 = vpow2.f32 %v3591_v57 }
 0xa45   :  { %v5863_v2 = vpop.eup %5862 }
 0xa46   :  { %v2462_v42 = vadd.f32 1.0, %v5863_v2  ;;  %v5865_v58 = vpop.eup %5864 }
 0xa47   :  { %v2469_v48 = vadd.f32 1.0, %v5865_v58 }
 0xa48   :  { %5866 = vrcp.f32 %v2462_v42  ;;  %v2031_v42 = vadd.f32 %v7150_v16, %v7221_v7 }
 0xa49   :  { %5868 = vrcp.f32 %v2469_v48 }
 0xa52   :  { %v5867_v0 = vpop.eup %5866 }
 0xa53   :  { %v2472_v9 = vmul.f32 %v5867_v0, %v2455_v52  ;;  %v5869_v12 = vpop.eup %5868 }
 0xa54   :  { %v2475_v36 = vsub.f32 1.0, %v5869_v12  ;;  %v2477_v18 = vmul.f32 %v5869_v12, %v7226_v1 }
 0xa55   :  { %v2473_v11 = vadd.f32 %v2472_v9, %v2026_v43 }
 0xa57   :  { %5870 = vtanh.f32 %v2473_v11 }
 0xa61   :  { %v5871_v21 = vpop.eup %5870 }
 0xa62   :  { %v2476_v17 = vmul.f32 %v5871_v21, %v2475_v36 }
 0xa64   :  { %v7271_v62 = vadd.f32 %v2477_v18, %v2476_v17 }
 0xa66   :  { %2547 = vmatmul.mubr.f32.vlgmr.msra.gmra.mrb[20].mxu0 %v7271_v62  ;;  %4413 = vmatmul.mubr.f32.vlgmr.msra.gmra.mrb[36].mxu1 %v7271_v62 }
 0xa67   :  { %5372 = vmatpush1.bf16.msra.mxu0 %v6929_v28  ;;  %5403 = vmatpush3.bf16.msra.mxu1 %v7045_v5 }
 0xa68   :  { %5374 = vmatprep.subr.bf16.mxu0 %v6939_v27  ;;  %5404 = vmatprep.subr.bf16.mxu1 %v5933_v40 }
 0xa69   :  { %2711 = vmatprep.mubr.f32.mxu0 %v5932_v3  ;;  %4447 = vmatprep.mubr.msk.f32.mxu1 %vm5934_vm0, %v5932_v3 }
 0xa6b   :  { %5376 = vmatpush1.bf16.msra.mxu0 %v6947_v25  ;;  %5406 = vmatpush3.bf16.msra.mxu1 %v7074_v19 }
 0xa6c   :  { %5378 = vmatprep.subr.bf16.mxu0 %v6957_v35  ;;  %5407 = vmatprep.subr.bf16.mxu1 %v5933_v40 }
 0xa6f   :  { %5380 = vmatpush1.bf16.msra.mxu0 %v6965_v46  ;;  %5409 = vmatpush3.bf16.msra.mxu1 %v7089_v38 }
 0xa70   :  { %5382 = vmatprep.subr.bf16.mxu0 %v6975_v56  ;;  %5410 = vmatprep.subr.bf16.mxu1 %v5933_v40 }
 0xa73   :  { %5384 = vmatpush1.bf16.msra.mxu0 %v6983_v4  ;;  %5412 = vmatpush3.bf16.msra.mxu1 %v7095_v22 }
 0xa74   :  { %5386 = vmatprep.subr.bf16.mxu0 %v6993_v15  ;;  %5413 = vmatprep.subr.bf16.mxu1 %v5933_v40 }
 0xa77   :  { %5388 = vmatpush1.bf16.msra.mxu0 %v7001_v24  ;;  %5415 = vmatpush3.bf16.msra.mxu1 %v7105_v26 }
 0xa78   :  { %5390 = vmatprep.subr.bf16.mxu0 %v7011_v53  ;;  %5416 = vmatprep.subr.bf16.mxu1 %v5933_v40 }
 0xa7b   :  { %5392 = vmatpush1.bf16.msra.mxu0 %v7019_v33  ;;  %5418 = vmatpush3.bf16.msra.mxu1 %v7115_v45 }
 0xa7c   :  { %5394 = vmatprep.subr.bf16.mxu0 %v7032_v47  ;;  %5419 = vmatprep.subr.bf16.mxu1 %v5933_v40 }
 0xa7f   :  { %5396 = vmatpush1.bf16.msra.mxu0 %v7043_v63  ;;  %5421 = vmatpush3.bf16.msra.mxu1 %v7125_v61 }
 0xa80   :  { %5398 = vmatprep.subr.bf16.mxu0 %v7056_v8  ;;  %5422 = vmatprep.subr.bf16.mxu1 %v5933_v40 }
 0xa83   :  { %5400 = vmatpush1.bf16.msra.mxu0 %v7065_v44  ;;  %5424 = vmatpush3.bf16.msra.mxu1 %v7135_v13 }
 0xa84   :  { %5426 = vmatprep.subr.bf16.mxu0 %v6921_v60  ;;  %5457 = vmatprep.subr.bf16.mxu1 %v5933_v40 }
 0xb39   :  { %v2548_v39 = vpop.f32.mrb[20].mxu0  ;;  %v2619_v41 = vpop.f32.mrb[36].mxu1 }
 0xb3a   :  { %v5714_v50 = vadd.f32 %v7211_v23, %v2548_v39  ;;  %v2550_v51 = vpop.f32.mrb[21].mxu0  ;;  %v4414_v1 = vpop.f32.mrb[37].mxu1  ;;  %v2620_v57 = vadd.f32 %v2619_v41, %v7218_v54 }
 0xb3b   :  { %v5716_v59 = vadd.f32 %v7213_v32, %v2550_v51 }
 0xb3c   :  { %v3592_v37 = vmul.f32 -1.442695, %v5714_v50 }
 0xb3d   :  { %v3593_v34 = vmul.f32 -1.442695, %v5716_v59 }
 0xb3e   :  { %5872 = vpow2.f32 %v3592_v37 }
 0xb3f   :  { %5874 = vpow2.f32 %v3593_v34 }
 0xb48   :  { %v5873_v10 = vpop.eup %5872 }
 0xb49   :  { %v2627_v29 = vadd.f32 1.0, %v5873_v10  ;;  %v5875_v30 = vpop.eup %5874  ;;  %v2036_v10 = vadd.f32 %v7148_v14, %v7221_v7 }
 0xb4a   :  { %v2634_v31 = vadd.f32 1.0, %v5875_v30 }
 0xb4b   :  { %5876 = vrcp.f32 %v2627_v29 }
 0xb4c   :  { %5878 = vrcp.f32 %v2634_v31 }
 0xb55   :  { %v5877_v2 = vpop.eup %5876 }
 0xb56   :  { %v2637_v58 = vmul.f32 %v5877_v2, %v2620_v57  ;;  %v5879_v52 = vpop.eup %5878 }
 0xb57   :  { %v2640_v0 = vsub.f32 1.0, %v5879_v52  ;;  %v2642_v11 = vmul.f32 %v5879_v52, %v7271_v62 }
 0xb58   :  { %v2638_v48 = vadd.f32 %v2637_v58, %v2031_v42 }
 0xb5a   :  { %5880 = vtanh.f32 %v2638_v48 }
 0xb64   :  { %v5881_v43 = vpop.eup %5880 }
 0xb65   :  { %v2641_v9 = vmul.f32 %v5881_v43, %v2640_v0 }
 0xb67   :  { %v7316_v12 = vadd.f32 %v2642_v11, %v2641_v9 }
 0xb69   :  { %2712 = vmatmul.mubr.f32.vlgmr.msra.gmra.mrb[22].mxu0 %v7316_v12  ;;  %4448 = vmatmul.mubr.f32.vlgmr.msra.gmra.mrb[38].mxu1 %v7316_v12 }
 0xb6a   :  { %5428 = vmatpush1.bf16.msra.mxu0 %v6929_v28  ;;  %5459 = vmatpush3.bf16.msra.mxu1 %v7045_v5 }
 0xb6b   :  { %5430 = vmatprep.subr.bf16.mxu0 %v6939_v27  ;;  %5460 = vmatprep.subr.bf16.mxu1 %v5933_v40 }
 0xb6c   :  { %2876 = vmatprep.mubr.f32.mxu0 %v5932_v3  ;;  %4482 = vmatprep.mubr.msk.f32.mxu1 %vm5934_vm0, %v5932_v3 }
 0xb6e   :  { %5432 = vmatpush1.bf16.msra.mxu0 %v6947_v25  ;;  %5462 = vmatpush3.bf16.msra.mxu1 %v7074_v19 }
 0xb6f   :  { %5434 = vmatprep.subr.bf16.mxu0 %v6957_v35  ;;  %5463 = vmatprep.subr.bf16.mxu1 %v5933_v40 }
 0xb72   :  { %5436 = vmatpush1.bf16.msra.mxu0 %v6965_v46  ;;  %5465 = vmatpush3.bf16.msra.mxu1 %v7089_v38 }
 0xb73   :  { %5438 = vmatprep.subr.bf16.mxu0 %v6975_v56  ;;  %5466 = vmatprep.subr.bf16.mxu1 %v5933_v40 }
 0xb76   :  { %5440 = vmatpush1.bf16.msra.mxu0 %v6983_v4  ;;  %5468 = vmatpush3.bf16.msra.mxu1 %v7095_v22 }
 0xb77   :  { %5442 = vmatprep.subr.bf16.mxu0 %v6993_v15  ;;  %5469 = vmatprep.subr.bf16.mxu1 %v5933_v40 }
 0xb7a   :  { %5444 = vmatpush1.bf16.msra.mxu0 %v7001_v24  ;;  %5471 = vmatpush3.bf16.msra.mxu1 %v7105_v26 }
 0xb7b   :  { %5446 = vmatprep.subr.bf16.mxu0 %v7011_v53  ;;  %5472 = vmatprep.subr.bf16.mxu1 %v5933_v40 }
 0xb7e   :  { %5448 = vmatpush1.bf16.msra.mxu0 %v7019_v33  ;;  %5474 = vmatpush3.bf16.msra.mxu1 %v7115_v45 }
 0xb7f   :  { %5450 = vmatprep.subr.bf16.mxu0 %v7032_v47  ;;  %5475 = vmatprep.subr.bf16.mxu1 %v5933_v40 }
 0xb82   :  { %5452 = vmatpush1.bf16.msra.mxu0 %v7043_v63  ;;  %5477 = vmatpush3.bf16.msra.mxu1 %v7125_v61 }
 0xb83   :  { %5454 = vmatprep.subr.bf16.mxu0 %v7056_v8  ;;  %5478 = vmatprep.subr.bf16.mxu1 %v5933_v40 }
 0xb86   :  { %5456 = vmatpush1.bf16.msra.mxu0 %v7065_v44  ;;  %5480 = vmatpush3.bf16.msra.mxu1 %v7135_v13 }
 0xb87   :  { %5482 = vmatprep.subr.bf16.mxu0 %v6921_v60  ;;  %5513 = vmatprep.subr.bf16.mxu1 %v5933_v40 }
 0xc3c   :  { %v2713_v16 = vpop.f32.mrb[22].mxu0  ;;  %v2784_v36 = vpop.f32.mrb[38].mxu1 }
 0xc3d   :  { %v5718_v21 = vadd.f32 %v7211_v23, %v2713_v16  ;;  %v2715_v17 = vpop.f32.mrb[23].mxu0  ;;  %v4449_v18 = vpop.f32.mrb[39].mxu1  ;;  %v2785_v59 = vadd.f32 %v2784_v36, %v7218_v54 }
 0xc3e   :  { %v5720_v39 = vadd.f32 %v7213_v32, %v2715_v17 }
 0xc3f   :  { %v3594_v62 = vmul.f32 -1.442695, %v5718_v21 }
 0xc40   :  { %v3595_v41 = vmul.f32 -1.442695, %v5720_v39 }
 0xc41   :  { %5882 = vpow2.f32 %v3594_v62 }
 0xc42   :  { %5884 = vpow2.f32 %v3595_v41  ;;  %v2041_v41 = vadd.f32 %v7154_v49, %v7221_v7 }
 0xc4b   :  { %v5883_v50 = vpop.eup %5882 }
 0xc4c   :  { %v2792_v51 = vadd.f32 1.0, %v5883_v50  ;;  %v5885_v1 = vpop.eup %5884 }
 0xc4d   :  { %v2799_v37 = vadd.f32 1.0, %v5885_v1 }
 0xc4e   :  { %5886 = vrcp.f32 %v2792_v51 }
 0xc4f   :  { %5888 = vrcp.f32 %v2799_v37 }
 0xc58   :  { %v5887_v34 = vpop.eup %5886 }
 0xc59   :  { %v2802_v29 = vmul.f32 %v5887_v34, %v2785_v59  ;;  %v5889_v31 = vpop.eup %5888 }
 0xc5a   :  { %v2805_v57 = vsub.f32 1.0, %v5889_v31  ;;  %v2807_v58 = vmul.f32 %v5889_v31, %v7316_v12 }
 0xc5b   :  { %v2803_v30 = vadd.f32 %v2802_v29, %v2036_v10 }
 0xc5d   :  { %5890 = vtanh.f32 %v2803_v30 }
 0xc67   :  { %v5891_v2 = vpop.eup %5890 }
 0xc68   :  { %v2806_v42 = vmul.f32 %v5891_v2, %v2805_v57 }
 0xc6a   :  { %v7361_v48 = vadd.f32 %v2807_v58, %v2806_v42 }
 0xc6c   :  { %2877 = vmatmul.mubr.f32.vlgmr.msra.gmra.mrb[24].mxu0 %v7361_v48  ;;  %4483 = vmatmul.mubr.f32.vlgmr.msra.gmra.mrb[40].mxu1 %v7361_v48 }
 0xc6d   :  { %5484 = vmatpush1.bf16.msra.mxu0 %v6929_v28  ;;  %5515 = vmatpush3.bf16.msra.mxu1 %v7045_v5 }
 0xc6e   :  { %5486 = vmatprep.subr.bf16.mxu0 %v6939_v27  ;;  %5516 = vmatprep.subr.bf16.mxu1 %v5933_v40 }
 0xc6f   :  { %3041 = vmatprep.mubr.f32.mxu0 %v5932_v3  ;;  %4517 = vmatprep.mubr.msk.f32.mxu1 %vm5934_vm0, %v5932_v3 }
 0xc71   :  { %5488 = vmatpush1.bf16.msra.mxu0 %v6947_v25  ;;  %5518 = vmatpush3.bf16.msra.mxu1 %v7074_v19 }
 0xc72   :  { %5490 = vmatprep.subr.bf16.mxu0 %v6957_v35  ;;  %5519 = vmatprep.subr.bf16.mxu1 %v5933_v40 }
 0xc75   :  { %5492 = vmatpush1.bf16.msra.mxu0 %v6965_v46  ;;  %5521 = vmatpush3.bf16.msra.mxu1 %v7089_v38 }
 0xc76   :  { %5494 = vmatprep.subr.bf16.mxu0 %v6975_v56  ;;  %5522 = vmatprep.subr.bf16.mxu1 %v5933_v40 }
 0xc79   :  { %5496 = vmatpush1.bf16.msra.mxu0 %v6983_v4  ;;  %5524 = vmatpush3.bf16.msra.mxu1 %v7095_v22 }
 0xc7a   :  { %5498 = vmatprep.subr.bf16.mxu0 %v6993_v15  ;;  %5525 = vmatprep.subr.bf16.mxu1 %v5933_v40 }
 0xc7d   :  { %5500 = vmatpush1.bf16.msra.mxu0 %v7001_v24  ;;  %5527 = vmatpush3.bf16.msra.mxu1 %v7105_v26 }
 0xc7e   :  { %5502 = vmatprep.subr.bf16.mxu0 %v7011_v53  ;;  %5528 = vmatprep.subr.bf16.mxu1 %v5933_v40 }
 0xc81   :  { %5504 = vmatpush1.bf16.msra.mxu0 %v7019_v33  ;;  %5530 = vmatpush3.bf16.msra.mxu1 %v7115_v45 }
 0xc82   :  { %5506 = vmatprep.subr.bf16.mxu0 %v7032_v47  ;;  %5531 = vmatprep.subr.bf16.mxu1 %v5933_v40 }
 0xc85   :  { %5508 = vmatpush1.bf16.msra.mxu0 %v7043_v63  ;;  %5533 = vmatpush3.bf16.msra.mxu1 %v7125_v61 }
 0xc86   :  { %5510 = vmatprep.subr.bf16.mxu0 %v7056_v8  ;;  %5534 = vmatprep.subr.bf16.mxu1 %v5933_v40 }
 0xc89   :  { %5512 = vmatpush1.bf16.msra.mxu0 %v7065_v44  ;;  %5536 = vmatpush3.bf16.msra.mxu1 %v7135_v13 }
 0xc8a   :  { %5538 = vmatprep.subr.bf16.mxu0 %v6921_v60  ;;  %5569 = vmatprep.subr.bf16.mxu1 %v5933_v40 }
 0xd3f   :  { %v2878_v14 = vpop.f32.mrb[24].mxu0  ;;  %v2949_v52 = vpop.f32.mrb[40].mxu1 }
 0xd40   :  { %v5722_v0 = vadd.f32 %v7211_v23, %v2878_v14  ;;  %v2880_v43 = vpop.f32.mrb[25].mxu0  ;;  %v4484_v9 = vpop.f32.mrb[41].mxu1  ;;  %v2950_v62 = vadd.f32 %v2949_v52, %v7218_v54 }
 0xd41   :  { %v5724_v12 = vadd.f32 %v7213_v32, %v2880_v43 }
 0xd42   :  { %v3596_v11 = vmul.f32 -1.442695, %v5722_v0 }
 0xd43   :  { %v3597_v16 = vmul.f32 -1.442695, %v5724_v12 }
 0xd44   :  { %5892 = vpow2.f32 %v3596_v11  ;;  %v2046_v11 = vadd.f32 %v7152_v6, %v7221_v7  ;;  %v3474_v6 = vld [vmem:[%s7572_s9] sm:$0xff] }
 0xd45   :  { %5894 = vpow2.f32 %v3597_v16 }
 0xd4e   :  { %v5893_v36 = vpop.eup %5892 }
 0xd4f   :  { %v2957_v21 = vadd.f32 1.0, %v5893_v36  ;;  %v5895_v17 = vpop.eup %5894 }
 0xd50   :  { %v2964_v18 = vadd.f32 1.0, %v5895_v17 }
 0xd51   :  { %5896 = vrcp.f32 %v2957_v21 }
 0xd52   :  { %5898 = vrcp.f32 %v2964_v18 }
 0xd5b   :  { %v5897_v39 = vpop.eup %5896 }
 0xd5c   :  { %v2967_v50 = vmul.f32 %v5897_v39, %v2950_v62  ;;  %v5899_v1 = vpop.eup %5898 }
 0xd5d   :  { %v2970_v37 = vsub.f32 1.0, %v5899_v1  ;;  %v2972_v10 = vmul.f32 %v5899_v1, %v7361_v48  ;;  %v3478_v1 = vld [vmem:[%s7572_s9 + $0x20] sm:$0xff] }
 0xd5e   :  { %v2968_v51 = vadd.f32 %v2967_v50, %v2041_v41  ;;  %v3476_v50 = vld [vmem:[%s7572_s9 + $0x10] sm:$0xff] }
 0xd60   :  { %5900 = vtanh.f32 %v2968_v51 }
 0xd6a   :  { %v5901_v59 = vpop.eup %5900 }
 0xd6b   :  { %v2971_v34 = vmul.f32 %v5901_v59, %v2970_v37  ;;  %v3479_v37 = vld [vmem:[%s7572_s9 + $0x28] sm:$0xff] }
 0xd6c   :  { %v5656_v59 = vpack.c.bf16 %v3479_v37, %v3478_v1 }
 0xd6d   :  { %v7406_v29 = vadd.f32 %v2972_v10, %v2971_v34  ;;  %v3480_v34 = vld [vmem:[%s7572_s9 + $0x30] sm:$0xff]  ;;  %v3481_v10 = vld [vmem:[%s7572_s9 + $0x38] sm:$0xff] }
 0xd6f   :  { %3042 = vmatmul.mubr.f32.vlgmr.msra.gmra.mrb[26].mxu0 %v7406_v29  ;;  %4518 = vmatmul.mubr.f32.vlgmr.msra.gmra.mrb[42].mxu1 %v7406_v29 }
 0xd70   :  { %5540 = vmatpush1.bf16.msra.mxu0 %v6929_v28  ;;  %5571 = vmatpush3.bf16.msra.mxu1 %v7045_v5 }
 0xd71   :  { %5542 = vmatprep.subr.bf16.mxu0 %v6939_v27  ;;  %5572 = vmatprep.subr.bf16.mxu1 %v5933_v40 }
 0xd72   :  { %3206 = vmatprep.mubr.f32.mxu0 %v5932_v3  ;;  %4552 = vmatprep.mubr.msk.f32.mxu1 %vm5934_vm0, %v5932_v3 }
 0xd74   :  { %5544 = vmatpush1.bf16.msra.mxu0 %v6947_v25  ;;  %5574 = vmatpush3.bf16.msra.mxu1 %v7074_v19 }
 0xd75   :  { %5546 = vmatprep.subr.bf16.mxu0 %v6957_v35  ;;  %5575 = vmatprep.subr.bf16.mxu1 %v5933_v40 }
 0xd78   :  { %5548 = vmatpush1.bf16.msra.mxu0 %v6965_v46  ;;  %5577 = vmatpush3.bf16.msra.mxu1 %v7089_v38 }
 0xd79   :  { %5550 = vmatprep.subr.bf16.mxu0 %v6975_v56  ;;  %5578 = vmatprep.subr.bf16.mxu1 %v5933_v40 }
 0xd7c   :  { %5552 = vmatpush1.bf16.msra.mxu0 %v6983_v4  ;;  %5580 = vmatpush3.bf16.msra.mxu1 %v7095_v22 }
 0xd7d   :  { %5554 = vmatprep.subr.bf16.mxu0 %v6993_v15  ;;  %5581 = vmatprep.subr.bf16.mxu1 %v5933_v40 }
 0xd80   :  { %5556 = vmatpush1.bf16.msra.mxu0 %v7001_v24  ;;  %5583 = vmatpush3.bf16.msra.mxu1 %v7105_v26 }
 0xd81   :  { %5558 = vmatprep.subr.bf16.mxu0 %v7011_v53  ;;  %5584 = vmatprep.subr.bf16.mxu1 %v5933_v40 }
 0xd84   :  { %5560 = vmatpush1.bf16.msra.mxu0 %v7019_v33  ;;  %5586 = vmatpush3.bf16.msra.mxu1 %v7115_v45 }
 0xd85   :  { %5562 = vmatprep.subr.bf16.mxu0 %v7032_v47  ;;  %5587 = vmatprep.subr.bf16.mxu1 %v5933_v40 }
 0xd88   :  { %5564 = vmatpush1.bf16.msra.mxu0 %v7043_v63  ;;  %5589 = vmatpush3.bf16.msra.mxu1 %v7125_v61 }
 0xd89   :  { %5566 = vmatprep.subr.bf16.mxu0 %v7056_v8  ;;  %5590 = vmatprep.subr.bf16.mxu1 %v5933_v40 }
 0xd8c   :  { %5568 = vmatpush1.bf16.msra.mxu0 %v7065_v44  ;;  %5592 = vmatpush3.bf16.msra.mxu1 %v7135_v13 }
 0xd8d   :  { %5594 = vmatprep.subr.bf16.mxu0 %v6921_v60  ;;  %5625 = vmatprep.subr.bf16.mxu1 %v5933_v40 }
 0xe42   :  { %v3043_v49 = vpop.f32.mrb[26].mxu0  ;;  %v3114_v30 = vpop.f32.mrb[42].mxu1 }
 0xe43   :  { %v5726_v31 = vadd.f32 %v7211_v23, %v3043_v49  ;;  %v3045_v57 = vpop.f32.mrb[27].mxu0  ;;  %v4519_v2 = vpop.f32.mrb[43].mxu1  ;;  %v3115_v60 = vadd.f32 %v3114_v30, %v7218_v54  ;;  %v3482_v49 = vld [vmem:[%s7572_s9 + $0x40] sm:$0xff]  ;;  %v3483_v30 = vld [vmem:[%s7572_s9 + $0x48] sm:$0xff] }
 0xe44   :  { %v5728_v58 = vadd.f32 %v7213_v32, %v3045_v57  ;;  %v3484_v57 = vld [vmem:[%s7572_s9 + $0x50] sm:$0xff]  ;;  %v3485_v2 = vld [vmem:[%s7572_s9 + $0x58] sm:$0xff] }
 0xe45   :  { %v3598_v42 = vmul.f32 -1.442695, %v5726_v31  ;;  %v5662_v31 = vpack.c.bf16 %v3483_v30, %v3482_v49 }
 0xe46   :  { %v3599_v48 = vmul.f32 -1.442695, %v5728_v58  ;;  %v3486_v58 = vld [vmem:[%s7572_s9 + $0x60] sm:$0xff] }
 0xe47   :  { %5902 = vpow2.f32 %v3598_v42  ;;  %v5665_v42 = vpack.c.bf16 %v3485_v2, %v3484_v57 }
 0xe48   :  { %5904 = vpow2.f32 %v3599_v48  ;;  %v3487_v48 = vld [vmem:[%s7572_s9 + $0x68] sm:$0xff] }
 0xe51   :  { %v5903_v14 = vpop.eup %5902 }
 0xe52   :  { %v3122_v52 = vadd.f32 1.0, %v5903_v14  ;;  %v5905_v0 = vpop.eup %5904  ;;  %v5668_v14 = vpack.c.bf16 %v3487_v48, %v3486_v58 }
 0xe53   :  { %v3129_v43 = vadd.f32 1.0, %v5905_v0  ;;  %v3489_v0 = vld [vmem:[%s7572_s9 + $0x78] sm:$0xff] }
 0xe54   :  { %5906 = vrcp.f32 %v3122_v52  ;;  %v3488_v52 = vld [vmem:[%s7572_s9 + $0x70] sm:$0xff] }
 0xe55   :  { %5908 = vrcp.f32 %v3129_v43  ;;  %v5671_v43 = vpack.c.bf16 %v3489_v0, %v3488_v52 }
 0xe5e   :  { %v5907_v9 = vpop.eup %5906 }
 0xe5f   :  { %v3132_v12 = vmul.f32 %v5907_v9, %v3115_v60  ;;  %v5909_v36 = vpop.eup %5908 }
 0xe60   :  { %v3135_v21 = vsub.f32 1.0, %v5909_v36  ;;  %v3137_v62 = vmul.f32 %v5909_v36, %v7406_v29  ;;  %v5659_v29 = vpack.c.bf16 %v3481_v10, %v3480_v34 }
 0xe61   :  { %v3133_v16 = vadd.f32 %v3132_v12, %v2046_v11 }
 0xe63   :  { %5910 = vtanh.f32 %v3133_v16 }
 0xe6d   :  { %v5911_v17 = vpop.eup %5910 }
 0xe6e   :  { %v3136_v18 = vmul.f32 %v5911_v17, %v3135_v21 }
 0xe70   :  { %v3138_v39 = vadd.f32 %v3137_v62, %v3136_v18 }
 0xe72   :  { %3207 = vmatmul.mubr.f32.vlgmr.msra.gmra.mrb[28].mxu0 %v3138_v39  ;;  %4553 = vmatmul.mubr.f32.vlgmr.msra.gmra.mrb[44].mxu1 %v3138_v39 }
 0xe73   :  { %5596 = vmatpush1.bf16.msra.mxu0 %v6929_v28  ;;  %5627 = vmatpush3.bf16.msra.mxu1 %v7045_v5 }
 0xe74   :  { %5598 = vmatprep.subr.bf16.mxu0 %v6939_v27  ;;  %5628 = vmatprep.subr.bf16.mxu1 %v5933_v40 }
 0xe75   :  { %3371 = vmatprep.mubr.f32.mxu0 %v5932_v3  ;;  %4587 = vmatprep.mubr.msk.f32.mxu1 %vm5934_vm0, %v5932_v3 }
 0xe77   :  { %5600 = vmatpush1.bf16.msra.mxu0 %v6947_v25  ;;  %5630 = vmatpush3.bf16.msra.mxu1 %v7074_v19 }
 0xe78   :  { %5602 = vmatprep.subr.bf16.mxu0 %v6957_v35  ;;  %5631 = vmatprep.subr.bf16.mxu1 %v5933_v40 }
 0xe7b   :  { %5604 = vmatpush1.bf16.msra.mxu0 %v6965_v46  ;;  %5633 = vmatpush3.bf16.msra.mxu1 %v7089_v38 }
 0xe7c   :  { %5606 = vmatprep.subr.bf16.mxu0 %v6975_v56  ;;  %5634 = vmatprep.subr.bf16.mxu1 %v5933_v40 }
 0xe7f   :  { %5608 = vmatpush1.bf16.msra.mxu0 %v6983_v4  ;;  %5636 = vmatpush3.bf16.msra.mxu1 %v7095_v22 }
 0xe80   :  { %5610 = vmatprep.subr.bf16.mxu0 %v6993_v15  ;;  %5637 = vmatprep.subr.bf16.mxu1 %v5933_v40 }
 0xe83   :  { %5612 = vmatpush1.bf16.msra.mxu0 %v7001_v24  ;;  %5639 = vmatpush3.bf16.msra.mxu1 %v7105_v26 }
 0xe84   :  { %5614 = vmatprep.subr.bf16.mxu0 %v7011_v53  ;;  %5640 = vmatprep.subr.bf16.mxu1 %v5933_v40 }
 0xe87   :  { %5616 = vmatpush1.bf16.msra.mxu0 %v7019_v33  ;;  %5642 = vmatpush3.bf16.msra.mxu1 %v7115_v45 }
 0xe88   :  { %5618 = vmatprep.subr.bf16.mxu0 %v7032_v47  ;;  %5643 = vmatprep.subr.bf16.mxu1 %v5933_v40 }
 0xe8b   :  { %5620 = vmatpush1.bf16.msra.mxu0 %v7043_v63  ;;  %5645 = vmatpush3.bf16.msra.mxu1 %v7125_v61 }
 0xe8c   :  { %5622 = vmatprep.subr.bf16.mxu0 %v7056_v8  ;;  %5646 = vmatprep.subr.bf16.mxu1 %v5933_v40  ;;  %v2051_v8 = vadd.f32 %v7209_v20, %v7221_v7  ;;  %v3475_v20 = vld [vmem:[%s7572_s9 + $0x8] sm:$0xff] }
 0xe8d   :  { %v5650_v41 = vpack.c.bf16 %v3475_v20, %v3474_v6 }
 0xe8f   :  { %5624 = vmatpush1.bf16.msra.mxu0 %v7065_v44  ;;  %5648 = vmatpush3.bf16.msra.mxu1 %v7135_v13 }
 0xe90   :  { %5649 = vmatprep.subr.bf16.mxu0 %v5933_v40 }
 0xf45   :  { %v3208_v28 = vpop.f32.mrb[28].mxu0  ;;  %v3279_v27 = vpop.f32.mrb[44].mxu1 }
 0xf46   :  { %v5730_v25 = vadd.f32 %v7211_v23, %v3208_v28  ;;  %v3210_v35 = vpop.f32.mrb[29].mxu0  ;;  %v4554_v46 = vpop.f32.mrb[45].mxu1  ;;  %v3280_v63 = vadd.f32 %v3279_v27, %v7218_v54 }
 0xf47   :  { %v5732_v4 = vadd.f32 %v7213_v32, %v3210_v35 }
 0xf48   :  { %v3600_v56 = vmul.f32 -1.442695, %v5730_v25  ;;  %v2056_v25 = vadd.f32 %v7205_v55, %v7221_v7 }
 0xf49   :  { %v3601_v15 = vmul.f32 -1.442695, %v5732_v4 }
 0xf4a   :  { %5912 = vpow2.f32 %v3600_v56 }
 0xf4b   :  { %5914 = vpow2.f32 %v3601_v15 }
 0xf54   :  { %v5913_v24 = vpop.eup %5912 }
 0xf55   :  { %v3287_v53 = vadd.f32 1.0, %v5913_v24  ;;  %v5915_v33 = vpop.eup %5914 }
 0xf56   :  { %v3294_v47 = vadd.f32 1.0, %v5915_v33 }
 0xf57   :  { %5916 = vrcp.f32 %v3287_v53 }
 0xf58   :  { %5918 = vrcp.f32 %v3294_v47 }
 0xf61   :  { %v5917_v5 = vpop.eup %5916 }
 0xf62   :  { %v3297_v44 = vmul.f32 %v5917_v5, %v3280_v63  ;;  %v5919_v38 = vpop.eup %5918 }
 0xf63   :  { %v3300_v22 = vsub.f32 1.0, %v5919_v38  ;;  %v3302_v61 = vmul.f32 %v5919_v38, %v3138_v39 }
 0xf64   :  { %v3298_v19 = vadd.f32 %v3297_v44, %v2051_v8 }
 0xf66   :  { %5920 = vtanh.f32 %v3298_v19 }
 0xf70   :  { %v5921_v26 = vpop.eup %5920 }
 0xf71   :  { %v3301_v45 = vmul.f32 %v5921_v26, %v3300_v22 }
 0xf73   :  { %v7490_v13 = vadd.f32 %v3302_v61, %v3301_v45 }
 0xf75   :  { %3372 = vmatmul.mubr.f32.vlgmr.msra.gmra.mrb[30].mxu0 %v7490_v13  ;;  %4588 = vmatmul.mubr.f32.vlgmr.msra.gmra.mrb[46].mxu1 %v7490_v13 }
 0xf76   :  { %4622 = vmatprep.mubr.msk.f32.mxu0 %vm5934_vm0, %v5932_v3  ;;  %5651 = vmatpush3.bf16.msra.mxu0 %v5650_v41  ;;  %v3477_v3 = vld [vmem:[%s7572_s9 + $0x18] sm:$0xff] }
 0xf77   :  { %5652 = vmatprep.subr.bf16.mxu0 %v5933_v40  ;;  %v5653_v51 = vpack.c.bf16 %v3477_v3, %v3476_v50 }
 0xf7a   :  { %5654 = vmatpush3.bf16.msra.mxu0 %v5653_v51 }
 0xf7b   :  { %5655 = vmatprep.subr.bf16.mxu0 %v5933_v40 }
 0xf7e   :  { %5657 = vmatpush3.bf16.msra.mxu0 %v5656_v59 }
 0xf7f   :  { %5658 = vmatprep.subr.bf16.mxu0 %v5933_v40 }
 0xf82   :  { %5660 = vmatpush3.bf16.msra.mxu0 %v5659_v29 }
 0xf83   :  { %5661 = vmatprep.subr.bf16.mxu0 %v5933_v40 }
 0xf86   :  { %5663 = vmatpush3.bf16.msra.mxu0 %v5662_v31 }
 0xf87   :  { %5664 = vmatprep.subr.bf16.mxu0 %v5933_v40 }
 0xf8a   :  { %5666 = vmatpush3.bf16.msra.mxu0 %v5665_v42 }
 0xf8b   :  { %5667 = vmatprep.subr.bf16.mxu0 %v5933_v40 }
 0xf8e   :  { %5669 = vmatpush3.bf16.msra.mxu0 %v5668_v14 }
 0xf8f   :  { %5670 = vmatprep.subr.bf16.mxu0 %v5933_v40 }
 0xf92   :  { %5672 = vmatpush3.bf16.msra.mxu0 %v5671_v43 }
0x1048   :  { %v3373_v60 = vpop.f32.mrb[30].mxu0  ;;  %v3444_v9 = vpop.f32.mrb[46].mxu1 }
0x1049   :  { %v5734_v11 = vadd.f32 %v7211_v23, %v3373_v60  ;;  %v3375_v12 = vpop.f32.mrb[31].mxu0  ;;  %v4589_v16 = vpop.f32.mrb[47].mxu1  ;;  %v3445_v40 = vadd.f32 %v3444_v9, %v7218_v54  ;;  %v3604_v54 = vld [vmem:[%s7573_s10] ss:$0 sm:$0xff] }
0x104a   :  { %v5736_v21 = vadd.f32 %v7213_v32, %v3375_v12 }
0x104b   :  { %v3602_v36 = vmul.f32 -1.442695, %v5734_v11 }
0x104c   :  { %v3603_v17 = vmul.f32 -1.442695, %v5736_v21 }
0x104d   :  { %5922 = vpow2.f32 %v3602_v36 }
0x104e   :  { %5924 = vpow2.f32 %v3603_v17 }
0x1057   :  { %v5923_v18 = vpop.eup %5922 }
0x1058   :  { %v3452_v62 = vadd.f32 1.0, %v5923_v18  ;;  %v5925_v39 = vpop.eup %5924 }
0x1059   :  { %v3459_v28 = vadd.f32 1.0, %v5925_v39 }
0x105a   :  { %5926 = vrcp.f32 %v3452_v62 }
0x105b   :  { %5928 = vrcp.f32 %v3459_v28 }
0x1064   :  { %v5927_v27 = vpop.eup %5926 }
0x1065   :  { %v3462_v23 = vmul.f32 %v5927_v27, %v3445_v40  ;;  %v5929_v46 = vpop.eup %5928 }
0x1066   :  { %v3465_v32 = vsub.f32 1.0, %v5929_v46  ;;  %v3467_v15 = vmul.f32 %v5929_v46, %v7490_v13 }
0x1067   :  { %v3463_v35 = vadd.f32 %v3462_v23, %v2056_v25 }
0x1069   :  { %5930 = vtanh.f32 %v3463_v35 }
0x1073   :  { %v5931_v56 = vpop.eup %5930 }
0x1074   :  { %v3466_v4 = vmul.f32 %v5931_v56, %v3465_v32 }
0x1076   :  { %v3468_v24 = vadd.f32 %v3467_v15, %v3466_v4 }
0x1078   :  { %4623 = vmatmul.mubr.f32.vlgmr.msra.gmra.mrb[32].mxu0 %v3468_v24 }
0x114b   :  { %v3563_v53 = vpop.f32.mrb[32].mxu0 }
0x114c   :  { %v3564_v33 = vadd.f32 %v3604_v54, %v3563_v53  ;;  %v4624_v47 = vpop.f32.mrb[33].mxu0 }
0x114e   :  { %3567 = vst [vmem:[%s7574_s11] sm:$0xff] %v3564_v33 }

</bundles_post_ra>
